<compile_context>
chip_gen: v6e
topology: v6e:2x2x1
jax: 0.10.0
libtpu: 0.0.40
codegen_flags: <defaults>
</compile_context>

<pallas_src>
import math

import jax
import jax.numpy as jnp
import numpy as np
from jax.experimental import pallas as pl
from jax.experimental.pallas import tpu as pltpu

EPS = 1e-5
VMEM_LIMIT = 32 * 1024 * 1024   # explicit scoped-VMEM budget, safe on v5e/v6e/v7x


def _largest_divisor(n, cap, mult=1):
    """Largest divisor of n that is <= cap and a multiple of `mult` (fallback n)."""
    cap = max(1, min(n, cap))
    for t in range(cap, 0, -1):
        if n % t == 0 and t % mult == 0:
            return t
    return n


# --------------------------------------------------------------------------
# BatchNorm batch statistics: tiled reduction kernel (accumulator outputs)
# --------------------------------------------------------------------------
def bn_stats_kernel(x_ref, sum_ref, ssq_ref):
    @pl.when(pl.program_id(0) == 0)
    def _():
        sum_ref[...] = jnp.zeros_like(sum_ref)
        ssq_ref[...] = jnp.zeros_like(ssq_ref)

    x = x_ref[...]                                  # (tm, C), C on lanes
    sum_ref[...] += jnp.sum(x, axis=0, keepdims=True)
    ssq_ref[...] += jnp.sum(x * x, axis=0, keepdims=True)


def bn_scale_shift(x_nhwc, gamma, beta):
    """Training-mode BN folded to per-channel (scale, shift); global two-pass stats."""
    N, H, W, C = x_nhwc.shape
    M = N * H * W
    x2 = x_nhwc.reshape(M, C)
    tm = _largest_divisor(M, 2048, mult=8)          # row tile (full dim if tiny/odd)
    cost = pl.CostEstimate(flops=3 * M * C, transcendentals=0,
                           bytes_accessed=4 * (M * C + 2 * C))
    s, ss = pl.pallas_call(
        bn_stats_kernel,
        grid=(M // tm,),
        in_specs=[pl.BlockSpec((tm, C), lambda i: (i, 0))],
        out_specs=(pl.BlockSpec((1, C), lambda i: (0, 0)),
                   pl.BlockSpec((1, C), lambda i: (0, 0))),
        out_shape=(jax.ShapeDtypeStruct((1, C), jnp.float32),
                   jax.ShapeDtypeStruct((1, C), jnp.float32)),
        compiler_params=pltpu.CompilerParams(
            dimension_semantics=("arbitrary",),     # reduction axis
            vmem_limit_bytes=VMEM_LIMIT),
        cost_estimate=cost,
    )(x2)
    mean = s / M
    var = ss / M - mean * mean                      # biased batch variance (training)
    inv = jax.lax.rsqrt(var + EPS)
    scale = gamma.reshape(1, C) * inv
    shift = beta.reshape(1, C) - mean * scale
    return scale, shift


# --------------------------------------------------------------------------
# Fused (BN-affine + ReLU) -> Conv2d (+ bias + residual) kernel
# --------------------------------------------------------------------------
def make_conv_kernel(KH, KW, stride, dil, pad, H, W, Ho, Wo, apply_act, has_res):
    def kernel(scale_ref, shift_ref, x_ref, w_ref, b_ref, *rest):
        if has_res:
            res_ref, o_ref = rest
        else:
            (o_ref,) = rest

        x = x_ref[...][0]                           # (Hp, Wp, Cin), VMEM-resident
        Hp, Wp, cin = x.shape
        cout = o_ref.shape[-1]
        w = w_ref[...]                              # (KH*KW, Cin, Cout)

        if apply_act:
            # Fused BN affine + ReLU, applied before the conv's zero padding:
            # the padded border must stay exactly zero -> mask the border.
            xa = jnp.maximum(x * scale_ref[...] + shift_ref[...], 0.0)
            if (pad > 0) or (Hp > H) or (Wp > W):
                hh = jax.lax.broadcasted_iota(jnp.int32, (Hp, Wp, 1), 0)
                ww = jax.lax.broadcasted_iota(jnp.int32, (Hp, Wp, 1), 1)
                interior = ((hh >= pad) & (hh < pad + H) &
                            (ww >= pad) & (ww < pad + W))
                x = jnp.where(interior, xa, 0.0)
            else:
                x = xa

        # KH*KW accumulated per-tap MXU matmuls -> in-kernel im2col, no HBM slab.
        acc = jnp.zeros((Ho * Wo, cout), jnp.float32)
        for i in range(KH):
            for j in range(KW):
                h0, w0 = i * dil, j * dil
                if stride == 1:
                    xt = jax.lax.slice(x, (h0, w0, 0), (h0 + Ho, w0 + Wo, cin))
                else:
                    # Contiguous slice + reshape subsample (no strided indexing).
                    t = jax.lax.slice(
                        x, (h0, w0, 0),
                        (h0 + stride * Ho, w0 + stride * Wo, cin))
                    t = t.reshape(Ho, stride, Wo, stride, cin)
                    xt = t[:, 0, :, 0, :]
                acc = acc + jnp.dot(xt.reshape(Ho * Wo, cin), w[i * KW + j],
                                    preferred_element_type=jnp.float32)

        out = acc + b_ref[...]                      # fused bias
        if has_res:
            out = out + res_ref[...].reshape(Ho * Wo, cout)   # fused residual add
        o_ref[...] = out.reshape(1, Ho, Wo, cout).astype(o_ref.dtype)

    return kernel


def fused_conv(x, w, b, *, stride=1, padding=0, dilation=1,
               scale=None, shift=None, residual=None):
    """y = Conv2d(act(x)) + bias (+ residual); act = BN-affine+ReLU iff scale given."""
    N, H, W, Cin = x.shape
    KH, KW, _, Cout = w.shape
    Ho = (H + 2 * padding - dilation * (KH - 1) - 1) // stride + 1
    Wo = (W + 2 * padding - dilation * (KW - 1) - 1) // stride + 1

    # Pad so that every contiguous per-tap slice (stride*Ho rows starting at
    # (KH-1)*dil) is in-bounds; extra rows/cols are never selected after the
    # subsample step and never contribute to the output.
    need_h = (KH - 1) * dilation + stride * Ho
    need_w = (KW - 1) * dilation + stride * Wo
    Hp = max(H + 2 * padding, need_h)
    Wp = max(W + 2 * padding, need_w)
    xp = jnp.pad(x, ((0, 0),
                     (padding, Hp - H - padding),
                     (padding, Wp - W - padding),
                     (0, 0)))

    apply_act = scale is not None
    if not apply_act:                               # dummies (never read in kernel)
        scale = jnp.ones((1, Cin), jnp.float32)
        shift = jnp.zeros((1, Cin), jnp.float32)
    has_res = residual is not None

    wk = w.reshape(KH * KW, Cin, Cout)
    bk = b.reshape(1, Cout)

    kernel = make_conv_kernel(KH, KW, stride, dilation, padding, H, W, Ho, Wo,
                              apply_act, has_res)

    in_specs = [
        pl.BlockSpec((1, Cin), lambda n: (0, 0)),                  # scale
        pl.BlockSpec((1, Cin), lambda n: (0, 0)),                  # shift
        pl.BlockSpec((1, Hp, Wp, Cin), lambda n: (n, 0, 0, 0)),    # padded image
        pl.BlockSpec((KH * KW, Cin, Cout), lambda n: (0, 0, 0)),   # weights
        pl.BlockSpec((1, Cout), lambda n: (0, 0)),                 # bias
    ]
    args = [scale, shift, xp, wk, bk]
    if has_res:
        in_specs.append(pl.BlockSpec((1, Ho, Wo, Cout), lambda n: (n, 0, 0, 0)))
        args.append(residual)
    out_spec = pl.BlockSpec((1, Ho, Wo, Cout), lambda n: (n, 0, 0, 0))

    flops = 2 * N * Ho * Wo * KH * KW * Cin * Cout
    bytes_accessed = 4 * (xp.size + wk.size + bk.size + N * Ho * Wo * Cout
                          + (residual.size if has_res else 0))
    cost = pl.CostEstimate(flops=flops, transcendentals=0,
                           bytes_accessed=bytes_accessed)

    return pl.pallas_call(
        kernel,
        grid=(N,),
        in_specs=in_specs,
        out_specs=out_spec,
        out_shape=jax.ShapeDtypeStruct((N, Ho, Wo, Cout), jnp.float32),
        compiler_params=pltpu.CompilerParams(
            dimension_semantics=("parallel",),      # batch axis -> megacore split
            vmem_limit_bytes=VMEM_LIMIT),
        cost_estimate=cost,
    )(*args)


# --------------------------------------------------------------------------
# Parameters (deterministic, PyTorch-style init shapes)
# --------------------------------------------------------------------------
def init_params(key, in_channels, out_channels):
    ks = jax.random.split(key, 5)

    def conv_init(k, cin, cout, ksize):
        k1, k2 = jax.random.split(k)
        fan_in = cin * ksize * ksize
        bound = 1.0 / math.sqrt(fan_in)
        w = jax.random.uniform(k1, (ksize, ksize, cin, cout), jnp.float32, -bound, bound)
        b = jax.random.uniform(k2, (cout,), jnp.float32, -bound, bound)
        return w, b

    p = {}
    p["n1_conv1_w"], p["n1_conv1_b"] = conv_init(ks[0], in_channels, out_channels, 3)
    p["n1_conv2_w"], p["n1_conv2_b"] = conv_init(ks[1], out_channels, out_channels, 3)
    p["n2_conv1_w"], p["n2_conv1_b"] = conv_init(ks[2], out_channels, out_channels, 3)
    p["n2_conv2_w"], p["n2_conv2_b"] = conv_init(ks[3], out_channels, out_channels, 3)
    p["skip_w"], p["skip_b"] = conv_init(ks[4], in_channels, out_channels, 1)
    for name, c in [
        ("n1_bn1", in_channels),
        ("n1_bn2", out_channels),
        ("n2_bn1", out_channels),
        ("n2_bn2", out_channels),
    ]:
        p[name + "_g"] = jnp.ones((c,), jnp.float32)   # BatchNorm weight init
        p[name + "_b"] = jnp.zeros((c,), jnp.float32)  # BatchNorm bias init
    return p


# --------------------------------------------------------------------------
# Down.forward (Pallas) and pure-JAX reference
# --------------------------------------------------------------------------
def down_forward(x_nchw, p, dilation_factor):
    x = jnp.transpose(x_nchw, (0, 2, 3, 1))     # NCHW -> NHWC
    d = dilation_factor
    # net1: BN -> ReLU -> Conv(3, s2, p=d, dil=d) -> BN -> ReLU -> Conv(3, s1, p1)
    s1, b1 = bn_scale_shift(x, p["n1_bn1_g"], p["n1_bn1_b"])
    h = fused_conv(x, p["n1_conv1_w"], p["n1_conv1_b"], stride=2, padding=d,
                   dilation=d, scale=s1, shift=b1)
    s2, b2 = bn_scale_shift(h, p["n1_bn2_g"], p["n1_bn2_b"])
    out1 = fused_conv(h, p["n1_conv2_w"], p["n1_conv2_b"], stride=1, padding=1,
                      scale=s2, shift=b2)
    # skip: Conv(1, s2) on the raw input; residual add of out1 fused in epilogue.
    out3 = fused_conv(x, p["skip_w"], p["skip_b"], stride=2, padding=0,
                      residual=out1)
    # net2: BN -> ReLU -> Conv(3, s1, p1) -> BN -> ReLU -> Conv(3, s1, p1); + out3
    s3, b3 = bn_scale_shift(out3, p["n2_bn1_g"], p["n2_bn1_b"])
    h = fused_conv(out3, p["n2_conv1_w"], p["n2_conv1_b"], stride=1, padding=1,
                   scale=s3, shift=b3)
    s4, b4 = bn_scale_shift(h, p["n2_bn2_g"], p["n2_bn2_b"])
    out5 = fused_conv(h, p["n2_conv2_w"], p["n2_conv2_b"], stride=1, padding=1,
                      scale=s4, shift=b4, residual=out3)
    return jnp.transpose(out5, (0, 3, 1, 2))    # NHWC -> NCHW


def _ref_bn_relu(x, g, b):
    mean = jnp.mean(x, axis=(0, 1, 2), keepdims=True)
    var = jnp.mean((x - mean) ** 2, axis=(0, 1, 2), keepdims=True)
    return jnp.maximum((x - mean) / jnp.sqrt(var + EPS) * g + b, 0.0)


def _ref_conv(x, w, b, stride=1, padding=0, dilation=1):
    out = jax.lax.conv_general_dilated(
        x, w,
        window_strides=(stride, stride),
        padding=((padding, padding), (padding, padding)),
        rhs_dilation=(dilation, dilation),
        dimension_numbers=("NHWC", "HWIO", "NHWC"),
    )
    return out + b


def ref_forward(x_nchw, p, d):
    x = jnp.transpose(x_nchw, (0, 2, 3, 1))
    h = _ref_bn_relu(x, p["n1_bn1_g"], p["n1_bn1_b"])
    h = _ref_conv(h, p["n1_conv1_w"], p["n1_conv1_b"], stride=2, padding=d, dilation=d)
    h = _ref_bn_relu(h, p["n1_bn2_g"], p["n1_bn2_b"])
    out1 = _ref_conv(h, p["n1_conv2_w"], p["n1_conv2_b"], stride=1, padding=1)
    out2 = _ref_conv(x, p["skip_w"], p["skip_b"], stride=2, padding=0)
    out3 = out1 + out2
    h = _ref_bn_relu(out3, p["n2_bn1_g"], p["n2_bn1_b"])
    h = _ref_conv(h, p["n2_conv1_w"], p["n2_conv1_b"], stride=1, padding=1)
    h = _ref_bn_relu(h, p["n2_bn2_g"], p["n2_bn2_b"])
    out4 = _ref_conv(h, p["n2_conv2_w"], p["n2_conv2_b"], stride=1, padding=1)
    return jnp.transpose(out4 + out3, (0, 3, 1, 2))


# --------------------------------------------------------------------------
if __name__ == "__main__":
    in_channels, out_channels, dilation_factor = 4, 8, 2
    N, H, W = 2, 16, 16

    key = jax.random.PRNGKey(0)
    kx, kp = jax.random.split(key)
    x = jax.random.normal(kx, (N, in_channels, H, W), jnp.float32)  # NCHW like PyTorch
    params = init_params(kp, in_channels, out_channels)

    fwd = jax.jit(lambda xx, pp: down_forward(xx, pp, dilation_factor))
    out = jax.block_until_ready(fwd(x, params))

    ref = jax.block_until_ready(ref_forward(x, params, dilation_factor))
    assert out.shape == (N, out_channels, H // 2, W // 2), out.shape
    err = float(np.max(np.abs(np.asarray(out) - np.asarray(ref))))
    assert np.allclose(np.asarray(out), np.asarray(ref), rtol=5e-3, atol=5e-3), (
        "max abs err = %g" % err
    )
    print("KERNEL_OK")
</pallas_src>

<mosaic_0001>
module attributes {stable_mosaic.version = 11 : i64} {
  func.func @bn_stats_kernel(%arg0: i32, %arg1: memref<512x4xf32, #tpu.memory_space<vmem>>, %arg2: memref<1x4xf32, #tpu.memory_space<vmem>>, %arg3: memref<1x4xf32, #tpu.memory_space<vmem>>) attributes {dimension_semantics = [#tpu.dimension_semantics<arbitrary>], iteration_bounds = array<i64: 1>, scalar_prefetch = 0 : i64, scratch_operands = 0 : i64, tpu.core_type = #tpu.core_type<tc>, window_params = [{transform_indices = @transform_0, window_bounds = array<i64: 512, 4>}, {pipeline_mode = #tpu.pipeline_mode<synchronous>, transform_indices = @transform_1, window_bounds = array<i64: 1, 4>}, {pipeline_mode = #tpu.pipeline_mode<synchronous>, transform_indices = @transform_2, window_bounds = array<i64: 1, 4>}]} {
    %c0_i32 = arith.constant 0 : i32
    %0 = arith.cmpi eq, %arg0, %c0_i32 : i32
    %1 = arith.extui %0 : i1 to i32
    %c0_i32_0 = arith.constant 0 : i32
    %2 = arith.cmpi ne, %1, %c0_i32_0 : i32
    scf.if %2 {
      %cst_11 = arith.constant 0.000000e+00 : f32
      %15 = vector.broadcast %cst_11 : f32 to vector<1x4xf32>
      %c0_12 = arith.constant 0 : index
      %c0_13 = arith.constant 0 : index
      %16 = vector.load %arg2[%c0_12, %c0_13] : memref<1x4xf32, #tpu.memory_space<vmem>>, vector<1x4xf32>
      tpu.vector_store %arg2[%c0_12, %c0_13], %15 {strides = array<i32>} : memref<1x4xf32, #tpu.memory_space<vmem>>, vector<1x4xf32>,
      %cst_14 = arith.constant 0.000000e+00 : f32
      %17 = vector.broadcast %cst_14 : f32 to vector<1x4xf32>
      %c0_15 = arith.constant 0 : index
      %c0_16 = arith.constant 0 : index
      %18 = vector.load %arg3[%c0_15, %c0_16] : memref<1x4xf32, #tpu.memory_space<vmem>>, vector<1x4xf32>
      tpu.vector_store %arg3[%c0_15, %c0_16], %17 {strides = array<i32>} : memref<1x4xf32, #tpu.memory_space<vmem>>, vector<1x4xf32>,
    } else {
    }
    %c0 = arith.constant 0 : index
    %c0_1 = arith.constant 0 : index
    %3 = vector.load %arg1[%c0, %c0_1] : memref<512x4xf32, #tpu.memory_space<vmem>>, vector<512x4xf32>
    %c0_2 = arith.constant 0 : index
    %c0_3 = arith.constant 0 : index
    %4 = vector.load %arg2[%c0_2, %c0_3] : memref<1x4xf32, #tpu.memory_space<vmem>>, vector<1x4xf32>
    %cst = arith.constant dense<0.000000e+00> : vector<4xf32>
    %5 = vector.multi_reduction <add>, %3, %cst [0] : vector<512x4xf32> to vector<4xf32>
    %6 = vector.shape_cast %5 : vector<4xf32> to vector<1x4xf32>
    %7 = arith.addf %4, %6 : vector<1x4xf32>
    %c0_4 = arith.constant 0 : index
    %c0_5 = arith.constant 0 : index
    %8 = vector.load %arg2[%c0_4, %c0_5] : memref<1x4xf32, #tpu.memory_space<vmem>>, vector<1x4xf32>
    tpu.vector_store %arg2[%c0_4, %c0_5], %7 {strides = array<i32>} : memref<1x4xf32, #tpu.memory_space<vmem>>, vector<1x4xf32>,
    %c0_6 = arith.constant 0 : index
    %c0_7 = arith.constant 0 : index
    %9 = vector.load %arg3[%c0_6, %c0_7] : memref<1x4xf32, #tpu.memory_space<vmem>>, vector<1x4xf32>
    %10 = arith.mulf %3, %3 : vector<512x4xf32>
    %cst_8 = arith.constant dense<0.000000e+00> : vector<4xf32>
    %11 = vector.multi_reduction <add>, %10, %cst_8 [0] : vector<512x4xf32> to vector<4xf32>
    %12 = vector.shape_cast %11 : vector<4xf32> to vector<1x4xf32>
    %13 = arith.addf %9, %12 : vector<1x4xf32>
    %c0_9 = arith.constant 0 : index
    %c0_10 = arith.constant 0 : index
    %14 = vector.load %arg3[%c0_9, %c0_10] : memref<1x4xf32, #tpu.memory_space<vmem>>, vector<1x4xf32>
    tpu.vector_store %arg3[%c0_9, %c0_10], %13 {strides = array<i32>} : memref<1x4xf32, #tpu.memory_space<vmem>>, vector<1x4xf32>,
    return
  }
  func.func @transform_0(%arg0: i32) -> (i32, i32) {
    %c0_i32 = arith.constant 0 : i32
    %c0_i32_0 = arith.constant 0 : i32
    return %arg0, %c0_i32 : i32, i32
  }
  func.func @transform_1(%arg0: i32) -> (i32, i32) {
    %c0_i32 = arith.constant 0 : i32
    %c0_i32_0 = arith.constant 0 : i32
    %c0_i32_1 = arith.constant 0 : i32
    return %c0_i32, %c0_i32_0 : i32, i32
  }
  func.func @transform_2(%arg0: i32) -> (i32, i32) {
    %c0_i32 = arith.constant 0 : i32
    %c0_i32_0 = arith.constant 0 : i32
    %c0_i32_1 = arith.constant 0 : i32
    return %c0_i32, %c0_i32_0 : i32, i32
  }
}

module attributes {stable_mosaic.version = 11 : i64} {
  func.func @kernel(%arg0: i32, %arg1: memref<1x4xf32, #tpu.memory_space<vmem>>, %arg2: memref<1x4xf32, #tpu.memory_space<vmem>>, %arg3: memref<1x20x20x4xf32, #tpu.memory_space<vmem>>, %arg4: memref<9x4x8xf32, #tpu.memory_space<vmem>>, %arg5: memref<1x8xf32, #tpu.memory_space<vmem>>, %arg6: memref<1x8x8x8xf32, #tpu.memory_space<vmem>>) attributes {dimension_semantics = [#tpu.dimension_semantics<parallel>], iteration_bounds = array<i64: 2>, scalar_prefetch = 0 : i64, scratch_operands = 0 : i64, tpu.core_type = #tpu.core_type<tc>, window_params = [{pipeline_mode = #tpu.pipeline_mode<synchronous>, transform_indices = @transform_0, window_bounds = array<i64: 1, 4>}, {pipeline_mode = #tpu.pipeline_mode<synchronous>, transform_indices = @transform_1, window_bounds = array<i64: 1, 4>}, {transform_indices = @transform_2, window_bounds = array<i64: 1, 20, 20, 4>}, {pipeline_mode = #tpu.pipeline_mode<synchronous>, transform_indices = @transform_3, window_bounds = array<i64: 9, 4, 8>}, {pipeline_mode = #tpu.pipeline_mode<synchronous>, transform_indices = @transform_4, window_bounds = array<i64: 1, 8>}, {transform_indices = @transform_5, window_bounds = array<i64: 1, 8, 8, 8>}]} {
    %c0 = arith.constant 0 : index
    %c0_0 = arith.constant 0 : index
    %c0_1 = arith.constant 0 : index
    %c0_2 = arith.constant 0 : index
    %0 = vector.load %arg3[%c0, %c0_0, %c0_1, %c0_2] : memref<1x20x20x4xf32, #tpu.memory_space<vmem>>, vector<1x20x20x4xf32>
    %1 = vector.shape_cast %0 : vector<1x20x20x4xf32> to vector<20x20x4xf32>
    %c0_3 = arith.constant 0 : index
    %c0_4 = arith.constant 0 : index
    %c0_5 = arith.constant 0 : index
    %2 = vector.load %arg4[%c0_3, %c0_4, %c0_5] : memref<9x4x8xf32, #tpu.memory_space<vmem>>, vector<9x4x8xf32>
    %c0_6 = arith.constant 0 : index
    %c0_7 = arith.constant 0 : index
    %3 = vector.load %arg1[%c0_6, %c0_7] : memref<1x4xf32, #tpu.memory_space<vmem>>, vector<1x4xf32>
    %4 = vector.shape_cast %3 : vector<1x4xf32> to vector<1x1x4xf32>
    %5 = vector.broadcast %4 : vector<1x1x4xf32> to vector<20x20x4xf32>
    %6 = arith.mulf %1, %5 : vector<20x20x4xf32>
    %c0_8 = arith.constant 0 : index
    %c0_9 = arith.constant 0 : index
    %7 = vector.load %arg2[%c0_8, %c0_9] : memref<1x4xf32, #tpu.memory_space<vmem>>, vector<1x4xf32>
    %8 = vector.shape_cast %7 : vector<1x4xf32> to vector<1x1x4xf32>
    %9 = vector.broadcast %8 : vector<1x1x4xf32> to vector<20x20x4xf32>
    %10 = arith.addf %6, %9 : vector<20x20x4xf32>
    %cst = arith.constant 0.000000e+00 : f32
    %11 = vector.broadcast %cst : f32 to vector<20x20x4xf32>
    %12 = arith.maximumf %10, %11 : vector<20x20x4xf32>
    %13 = tpu.iota {dimensions = array<i32: 0>} : vector<20x20x1xi32>
    %14 = tpu.iota {dimensions = array<i32: 1>} : vector<20x20x1xi32>
    %c2_i32 = arith.constant 2 : i32
    %15 = vector.broadcast %c2_i32 : i32 to vector<20x20x1xi32>
    %16 = arith.cmpi sge, %13, %15 : vector<20x20x1xi32>
    %c18_i32 = arith.constant 18 : i32
    %17 = vector.broadcast %c18_i32 : i32 to vector<20x20x1xi32>
    %18 = arith.cmpi slt, %13, %17 : vector<20x20x1xi32>
    %19 = arith.andi %16, %18 : vector<20x20x1xi1>
    %c2_i32_10 = arith.constant 2 : i32
    %20 = vector.broadcast %c2_i32_10 : i32 to vector<20x20x1xi32>
    %21 = arith.cmpi sge, %14, %20 : vector<20x20x1xi32>
    %22 = arith.andi %19, %21 : vector<20x20x1xi1>
    %c18_i32_11 = arith.constant 18 : i32
    %23 = vector.broadcast %c18_i32_11 : i32 to vector<20x20x1xi32>
    %24 = arith.cmpi slt, %14, %23 : vector<20x20x1xi32>
    %25 = arith.andi %22, %24 : vector<20x20x1xi1>
    %cst_12 = arith.constant 0.000000e+00 : f32
    %26 = vector.shape_cast %25 : vector<20x20x1xi1> to vector<20x20x1xi1>
    %27 = vector.broadcast %26 : vector<20x20x1xi1> to vector<20x20x4xi1>
    %28 = vector.broadcast %cst_12 : f32 to vector<20x20x4xf32>
    %29 = arith.select %27, %12, %28 : vector<20x20x4xi1>, vector<20x20x4xf32>
    %cst_13 = arith.constant 0.000000e+00 : f32
    %30 = vector.broadcast %cst_13 : f32 to vector<64x8xf32>
    %31 = vector.extract_strided_slice %29 {offsets = [0, 0, 0], sizes = [16, 16, 4], strides = [1, 1, 1]} : vector<20x20x4xf32> to vector<16x16x4xf32>
    %32 = vector.shape_cast %31 : vector<16x16x4xf32> to vector<8x2x8x2x4xf32>
    %33 = vector.extract_strided_slice %32 {offsets = [0, 0, 0, 0, 0], sizes = [8, 1, 8, 1, 4], strides = [1, 1, 1, 1, 1]} : vector<8x2x8x2x4xf32> to vector<8x1x8x1x4xf32>
    %34 = vector.shape_cast %33 : vector<8x1x8x1x4xf32> to vector<8x8x4xf32>
    %35 = vector.shape_cast %34 : vector<8x8x4xf32> to vector<64x4xf32>
    %36 = vector.extract_strided_slice %2 {offsets = [0, 0, 0], sizes = [1, 4, 8], strides = [1, 1, 1]} : vector<9x4x8xf32> to vector<1x4x8xf32>
    %37 = vector.shape_cast %36 : vector<1x4x8xf32> to vector<4x8xf32>
    %cst_14 = arith.constant dense<0.000000e+00> : vector<64x8xf32>
    %38 = tpu.matmul %35, %37, %cst_14 {dimension_numbers = #tpu.dot_dimension_numbers<[1], [0], [0], [1], [0, 0, 1, 1], [], []>} : vector<64x4xf32>, vector<4x8xf32>, vector<64x8xf32> -> vector<64x8xf32>
    %39 = arith.addf %30, %38 : vector<64x8xf32>
    %40 = vector.extract_strided_slice %29 {offsets = [0, 2, 0], sizes = [16, 16, 4], strides = [1, 1, 1]} : vector<20x20x4xf32> to vector<16x16x4xf32>
    %41 = vector.shape_cast %40 : vector<16x16x4xf32> to vector<8x2x8x2x4xf32>
    %42 = vector.extract_strided_slice %41 {offsets = [0, 0, 0, 0, 0], sizes = [8, 1, 8, 1, 4], strides = [1, 1, 1, 1, 1]} : vector<8x2x8x2x4xf32> to vector<8x1x8x1x4xf32>
    %43 = vector.shape_cast %42 : vector<8x1x8x1x4xf32> to vector<8x8x4xf32>
    %44 = vector.shape_cast %43 : vector<8x8x4xf32> to vector<64x4xf32>
    %45 = vector.extract_strided_slice %2 {offsets = [1, 0, 0], sizes = [1, 4, 8], strides = [1, 1, 1]} : vector<9x4x8xf32> to vector<1x4x8xf32>
    %46 = vector.shape_cast %45 : vector<1x4x8xf32> to vector<4x8xf32>
    %cst_15 = arith.constant dense<0.000000e+00> : vector<64x8xf32>
    %47 = tpu.matmul %44, %46, %cst_15 {dimension_numbers = #tpu.dot_dimension_numbers<[1], [0], [0], [1], [0, 0, 1, 1], [], []>} : vector<64x4xf32>, vector<4x8xf32>, vector<64x8xf32> -> vector<64x8xf32>
    %48 = arith.addf %39, %47 : vector<64x8xf32>
    %49 = vector.extract_strided_slice %29 {offsets = [0, 4, 0], sizes = [16, 16, 4], strides = [1, 1, 1]} : vector<20x20x4xf32> to vector<16x16x4xf32>
    %50 = vector.shape_cast %49 : vector<16x16x4xf32> to vector<8x2x8x2x4xf32>
    %51 = vector.extract_strided_slice %50 {offsets = [0, 0, 0, 0, 0], sizes = [8, 1, 8, 1, 4], strides = [1, 1, 1, 1, 1]} : vector<8x2x8x2x4xf32> to vector<8x1x8x1x4xf32>
    %52 = vector.shape_cast %51 : vector<8x1x8x1x4xf32> to vector<8x8x4xf32>
    %53 = vector.shape_cast %52 : vector<8x8x4xf32> to vector<64x4xf32>
    %54 = vector.extract_strided_slice %2 {offsets = [2, 0, 0], sizes = [1, 4, 8], strides = [1, 1, 1]} : vector<9x4x8xf32> to vector<1x4x8xf32>
    %55 = vector.shape_cast %54 : vector<1x4x8xf32> to vector<4x8xf32>
    %cst_16 = arith.constant dense<0.000000e+00> : vector<64x8xf32>
    %56 = tpu.matmul %53, %55, %cst_16 {dimension_numbers = #tpu.dot_dimension_numbers<[1], [0], [0], [1], [0, 0, 1, 1], [], []>} : vector<64x4xf32>, vector<4x8xf32>, vector<64x8xf32> -> vector<64x8xf32>
    %57 = arith.addf %48, %56 : vector<64x8xf32>
    %58 = vector.extract_strided_slice %29 {offsets = [2, 0, 0], sizes = [16, 16, 4], strides = [1, 1, 1]} : vector<20x20x4xf32> to vector<16x16x4xf32>
    %59 = vector.shape_cast %58 : vector<16x16x4xf32> to vector<8x2x8x2x4xf32>
    %60 = vector.extract_strided_slice %59 {offsets = [0, 0, 0, 0, 0], sizes = [8, 1, 8, 1, 4], strides = [1, 1, 1, 1, 1]} : vector<8x2x8x2x4xf32> to vector<8x1x8x1x4xf32>
    %61 = vector.shape_cast %60 : vector<8x1x8x1x4xf32> to vector<8x8x4xf32>
    %62 = vector.shape_cast %61 : vector<8x8x4xf32> to vector<64x4xf32>
    %63 = vector.extract_strided_slice %2 {offsets = [3, 0, 0], sizes = [1, 4, 8], strides = [1, 1, 1]} : vector<9x4x8xf32> to vector<1x4x8xf32>
    %64 = vector.shape_cast %63 : vector<1x4x8xf32> to vector<4x8xf32>
    %cst_17 = arith.constant dense<0.000000e+00> : vector<64x8xf32>
    %65 = tpu.matmul %62, %64, %cst_17 {dimension_numbers = #tpu.dot_dimension_numbers<[1], [0], [0], [1], [0, 0, 1, 1], [], []>} : vector<64x4xf32>, vector<4x8xf32>, vector<64x8xf32> -> vector<64x8xf32>
    %66 = arith.addf %57, %65 : vector<64x8xf32>
    %67 = vector.extract_strided_slice %29 {offsets = [2, 2, 0], sizes = [16, 16, 4], strides = [1, 1, 1]} : vector<20x20x4xf32> to vector<16x16x4xf32>
    %68 = vector.shape_cast %67 : vector<16x16x4xf32> to vector<8x2x8x2x4xf32>
    %69 = vector.extract_strided_slice %68 {offsets = [0, 0, 0, 0, 0], sizes = [8, 1, 8, 1, 4], strides = [1, 1, 1, 1, 1]} : vector<8x2x8x2x4xf32> to vector<8x1x8x1x4xf32>
    %70 = vector.shape_cast %69 : vector<8x1x8x1x4xf32> to vector<8x8x4xf32>
    %71 = vector.shape_cast %70 : vector<8x8x4xf32> to vector<64x4xf32>
    %72 = vector.extract_strided_slice %2 {offsets = [4, 0, 0], sizes = [1, 4, 8], strides = [1, 1, 1]} : vector<9x4x8xf32> to vector<1x4x8xf32>
    %73 = vector.shape_cast %72 : vector<1x4x8xf32> to vector<4x8xf32>
    %cst_18 = arith.constant dense<0.000000e+00> : vector<64x8xf32>
    %74 = tpu.matmul %71, %73, %cst_18 {dimension_numbers = #tpu.dot_dimension_numbers<[1], [0], [0], [1], [0, 0, 1, 1], [], []>} : vector<64x4xf32>, vector<4x8xf32>, vector<64x8xf32> -> vector<64x8xf32>
    %75 = arith.addf %66, %74 : vector<64x8xf32>
    %76 = vector.extract_strided_slice %29 {offsets = [2, 4, 0], sizes = [16, 16, 4], strides = [1, 1, 1]} : vector<20x20x4xf32> to vector<16x16x4xf32>
    %77 = vector.shape_cast %76 : vector<16x16x4xf32> to vector<8x2x8x2x4xf32>
    %78 = vector.extract_strided_slice %77 {offsets = [0, 0, 0, 0, 0], sizes = [8, 1, 8, 1, 4], strides = [1, 1, 1, 1, 1]} : vector<8x2x8x2x4xf32> to vector<8x1x8x1x4xf32>
    %79 = vector.shape_cast %78 : vector<8x1x8x1x4xf32> to vector<8x8x4xf32>
    %80 = vector.shape_cast %79 : vector<8x8x4xf32> to vector<64x4xf32>
    %81 = vector.extract_strided_slice %2 {offsets = [5, 0, 0], sizes = [1, 4, 8], strides = [1, 1, 1]} : vector<9x4x8xf32> to vector<1x4x8xf32>
    %82 = vector.shape_cast %81 : vector<1x4x8xf32> to vector<4x8xf32>
    %cst_19 = arith.constant dense<0.000000e+00> : vector<64x8xf32>
    %83 = tpu.matmul %80, %82, %cst_19 {dimension_numbers = #tpu.dot_dimension_numbers<[1], [0], [0], [1], [0, 0, 1, 1], [], []>} : vector<64x4xf32>, vector<4x8xf32>, vector<64x8xf32> -> vector<64x8xf32>
    %84 = arith.addf %75, %83 : vector<64x8xf32>
    %85 = vector.extract_strided_slice %29 {offsets = [4, 0, 0], sizes = [16, 16, 4], strides = [1, 1, 1]} : vector<20x20x4xf32> to vector<16x16x4xf32>
    %86 = vector.shape_cast %85 : vector<16x16x4xf32> to vector<8x2x8x2x4xf32>
    %87 = vector.extract_strided_slice %86 {offsets = [0, 0, 0, 0, 0], sizes = [8, 1, 8, 1, 4], strides = [1, 1, 1, 1, 1]} : vector<8x2x8x2x4xf32> to vector<8x1x8x1x4xf32>
    %88 = vector.shape_cast %87 : vector<8x1x8x1x4xf32> to vector<8x8x4xf32>
    %89 = vector.shape_cast %88 : vector<8x8x4xf32> to vector<64x4xf32>
    %90 = vector.extract_strided_slice %2 {offsets = [6, 0, 0], sizes = [1, 4, 8], strides = [1, 1, 1]} : vector<9x4x8xf32> to vector<1x4x8xf32>
    %91 = vector.shape_cast %90 : vector<1x4x8xf32> to vector<4x8xf32>
    %cst_20 = arith.constant dense<0.000000e+00> : vector<64x8xf32>
    %92 = tpu.matmul %89, %91, %cst_20 {dimension_numbers = #tpu.dot_dimension_numbers<[1], [0], [0], [1], [0, 0, 1, 1], [], []>} : vector<64x4xf32>, vector<4x8xf32>, vector<64x8xf32> -> vector<64x8xf32>
    %93 = arith.addf %84, %92 : vector<64x8xf32>
    %94 = vector.extract_strided_slice %29 {offsets = [4, 2, 0], sizes = [16, 16, 4], strides = [1, 1, 1]} : vector<20x20x4xf32> to vector<16x16x4xf32>
    %95 = vector.shape_cast %94 : vector<16x16x4xf32> to vector<8x2x8x2x4xf32>
    %96 = vector.extract_strided_slice %95 {offsets = [0, 0, 0, 0, 0], sizes = [8, 1, 8, 1, 4], strides = [1, 1, 1, 1, 1]} : vector<8x2x8x2x4xf32> to vector<8x1x8x1x4xf32>
    %97 = vector.shape_cast %96 : vector<8x1x8x1x4xf32> to vector<8x8x4xf32>
    %98 = vector.shape_cast %97 : vector<8x8x4xf32> to vector<64x4xf32>
    %99 = vector.extract_strided_slice %2 {offsets = [7, 0, 0], sizes = [1, 4, 8], strides = [1, 1, 1]} : vector<9x4x8xf32> to vector<1x4x8xf32>
    %100 = vector.shape_cast %99 : vector<1x4x8xf32> to vector<4x8xf32>
    %cst_21 = arith.constant dense<0.000000e+00> : vector<64x8xf32>
    %101 = tpu.matmul %98, %100, %cst_21 {dimension_numbers = #tpu.dot_dimension_numbers<[1], [0], [0], [1], [0, 0, 1, 1], [], []>} : vector<64x4xf32>, vector<4x8xf32>, vector<64x8xf32> -> vector<64x8xf32>
    %102 = arith.addf %93, %101 : vector<64x8xf32>
    %103 = vector.extract_strided_slice %29 {offsets = [4, 4, 0], sizes = [16, 16, 4], strides = [1, 1, 1]} : vector<20x20x4xf32> to vector<16x16x4xf32>
    %104 = vector.shape_cast %103 : vector<16x16x4xf32> to vector<8x2x8x2x4xf32>
    %105 = vector.extract_strided_slice %104 {offsets = [0, 0, 0, 0, 0], sizes = [8, 1, 8, 1, 4], strides = [1, 1, 1, 1, 1]} : vector<8x2x8x2x4xf32> to vector<8x1x8x1x4xf32>
    %106 = vector.shape_cast %105 : vector<8x1x8x1x4xf32> to vector<8x8x4xf32>
    %107 = vector.shape_cast %106 : vector<8x8x4xf32> to vector<64x4xf32>
    %108 = vector.extract_strided_slice %2 {offsets = [8, 0, 0], sizes = [1, 4, 8], strides = [1, 1, 1]} : vector<9x4x8xf32> to vector<1x4x8xf32>
    %109 = vector.shape_cast %108 : vector<1x4x8xf32> to vector<4x8xf32>
    %cst_22 = arith.constant dense<0.000000e+00> : vector<64x8xf32>
    %110 = tpu.matmul %107, %109, %cst_22 {dimension_numbers = #tpu.dot_dimension_numbers<[1], [0], [0], [1], [0, 0, 1, 1], [], []>} : vector<64x4xf32>, vector<4x8xf32>, vector<64x8xf32> -> vector<64x8xf32>
    %111 = arith.addf %102, %110 : vector<64x8xf32>
    %c0_23 = arith.constant 0 : index
    %c0_24 = arith.constant 0 : index
    %112 = vector.load %arg5[%c0_23, %c0_24] : memref<1x8xf32, #tpu.memory_space<vmem>>, vector<1x8xf32>
    %113 = vector.broadcast %112 : vector<1x8xf32> to vector<64x8xf32>
    %114 = arith.addf %111, %113 : vector<64x8xf32>
    %115 = vector.shape_cast %114 : vector<64x8xf32> to vector<1x8x8x8xf32>
    %c0_25 = arith.constant 0 : index
    %c0_26 = arith.constant 0 : index
    %c0_27 = arith.constant 0 : index
    %c0_28 = arith.constant 0 : index
    %116 = vector.load %arg6[%c0_25, %c0_26, %c0_27, %c0_28] : memref<1x8x8x8xf32, #tpu.memory_space<vmem>>, vector<1x8x8x8xf32>
    tpu.vector_store %arg6[%c0_25, %c0_26, %c0_27, %c0_28], %115 {strides = array<i32>} : memref<1x8x8x8xf32, #tpu.memory_space<vmem>>, vector<1x8x8x8xf32>,
    return
  }
  func.func @transform_0(%arg0: i32) -> (i32, i32) {
    %c0_i32 = arith.constant 0 : i32
    %c0_i32_0 = arith.constant 0 : i32
    %c0_i32_1 = arith.constant 0 : i32
    return %c0_i32, %c0_i32_0 : i32, i32
  }
  func.func @transform_1(%arg0: i32) -> (i32, i32) {
    %c0_i32 = arith.constant 0 : i32
    %c0_i32_0 = arith.constant 0 : i32
    %c0_i32_1 = arith.constant 0 : i32
    return %c0_i32, %c0_i32_0 : i32, i32
  }
  func.func @transform_2(%arg0: i32) -> (i32, i32, i32, i32) {
    %c0_i32 = arith.constant 0 : i32
    %c0_i32_0 = arith.constant 0 : i32
    %c0_i32_1 = arith.constant 0 : i32
    %c0_i32_2 = arith.constant 0 : i32
    return %arg0, %c0_i32, %c0_i32_0, %c0_i32_1 : i32, i32, i32, i32
  }
  func.func @transform_3(%arg0: i32) -> (i32, i32, i32) {
    %c0_i32 = arith.constant 0 : i32
    %c0_i32_0 = arith.constant 0 : i32
    %c0_i32_1 = arith.constant 0 : i32
    %c0_i32_2 = arith.constant 0 : i32
    return %c0_i32, %c0_i32_0, %c0_i32_1 : i32, i32, i32
  }
  func.func @transform_4(%arg0: i32) -> (i32, i32) {
    %c0_i32 = arith.constant 0 : i32
    %c0_i32_0 = arith.constant 0 : i32
    %c0_i32_1 = arith.constant 0 : i32
    return %c0_i32, %c0_i32_0 : i32, i32
  }
  func.func @transform_5(%arg0: i32) -> (i32, i32, i32, i32) {
    %c0_i32 = arith.constant 0 : i32
    %c0_i32_0 = arith.constant 0 : i32
    %c0_i32_1 = arith.constant 0 : i32
    %c0_i32_2 = arith.constant 0 : i32
    return %arg0, %c0_i32, %c0_i32_0, %c0_i32_1 : i32, i32, i32, i32
  }
}

module attributes {stable_mosaic.version = 11 : i64} {
  func.func @bn_stats_kernel(%arg0: i32, %arg1: memref<128x8xf32, #tpu.memory_space<vmem>>, %arg2: memref<1x8xf32, #tpu.memory_space<vmem>>, %arg3: memref<1x8xf32, #tpu.memory_space<vmem>>) attributes {dimension_semantics = [#tpu.dimension_semantics<arbitrary>], iteration_bounds = array<i64: 1>, scalar_prefetch = 0 : i64, scratch_operands = 0 : i64, tpu.core_type = #tpu.core_type<tc>, window_params = [{transform_indices = @transform_0, window_bounds = array<i64: 128, 8>}, {pipeline_mode = #tpu.pipeline_mode<synchronous>, transform_indices = @transform_1, window_bounds = array<i64: 1, 8>}, {pipeline_mode = #tpu.pipeline_mode<synchronous>, transform_indices = @transform_2, window_bounds = array<i64: 1, 8>}]} {
    %c0_i32 = arith.constant 0 : i32
    %0 = arith.cmpi eq, %arg0, %c0_i32 : i32
    %1 = arith.extui %0 : i1 to i32
    %c0_i32_0 = arith.constant 0 : i32
    %2 = arith.cmpi ne, %1, %c0_i32_0 : i32
    scf.if %2 {
      %cst_11 = arith.constant 0.000000e+00 : f32
      %15 = vector.broadcast %cst_11 : f32 to vector<1x8xf32>
      %c0_12 = arith.constant 0 : index
      %c0_13 = arith.constant 0 : index
      %16 = vector.load %arg2[%c0_12, %c0_13] : memref<1x8xf32, #tpu.memory_space<vmem>>, vector<1x8xf32>
      tpu.vector_store %arg2[%c0_12, %c0_13], %15 {strides = array<i32>} : memref<1x8xf32, #tpu.memory_space<vmem>>, vector<1x8xf32>,
      %cst_14 = arith.constant 0.000000e+00 : f32
      %17 = vector.broadcast %cst_14 : f32 to vector<1x8xf32>
      %c0_15 = arith.constant 0 : index
      %c0_16 = arith.constant 0 : index
      %18 = vector.load %arg3[%c0_15, %c0_16] : memref<1x8xf32, #tpu.memory_space<vmem>>, vector<1x8xf32>
      tpu.vector_store %arg3[%c0_15, %c0_16], %17 {strides = array<i32>} : memref<1x8xf32, #tpu.memory_space<vmem>>, vector<1x8xf32>,
    } else {
    }
    %c0 = arith.constant 0 : index
    %c0_1 = arith.constant 0 : index
    %3 = vector.load %arg1[%c0, %c0_1] : memref<128x8xf32, #tpu.memory_space<vmem>>, vector<128x8xf32>
    %c0_2 = arith.constant 0 : index
    %c0_3 = arith.constant 0 : index
    %4 = vector.load %arg2[%c0_2, %c0_3] : memref<1x8xf32, #tpu.memory_space<vmem>>, vector<1x8xf32>
    %cst = arith.constant dense<0.000000e+00> : vector<8xf32>
    %5 = vector.multi_reduction <add>, %3, %cst [0] : vector<128x8xf32> to vector<8xf32>
    %6 = vector.shape_cast %5 : vector<8xf32> to vector<1x8xf32>
    %7 = arith.addf %4, %6 : vector<1x8xf32>
    %c0_4 = arith.constant 0 : index
    %c0_5 = arith.constant 0 : index
    %8 = vector.load %arg2[%c0_4, %c0_5] : memref<1x8xf32, #tpu.memory_space<vmem>>, vector<1x8xf32>
    tpu.vector_store %arg2[%c0_4, %c0_5], %7 {strides = array<i32>} : memref<1x8xf32, #tpu.memory_space<vmem>>, vector<1x8xf32>,
    %c0_6 = arith.constant 0 : index
    %c0_7 = arith.constant 0 : index
    %9 = vector.load %arg3[%c0_6, %c0_7] : memref<1x8xf32, #tpu.memory_space<vmem>>, vector<1x8xf32>
    %10 = arith.mulf %3, %3 : vector<128x8xf32>
    %cst_8 = arith.constant dense<0.000000e+00> : vector<8xf32>
    %11 = vector.multi_reduction <add>, %10, %cst_8 [0] : vector<128x8xf32> to vector<8xf32>
    %12 = vector.shape_cast %11 : vector<8xf32> to vector<1x8xf32>
    %13 = arith.addf %9, %12 : vector<1x8xf32>
    %c0_9 = arith.constant 0 : index
    %c0_10 = arith.constant 0 : index
    %14 = vector.load %arg3[%c0_9, %c0_10] : memref<1x8xf32, #tpu.memory_space<vmem>>, vector<1x8xf32>
    tpu.vector_store %arg3[%c0_9, %c0_10], %13 {strides = array<i32>} : memref<1x8xf32, #tpu.memory_space<vmem>>, vector<1x8xf32>,
    return
  }
  func.func @transform_0(%arg0: i32) -> (i32, i32) {
    %c0_i32 = arith.constant 0 : i32
    %c0_i32_0 = arith.constant 0 : i32
    return %arg0, %c0_i32 : i32, i32
  }
  func.func @transform_1(%arg0: i32) -> (i32, i32) {
    %c0_i32 = arith.constant 0 : i32
    %c0_i32_0 = arith.constant 0 : i32
    %c0_i32_1 = arith.constant 0 : i32
    return %c0_i32, %c0_i32_0 : i32, i32
  }
  func.func @transform_2(%arg0: i32) -> (i32, i32) {
    %c0_i32 = arith.constant 0 : i32
    %c0_i32_0 = arith.constant 0 : i32
    %c0_i32_1 = arith.constant 0 : i32
    return %c0_i32, %c0_i32_0 : i32, i32
  }
}

module attributes {stable_mosaic.version = 11 : i64} {
  func.func @kernel(%arg0: i32, %arg1: memref<1x8xf32, #tpu.memory_space<vmem>>, %arg2: memref<1x8xf32, #tpu.memory_space<vmem>>, %arg3: memref<1x10x10x8xf32, #tpu.memory_space<vmem>>, %arg4: memref<9x8x8xf32, #tpu.memory_space<vmem>>, %arg5: memref<1x8xf32, #tpu.memory_space<vmem>>, %arg6: memref<1x8x8x8xf32, #tpu.memory_space<vmem>>) attributes {dimension_semantics = [#tpu.dimension_semantics<parallel>], iteration_bounds = array<i64: 2>, scalar_prefetch = 0 : i64, scratch_operands = 0 : i64, tpu.core_type = #tpu.core_type<tc>, window_params = [{pipeline_mode = #tpu.pipeline_mode<synchronous>, transform_indices = @transform_0, window_bounds = array<i64: 1, 8>}, {pipeline_mode = #tpu.pipeline_mode<synchronous>, transform_indices = @transform_1, window_bounds = array<i64: 1, 8>}, {transform_indices = @transform_2, window_bounds = array<i64: 1, 10, 10, 8>}, {pipeline_mode = #tpu.pipeline_mode<synchronous>, transform_indices = @transform_3, window_bounds = array<i64: 9, 8, 8>}, {pipeline_mode = #tpu.pipeline_mode<synchronous>, transform_indices = @transform_4, window_bounds = array<i64: 1, 8>}, {transform_indices = @transform_5, window_bounds = array<i64: 1, 8, 8, 8>}]} {
    %c0 = arith.constant 0 : index
    %c0_0 = arith.constant 0 : index
    %c0_1 = arith.constant 0 : index
    %c0_2 = arith.constant 0 : index
    %0 = vector.load %arg3[%c0, %c0_0, %c0_1, %c0_2] : memref<1x10x10x8xf32, #tpu.memory_space<vmem>>, vector<1x10x10x8xf32>
    %1 = vector.shape_cast %0 : vector<1x10x10x8xf32> to vector<10x10x8xf32>
    %c0_3 = arith.constant 0 : index
    %c0_4 = arith.constant 0 : index
    %c0_5 = arith.constant 0 : index
    %2 = vector.load %arg4[%c0_3, %c0_4, %c0_5] : memref<9x8x8xf32, #tpu.memory_space<vmem>>, vector<9x8x8xf32>
    %c0_6 = arith.constant 0 : index
    %c0_7 = arith.constant 0 : index
    %3 = vector.load %arg1[%c0_6, %c0_7] : memref<1x8xf32, #tpu.memory_space<vmem>>, vector<1x8xf32>
    %4 = vector.shape_cast %3 : vector<1x8xf32> to vector<1x1x8xf32>
    %5 = vector.broadcast %4 : vector<1x1x8xf32> to vector<10x10x8xf32>
    %6 = arith.mulf %1, %5 : vector<10x10x8xf32>
    %c0_8 = arith.constant 0 : index
    %c0_9 = arith.constant 0 : index
    %7 = vector.load %arg2[%c0_8, %c0_9] : memref<1x8xf32, #tpu.memory_space<vmem>>, vector<1x8xf32>
    %8 = vector.shape_cast %7 : vector<1x8xf32> to vector<1x1x8xf32>
    %9 = vector.broadcast %8 : vector<1x1x8xf32> to vector<10x10x8xf32>
    %10 = arith.addf %6, %9 : vector<10x10x8xf32>
    %cst = arith.constant 0.000000e+00 : f32
    %11 = vector.broadcast %cst : f32 to vector<10x10x8xf32>
    %12 = arith.maximumf %10, %11 : vector<10x10x8xf32>
    %13 = tpu.iota {dimensions = array<i32: 0>} : vector<10x10x1xi32>
    %14 = tpu.iota {dimensions = array<i32: 1>} : vector<10x10x1xi32>
    %c1_i32 = arith.constant 1 : i32
    %15 = vector.broadcast %c1_i32 : i32 to vector<10x10x1xi32>
    %16 = arith.cmpi sge, %13, %15 : vector<10x10x1xi32>
    %c9_i32 = arith.constant 9 : i32
    %17 = vector.broadcast %c9_i32 : i32 to vector<10x10x1xi32>
    %18 = arith.cmpi slt, %13, %17 : vector<10x10x1xi32>
    %19 = arith.andi %16, %18 : vector<10x10x1xi1>
    %c1_i32_10 = arith.constant 1 : i32
    %20 = vector.broadcast %c1_i32_10 : i32 to vector<10x10x1xi32>
    %21 = arith.cmpi sge, %14, %20 : vector<10x10x1xi32>
    %22 = arith.andi %19, %21 : vector<10x10x1xi1>
    %c9_i32_11 = arith.constant 9 : i32
    %23 = vector.broadcast %c9_i32_11 : i32 to vector<10x10x1xi32>
    %24 = arith.cmpi slt, %14, %23 : vector<10x10x1xi32>
    %25 = arith.andi %22, %24 : vector<10x10x1xi1>
    %cst_12 = arith.constant 0.000000e+00 : f32
    %26 = vector.shape_cast %25 : vector<10x10x1xi1> to vector<10x10x1xi1>
    %27 = vector.broadcast %26 : vector<10x10x1xi1> to vector<10x10x8xi1>
    %28 = vector.broadcast %cst_12 : f32 to vector<10x10x8xf32>
    %29 = arith.select %27, %12, %28 : vector<10x10x8xi1>, vector<10x10x8xf32>
    %cst_13 = arith.constant 0.000000e+00 : f32
    %30 = vector.broadcast %cst_13 : f32 to vector<64x8xf32>
    %31 = vector.extract_strided_slice %29 {offsets = [0, 0, 0], sizes = [8, 8, 8], strides = [1, 1, 1]} : vector<10x10x8xf32> to vector<8x8x8xf32>
    %32 = vector.shape_cast %31 : vector<8x8x8xf32> to vector<64x8xf32>
    %33 = vector.extract_strided_slice %2 {offsets = [0, 0, 0], sizes = [1, 8, 8], strides = [1, 1, 1]} : vector<9x8x8xf32> to vector<1x8x8xf32>
    %34 = vector.shape_cast %33 : vector<1x8x8xf32> to vector<8x8xf32>
    %cst_14 = arith.constant dense<0.000000e+00> : vector<64x8xf32>
    %35 = tpu.matmul %32, %34, %cst_14 {dimension_numbers = #tpu.dot_dimension_numbers<[1], [0], [0], [1], [0, 0, 1, 1], [], []>} : vector<64x8xf32>, vector<8x8xf32>, vector<64x8xf32> -> vector<64x8xf32>
    %36 = arith.addf %30, %35 : vector<64x8xf32>
    %37 = vector.extract_strided_slice %29 {offsets = [0, 1, 0], sizes = [8, 8, 8], strides = [1, 1, 1]} : vector<10x10x8xf32> to vector<8x8x8xf32>
    %38 = vector.shape_cast %37 : vector<8x8x8xf32> to vector<64x8xf32>
    %39 = vector.extract_strided_slice %2 {offsets = [1, 0, 0], sizes = [1, 8, 8], strides = [1, 1, 1]} : vector<9x8x8xf32> to vector<1x8x8xf32>
    %40 = vector.shape_cast %39 : vector<1x8x8xf32> to vector<8x8xf32>
    %cst_15 = arith.constant dense<0.000000e+00> : vector<64x8xf32>
    %41 = tpu.matmul %38, %40, %cst_15 {dimension_numbers = #tpu.dot_dimension_numbers<[1], [0], [0], [1], [0, 0, 1, 1], [], []>} : vector<64x8xf32>, vector<8x8xf32>, vector<64x8xf32> -> vector<64x8xf32>
    %42 = arith.addf %36, %41 : vector<64x8xf32>
    %43 = vector.extract_strided_slice %29 {offsets = [0, 2, 0], sizes = [8, 8, 8], strides = [1, 1, 1]} : vector<10x10x8xf32> to vector<8x8x8xf32>
    %44 = vector.shape_cast %43 : vector<8x8x8xf32> to vector<64x8xf32>
    %45 = vector.extract_strided_slice %2 {offsets = [2, 0, 0], sizes = [1, 8, 8], strides = [1, 1, 1]} : vector<9x8x8xf32> to vector<1x8x8xf32>
    %46 = vector.shape_cast %45 : vector<1x8x8xf32> to vector<8x8xf32>
    %cst_16 = arith.constant dense<0.000000e+00> : vector<64x8xf32>
    %47 = tpu.matmul %44, %46, %cst_16 {dimension_numbers = #tpu.dot_dimension_numbers<[1], [0], [0], [1], [0, 0, 1, 1], [], []>} : vector<64x8xf32>, vector<8x8xf32>, vector<64x8xf32> -> vector<64x8xf32>
    %48 = arith.addf %42, %47 : vector<64x8xf32>
    %49 = vector.extract_strided_slice %29 {offsets = [1, 0, 0], sizes = [8, 8, 8], strides = [1, 1, 1]} : vector<10x10x8xf32> to vector<8x8x8xf32>
    %50 = vector.shape_cast %49 : vector<8x8x8xf32> to vector<64x8xf32>
    %51 = vector.extract_strided_slice %2 {offsets = [3, 0, 0], sizes = [1, 8, 8], strides = [1, 1, 1]} : vector<9x8x8xf32> to vector<1x8x8xf32>
    %52 = vector.shape_cast %51 : vector<1x8x8xf32> to vector<8x8xf32>
    %cst_17 = arith.constant dense<0.000000e+00> : vector<64x8xf32>
    %53 = tpu.matmul %50, %52, %cst_17 {dimension_numbers = #tpu.dot_dimension_numbers<[1], [0], [0], [1], [0, 0, 1, 1], [], []>} : vector<64x8xf32>, vector<8x8xf32>, vector<64x8xf32> -> vector<64x8xf32>
    %54 = arith.addf %48, %53 : vector<64x8xf32>
    %55 = vector.extract_strided_slice %29 {offsets = [1, 1, 0], sizes = [8, 8, 8], strides = [1, 1, 1]} : vector<10x10x8xf32> to vector<8x8x8xf32>
    %56 = vector.shape_cast %55 : vector<8x8x8xf32> to vector<64x8xf32>
    %57 = vector.extract_strided_slice %2 {offsets = [4, 0, 0], sizes = [1, 8, 8], strides = [1, 1, 1]} : vector<9x8x8xf32> to vector<1x8x8xf32>
    %58 = vector.shape_cast %57 : vector<1x8x8xf32> to vector<8x8xf32>
    %cst_18 = arith.constant dense<0.000000e+00> : vector<64x8xf32>
    %59 = tpu.matmul %56, %58, %cst_18 {dimension_numbers = #tpu.dot_dimension_numbers<[1], [0], [0], [1], [0, 0, 1, 1], [], []>} : vector<64x8xf32>, vector<8x8xf32>, vector<64x8xf32> -> vector<64x8xf32>
    %60 = arith.addf %54, %59 : vector<64x8xf32>
    %61 = vector.extract_strided_slice %29 {offsets = [1, 2, 0], sizes = [8, 8, 8], strides = [1, 1, 1]} : vector<10x10x8xf32> to vector<8x8x8xf32>
    %62 = vector.shape_cast %61 : vector<8x8x8xf32> to vector<64x8xf32>
    %63 = vector.extract_strided_slice %2 {offsets = [5, 0, 0], sizes = [1, 8, 8], strides = [1, 1, 1]} : vector<9x8x8xf32> to vector<1x8x8xf32>
    %64 = vector.shape_cast %63 : vector<1x8x8xf32> to vector<8x8xf32>
    %cst_19 = arith.constant dense<0.000000e+00> : vector<64x8xf32>
    %65 = tpu.matmul %62, %64, %cst_19 {dimension_numbers = #tpu.dot_dimension_numbers<[1], [0], [0], [1], [0, 0, 1, 1], [], []>} : vector<64x8xf32>, vector<8x8xf32>, vector<64x8xf32> -> vector<64x8xf32>
    %66 = arith.addf %60, %65 : vector<64x8xf32>
    %67 = vector.extract_strided_slice %29 {offsets = [2, 0, 0], sizes = [8, 8, 8], strides = [1, 1, 1]} : vector<10x10x8xf32> to vector<8x8x8xf32>
    %68 = vector.shape_cast %67 : vector<8x8x8xf32> to vector<64x8xf32>
    %69 = vector.extract_strided_slice %2 {offsets = [6, 0, 0], sizes = [1, 8, 8], strides = [1, 1, 1]} : vector<9x8x8xf32> to vector<1x8x8xf32>
    %70 = vector.shape_cast %69 : vector<1x8x8xf32> to vector<8x8xf32>
    %cst_20 = arith.constant dense<0.000000e+00> : vector<64x8xf32>
    %71 = tpu.matmul %68, %70, %cst_20 {dimension_numbers = #tpu.dot_dimension_numbers<[1], [0], [0], [1], [0, 0, 1, 1], [], []>} : vector<64x8xf32>, vector<8x8xf32>, vector<64x8xf32> -> vector<64x8xf32>
    %72 = arith.addf %66, %71 : vector<64x8xf32>
    %73 = vector.extract_strided_slice %29 {offsets = [2, 1, 0], sizes = [8, 8, 8], strides = [1, 1, 1]} : vector<10x10x8xf32> to vector<8x8x8xf32>
    %74 = vector.shape_cast %73 : vector<8x8x8xf32> to vector<64x8xf32>
    %75 = vector.extract_strided_slice %2 {offsets = [7, 0, 0], sizes = [1, 8, 8], strides = [1, 1, 1]} : vector<9x8x8xf32> to vector<1x8x8xf32>
    %76 = vector.shape_cast %75 : vector<1x8x8xf32> to vector<8x8xf32>
    %cst_21 = arith.constant dense<0.000000e+00> : vector<64x8xf32>
    %77 = tpu.matmul %74, %76, %cst_21 {dimension_numbers = #tpu.dot_dimension_numbers<[1], [0], [0], [1], [0, 0, 1, 1], [], []>} : vector<64x8xf32>, vector<8x8xf32>, vector<64x8xf32> -> vector<64x8xf32>
    %78 = arith.addf %72, %77 : vector<64x8xf32>
    %79 = vector.extract_strided_slice %29 {offsets = [2, 2, 0], sizes = [8, 8, 8], strides = [1, 1, 1]} : vector<10x10x8xf32> to vector<8x8x8xf32>
    %80 = vector.shape_cast %79 : vector<8x8x8xf32> to vector<64x8xf32>
    %81 = vector.extract_strided_slice %2 {offsets = [8, 0, 0], sizes = [1, 8, 8], strides = [1, 1, 1]} : vector<9x8x8xf32> to vector<1x8x8xf32>
    %82 = vector.shape_cast %81 : vector<1x8x8xf32> to vector<8x8xf32>
    %cst_22 = arith.constant dense<0.000000e+00> : vector<64x8xf32>
    %83 = tpu.matmul %80, %82, %cst_22 {dimension_numbers = #tpu.dot_dimension_numbers<[1], [0], [0], [1], [0, 0, 1, 1], [], []>} : vector<64x8xf32>, vector<8x8xf32>, vector<64x8xf32> -> vector<64x8xf32>
    %84 = arith.addf %78, %83 : vector<64x8xf32>
    %c0_23 = arith.constant 0 : index
    %c0_24 = arith.constant 0 : index
    %85 = vector.load %arg5[%c0_23, %c0_24] : memref<1x8xf32, #tpu.memory_space<vmem>>, vector<1x8xf32>
    %86 = vector.broadcast %85 : vector<1x8xf32> to vector<64x8xf32>
    %87 = arith.addf %84, %86 : vector<64x8xf32>
    %88 = vector.shape_cast %87 : vector<64x8xf32> to vector<1x8x8x8xf32>
    %c0_25 = arith.constant 0 : index
    %c0_26 = arith.constant 0 : index
    %c0_27 = arith.constant 0 : index
    %c0_28 = arith.constant 0 : index
    %89 = vector.load %arg6[%c0_25, %c0_26, %c0_27, %c0_28] : memref<1x8x8x8xf32, #tpu.memory_space<vmem>>, vector<1x8x8x8xf32>
    tpu.vector_store %arg6[%c0_25, %c0_26, %c0_27, %c0_28], %88 {strides = array<i32>} : memref<1x8x8x8xf32, #tpu.memory_space<vmem>>, vector<1x8x8x8xf32>,
    return
  }
  func.func @transform_0(%arg0: i32) -> (i32, i32) {
    %c0_i32 = arith.constant 0 : i32
    %c0_i32_0 = arith.constant 0 : i32
    %c0_i32_1 = arith.constant 0 : i32
    return %c0_i32, %c0_i32_0 : i32, i32
  }
  func.func @transform_1(%arg0: i32) -> (i32, i32) {
    %c0_i32 = arith.constant 0 : i32
    %c0_i32_0 = arith.constant 0 : i32
    %c0_i32_1 = arith.constant 0 : i32
    return %c0_i32, %c0_i32_0 : i32, i32
  }
  func.func @transform_2(%arg0: i32) -> (i32, i32, i32, i32) {
    %c0_i32 = arith.constant 0 : i32
    %c0_i32_0 = arith.constant 0 : i32
    %c0_i32_1 = arith.constant 0 : i32
    %c0_i32_2 = arith.constant 0 : i32
    return %arg0, %c0_i32, %c0_i32_0, %c0_i32_1 : i32, i32, i32, i32
  }
  func.func @transform_3(%arg0: i32) -> (i32, i32, i32) {
    %c0_i32 = arith.constant 0 : i32
    %c0_i32_0 = arith.constant 0 : i32
    %c0_i32_1 = arith.constant 0 : i32
    %c0_i32_2 = arith.constant 0 : i32
    return %c0_i32, %c0_i32_0, %c0_i32_1 : i32, i32, i32
  }
  func.func @transform_4(%arg0: i32) -> (i32, i32) {
    %c0_i32 = arith.constant 0 : i32
    %c0_i32_0 = arith.constant 0 : i32
    %c0_i32_1 = arith.constant 0 : i32
    return %c0_i32, %c0_i32_0 : i32, i32
  }
  func.func @transform_5(%arg0: i32) -> (i32, i32, i32, i32) {
    %c0_i32 = arith.constant 0 : i32
    %c0_i32_0 = arith.constant 0 : i32
    %c0_i32_1 = arith.constant 0 : i32
    %c0_i32_2 = arith.constant 0 : i32
    return %arg0, %c0_i32, %c0_i32_0, %c0_i32_1 : i32, i32, i32, i32
  }
}

module attributes {stable_mosaic.version = 11 : i64} {
  func.func @kernel(%arg0: i32, %arg1: memref<1x4xf32, #tpu.memory_space<vmem>>, %arg2: memref<1x4xf32, #tpu.memory_space<vmem>>, %arg3: memref<1x16x16x4xf32, #tpu.memory_space<vmem>>, %arg4: memref<1x4x8xf32, #tpu.memory_space<vmem>>, %arg5: memref<1x8xf32, #tpu.memory_space<vmem>>, %arg6: memref<1x8x8x8xf32, #tpu.memory_space<vmem>>, %arg7: memref<1x8x8x8xf32, #tpu.memory_space<vmem>>) attributes {dimension_semantics = [#tpu.dimension_semantics<parallel>], iteration_bounds = array<i64: 2>, scalar_prefetch = 0 : i64, scratch_operands = 0 : i64, tpu.core_type = #tpu.core_type<tc>, window_params = [{pipeline_mode = #tpu.pipeline_mode<synchronous>, transform_indices = @transform_0, window_bounds = array<i64: 1, 4>}, {pipeline_mode = #tpu.pipeline_mode<synchronous>, transform_indices = @transform_1, window_bounds = array<i64: 1, 4>}, {transform_indices = @transform_2, window_bounds = array<i64: 1, 16, 16, 4>}, {pipeline_mode = #tpu.pipeline_mode<synchronous>, transform_indices = @transform_3, window_bounds = array<i64: 1, 4, 8>}, {pipeline_mode = #tpu.pipeline_mode<synchronous>, transform_indices = @transform_4, window_bounds = array<i64: 1, 8>}, {transform_indices = @transform_5, window_bounds = array<i64: 1, 8, 8, 8>}, {transform_indices = @transform_6, window_bounds = array<i64: 1, 8, 8, 8>}]} {
    %c0 = arith.constant 0 : index
    %c0_0 = arith.constant 0 : index
    %c0_1 = arith.constant 0 : index
    %c0_2 = arith.constant 0 : index
    %0 = vector.load %arg3[%c0, %c0_0, %c0_1, %c0_2] : memref<1x16x16x4xf32, #tpu.memory_space<vmem>>, vector<1x16x16x4xf32>
    %1 = vector.shape_cast %0 : vector<1x16x16x4xf32> to vector<16x16x4xf32>
    %c0_3 = arith.constant 0 : index
    %c0_4 = arith.constant 0 : index
    %c0_5 = arith.constant 0 : index
    %2 = vector.load %arg4[%c0_3, %c0_4, %c0_5] : memref<1x4x8xf32, #tpu.memory_space<vmem>>, vector<1x4x8xf32>
    %cst = arith.constant 0.000000e+00 : f32
    %3 = vector.broadcast %cst : f32 to vector<64x8xf32>
    %4 = vector.extract_strided_slice %1 {offsets = [0, 0, 0], sizes = [16, 16, 4], strides = [1, 1, 1]} : vector<16x16x4xf32> to vector<16x16x4xf32>
    %5 = vector.shape_cast %4 : vector<16x16x4xf32> to vector<8x2x8x2x4xf32>
    %6 = vector.extract_strided_slice %5 {offsets = [0, 0, 0, 0, 0], sizes = [8, 1, 8, 1, 4], strides = [1, 1, 1, 1, 1]} : vector<8x2x8x2x4xf32> to vector<8x1x8x1x4xf32>
    %7 = vector.shape_cast %6 : vector<8x1x8x1x4xf32> to vector<8x8x4xf32>
    %8 = vector.shape_cast %7 : vector<8x8x4xf32> to vector<64x4xf32>
    %9 = vector.shape_cast %2 : vector<1x4x8xf32> to vector<4x8xf32>
    %cst_6 = arith.constant dense<0.000000e+00> : vector<64x8xf32>
    %10 = tpu.matmul %8, %9, %cst_6 {dimension_numbers = #tpu.dot_dimension_numbers<[1], [0], [0], [1], [0, 0, 1, 1], [], []>} : vector<64x4xf32>, vector<4x8xf32>, vector<64x8xf32> -> vector<64x8xf32>
    %11 = arith.addf %3, %10 : vector<64x8xf32>
    %c0_7 = arith.constant 0 : index
    %c0_8 = arith.constant 0 : index
    %12 = vector.load %arg5[%c0_7, %c0_8] : memref<1x8xf32, #tpu.memory_space<vmem>>, vector<1x8xf32>
    %13 = vector.broadcast %12 : vector<1x8xf32> to vector<64x8xf32>
    %14 = arith.addf %11, %13 : vector<64x8xf32>
    %c0_9 = arith.constant 0 : index
    %c0_10 = arith.constant 0 : index
    %c0_11 = arith.constant 0 : index
    %c0_12 = arith.constant 0 : index
    %15 = vector.load %arg6[%c0_9, %c0_10, %c0_11, %c0_12] : memref<1x8x8x8xf32, #tpu.memory_space<vmem>>, vector<1x8x8x8xf32>
    %16 = vector.shape_cast %15 : vector<1x8x8x8xf32> to vector<64x8xf32>
    %17 = arith.addf %14, %16 : vector<64x8xf32>
    %18 = vector.shape_cast %17 : vector<64x8xf32> to vector<1x8x8x8xf32>
    %c0_13 = arith.constant 0 : index
    %c0_14 = arith.constant 0 : index
    %c0_15 = arith.constant 0 : index
    %c0_16 = arith.constant 0 : index
    %19 = vector.load %arg7[%c0_13, %c0_14, %c0_15, %c0_16] : memref<1x8x8x8xf32, #tpu.memory_space<vmem>>, vector<1x8x8x8xf32>
    tpu.vector_store %arg7[%c0_13, %c0_14, %c0_15, %c0_16], %18 {strides = array<i32>} : memref<1x8x8x8xf32, #tpu.memory_space<vmem>>, vector<1x8x8x8xf32>,
    return
  }
  func.func @transform_0(%arg0: i32) -> (i32, i32) {
    %c0_i32 = arith.constant 0 : i32
    %c0_i32_0 = arith.constant 0 : i32
    %c0_i32_1 = arith.constant 0 : i32
    return %c0_i32, %c0_i32_0 : i32, i32
  }
  func.func @transform_1(%arg0: i32) -> (i32, i32) {
    %c0_i32 = arith.constant 0 : i32
    %c0_i32_0 = arith.constant 0 : i32
    %c0_i32_1 = arith.constant 0 : i32
    return %c0_i32, %c0_i32_0 : i32, i32
  }
  func.func @transform_2(%arg0: i32) -> (i32, i32, i32, i32) {
    %c0_i32 = arith.constant 0 : i32
    %c0_i32_0 = arith.constant 0 : i32
    %c0_i32_1 = arith.constant 0 : i32
    %c0_i32_2 = arith.constant 0 : i32
    return %arg0, %c0_i32, %c0_i32_0, %c0_i32_1 : i32, i32, i32, i32
  }
  func.func @transform_3(%arg0: i32) -> (i32, i32, i32) {
    %c0_i32 = arith.constant 0 : i32
    %c0_i32_0 = arith.constant 0 : i32
    %c0_i32_1 = arith.constant 0 : i32
    %c0_i32_2 = arith.constant 0 : i32
    return %c0_i32, %c0_i32_0, %c0_i32_1 : i32, i32, i32
  }
  func.func @transform_4(%arg0: i32) -> (i32, i32) {
    %c0_i32 = arith.constant 0 : i32
    %c0_i32_0 = arith.constant 0 : i32
    %c0_i32_1 = arith.constant 0 : i32
    return %c0_i32, %c0_i32_0 : i32, i32
  }
  func.func @transform_5(%arg0: i32) -> (i32, i32, i32, i32) {
    %c0_i32 = arith.constant 0 : i32
    %c0_i32_0 = arith.constant 0 : i32
    %c0_i32_1 = arith.constant 0 : i32
    %c0_i32_2 = arith.constant 0 : i32
    return %arg0, %c0_i32, %c0_i32_0, %c0_i32_1 : i32, i32, i32, i32
  }
  func.func @transform_6(%arg0: i32) -> (i32, i32, i32, i32) {
    %c0_i32 = arith.constant 0 : i32
    %c0_i32_0 = arith.constant 0 : i32
    %c0_i32_1 = arith.constant 0 : i32
    %c0_i32_2 = arith.constant 0 : i32
    return %arg0, %c0_i32, %c0_i32_0, %c0_i32_1 : i32, i32, i32, i32
  }
}

module attributes {stable_mosaic.version = 11 : i64} {
  func.func @kernel(%arg0: i32, %arg1: memref<1x8xf32, #tpu.memory_space<vmem>>, %arg2: memref<1x8xf32, #tpu.memory_space<vmem>>, %arg3: memref<1x10x10x8xf32, #tpu.memory_space<vmem>>, %arg4: memref<9x8x8xf32, #tpu.memory_space<vmem>>, %arg5: memref<1x8xf32, #tpu.memory_space<vmem>>, %arg6: memref<1x8x8x8xf32, #tpu.memory_space<vmem>>, %arg7: memref<1x8x8x8xf32, #tpu.memory_space<vmem>>) attributes {dimension_semantics = [#tpu.dimension_semantics<parallel>], iteration_bounds = array<i64: 2>, scalar_prefetch = 0 : i64, scratch_operands = 0 : i64, tpu.core_type = #tpu.core_type<tc>, window_params = [{pipeline_mode = #tpu.pipeline_mode<synchronous>, transform_indices = @transform_0, window_bounds = array<i64: 1, 8>}, {pipeline_mode = #tpu.pipeline_mode<synchronous>, transform_indices = @transform_1, window_bounds = array<i64: 1, 8>}, {transform_indices = @transform_2, window_bounds = array<i64: 1, 10, 10, 8>}, {pipeline_mode = #tpu.pipeline_mode<synchronous>, transform_indices = @transform_3, window_bounds = array<i64: 9, 8, 8>}, {pipeline_mode = #tpu.pipeline_mode<synchronous>, transform_indices = @transform_4, window_bounds = array<i64: 1, 8>}, {transform_indices = @transform_5, window_bounds = array<i64: 1, 8, 8, 8>}, {transform_indices = @transform_6, window_bounds = array<i64: 1, 8, 8, 8>}]} {
    %c0 = arith.constant 0 : index
    %c0_0 = arith.constant 0 : index
    %c0_1 = arith.constant 0 : index
    %c0_2 = arith.constant 0 : index
    %0 = vector.load %arg3[%c0, %c0_0, %c0_1, %c0_2] : memref<1x10x10x8xf32, #tpu.memory_space<vmem>>, vector<1x10x10x8xf32>
    %1 = vector.shape_cast %0 : vector<1x10x10x8xf32> to vector<10x10x8xf32>
    %c0_3 = arith.constant 0 : index
    %c0_4 = arith.constant 0 : index
    %c0_5 = arith.constant 0 : index
    %2 = vector.load %arg4[%c0_3, %c0_4, %c0_5] : memref<9x8x8xf32, #tpu.memory_space<vmem>>, vector<9x8x8xf32>
    %c0_6 = arith.constant 0 : index
    %c0_7 = arith.constant 0 : index
    %3 = vector.load %arg1[%c0_6, %c0_7] : memref<1x8xf32, #tpu.memory_space<vmem>>, vector<1x8xf32>
    %4 = vector.shape_cast %3 : vector<1x8xf32> to vector<1x1x8xf32>
    %5 = vector.broadcast %4 : vector<1x1x8xf32> to vector<10x10x8xf32>
    %6 = arith.mulf %1, %5 : vector<10x10x8xf32>
    %c0_8 = arith.constant 0 : index
    %c0_9 = arith.constant 0 : index
    %7 = vector.load %arg2[%c0_8, %c0_9] : memref<1x8xf32, #tpu.memory_space<vmem>>, vector<1x8xf32>
    %8 = vector.shape_cast %7 : vector<1x8xf32> to vector<1x1x8xf32>
    %9 = vector.broadcast %8 : vector<1x1x8xf32> to vector<10x10x8xf32>
    %10 = arith.addf %6, %9 : vector<10x10x8xf32>
    %cst = arith.constant 0.000000e+00 : f32
    %11 = vector.broadcast %cst : f32 to vector<10x10x8xf32>
    %12 = arith.maximumf %10, %11 : vector<10x10x8xf32>
    %13 = tpu.iota {dimensions = array<i32: 0>} : vector<10x10x1xi32>
    %14 = tpu.iota {dimensions = array<i32: 1>} : vector<10x10x1xi32>
    %c1_i32 = arith.constant 1 : i32
    %15 = vector.broadcast %c1_i32 : i32 to vector<10x10x1xi32>
    %16 = arith.cmpi sge, %13, %15 : vector<10x10x1xi32>
    %c9_i32 = arith.constant 9 : i32
    %17 = vector.broadcast %c9_i32 : i32 to vector<10x10x1xi32>
    %18 = arith.cmpi slt, %13, %17 : vector<10x10x1xi32>
    %19 = arith.andi %16, %18 : vector<10x10x1xi1>
    %c1_i32_10 = arith.constant 1 : i32
    %20 = vector.broadcast %c1_i32_10 : i32 to vector<10x10x1xi32>
    %21 = arith.cmpi sge, %14, %20 : vector<10x10x1xi32>
    %22 = arith.andi %19, %21 : vector<10x10x1xi1>
    %c9_i32_11 = arith.constant 9 : i32
    %23 = vector.broadcast %c9_i32_11 : i32 to vector<10x10x1xi32>
    %24 = arith.cmpi slt, %14, %23 : vector<10x10x1xi32>
    %25 = arith.andi %22, %24 : vector<10x10x1xi1>
    %cst_12 = arith.constant 0.000000e+00 : f32
    %26 = vector.shape_cast %25 : vector<10x10x1xi1> to vector<10x10x1xi1>
    %27 = vector.broadcast %26 : vector<10x10x1xi1> to vector<10x10x8xi1>
    %28 = vector.broadcast %cst_12 : f32 to vector<10x10x8xf32>
    %29 = arith.select %27, %12, %28 : vector<10x10x8xi1>, vector<10x10x8xf32>
    %cst_13 = arith.constant 0.000000e+00 : f32
    %30 = vector.broadcast %cst_13 : f32 to vector<64x8xf32>
    %31 = vector.extract_strided_slice %29 {offsets = [0, 0, 0], sizes = [8, 8, 8], strides = [1, 1, 1]} : vector<10x10x8xf32> to vector<8x8x8xf32>
    %32 = vector.shape_cast %31 : vector<8x8x8xf32> to vector<64x8xf32>
    %33 = vector.extract_strided_slice %2 {offsets = [0, 0, 0], sizes = [1, 8, 8], strides = [1, 1, 1]} : vector<9x8x8xf32> to vector<1x8x8xf32>
    %34 = vector.shape_cast %33 : vector<1x8x8xf32> to vector<8x8xf32>
    %cst_14 = arith.constant dense<0.000000e+00> : vector<64x8xf32>
    %35 = tpu.matmul %32, %34, %cst_14 {dimension_numbers = #tpu.dot_dimension_numbers<[1], [0], [0], [1], [0, 0, 1, 1], [], []>} : vector<64x8xf32>, vector<8x8xf32>, vector<64x8xf32> -> vector<64x8xf32>
    %36 = arith.addf %30, %35 : vector<64x8xf32>
    %37 = vector.extract_strided_slice %29 {offsets = [0, 1, 0], sizes = [8, 8, 8], strides = [1, 1, 1]} : vector<10x10x8xf32> to vector<8x8x8xf32>
    %38 = vector.shape_cast %37 : vector<8x8x8xf32> to vector<64x8xf32>
    %39 = vector.extract_strided_slice %2 {offsets = [1, 0, 0], sizes = [1, 8, 8], strides = [1, 1, 1]} : vector<9x8x8xf32> to vector<1x8x8xf32>
    %40 = vector.shape_cast %39 : vector<1x8x8xf32> to vector<8x8xf32>
    %cst_15 = arith.constant dense<0.000000e+00> : vector<64x8xf32>
    %41 = tpu.matmul %38, %40, %cst_15 {dimension_numbers = #tpu.dot_dimension_numbers<[1], [0], [0], [1], [0, 0, 1, 1], [], []>} : vector<64x8xf32>, vector<8x8xf32>, vector<64x8xf32> -> vector<64x8xf32>
    %42 = arith.addf %36, %41 : vector<64x8xf32>
    %43 = vector.extract_strided_slice %29 {offsets = [0, 2, 0], sizes = [8, 8, 8], strides = [1, 1, 1]} : vector<10x10x8xf32> to vector<8x8x8xf32>
    %44 = vector.shape_cast %43 : vector<8x8x8xf32> to vector<64x8xf32>
    %45 = vector.extract_strided_slice %2 {offsets = [2, 0, 0], sizes = [1, 8, 8], strides = [1, 1, 1]} : vector<9x8x8xf32> to vector<1x8x8xf32>
    %46 = vector.shape_cast %45 : vector<1x8x8xf32> to vector<8x8xf32>
    %cst_16 = arith.constant dense<0.000000e+00> : vector<64x8xf32>
    %47 = tpu.matmul %44, %46, %cst_16 {dimension_numbers = #tpu.dot_dimension_numbers<[1], [0], [0], [1], [0, 0, 1, 1], [], []>} : vector<64x8xf32>, vector<8x8xf32>, vector<64x8xf32> -> vector<64x8xf32>
    %48 = arith.addf %42, %47 : vector<64x8xf32>
    %49 = vector.extract_strided_slice %29 {offsets = [1, 0, 0], sizes = [8, 8, 8], strides = [1, 1, 1]} : vector<10x10x8xf32> to vector<8x8x8xf32>
    %50 = vector.shape_cast %49 : vector<8x8x8xf32> to vector<64x8xf32>
    %51 = vector.extract_strided_slice %2 {offsets = [3, 0, 0], sizes = [1, 8, 8], strides = [1, 1, 1]} : vector<9x8x8xf32> to vector<1x8x8xf32>
    %52 = vector.shape_cast %51 : vector<1x8x8xf32> to vector<8x8xf32>
    %cst_17 = arith.constant dense<0.000000e+00> : vector<64x8xf32>
    %53 = tpu.matmul %50, %52, %cst_17 {dimension_numbers = #tpu.dot_dimension_numbers<[1], [0], [0], [1], [0, 0, 1, 1], [], []>} : vector<64x8xf32>, vector<8x8xf32>, vector<64x8xf32> -> vector<64x8xf32>
    %54 = arith.addf %48, %53 : vector<64x8xf32>
    %55 = vector.extract_strided_slice %29 {offsets = [1, 1, 0], sizes = [8, 8, 8], strides = [1, 1, 1]} : vector<10x10x8xf32> to vector<8x8x8xf32>
    %56 = vector.shape_cast %55 : vector<8x8x8xf32> to vector<64x8xf32>
    %57 = vector.extract_strided_slice %2 {offsets = [4, 0, 0], sizes = [1, 8, 8], strides = [1, 1, 1]} : vector<9x8x8xf32> to vector<1x8x8xf32>
    %58 = vector.shape_cast %57 : vector<1x8x8xf32> to vector<8x8xf32>
    %cst_18 = arith.constant dense<0.000000e+00> : vector<64x8xf32>
    %59 = tpu.matmul %56, %58, %cst_18 {dimension_numbers = #tpu.dot_dimension_numbers<[1], [0], [0], [1], [0, 0, 1, 1], [], []>} : vector<64x8xf32>, vector<8x8xf32>, vector<64x8xf32> -> vector<64x8xf32>
    %60 = arith.addf %54, %59 : vector<64x8xf32>
    %61 = vector.extract_strided_slice %29 {offsets = [1, 2, 0], sizes = [8, 8, 8], strides = [1, 1, 1]} : vector<10x10x8xf32> to vector<8x8x8xf32>
    %62 = vector.shape_cast %61 : vector<8x8x8xf32> to vector<64x8xf32>
    %63 = vector.extract_strided_slice %2 {offsets = [5, 0, 0], sizes = [1, 8, 8], strides = [1, 1, 1]} : vector<9x8x8xf32> to vector<1x8x8xf32>
    %64 = vector.shape_cast %63 : vector<1x8x8xf32> to vector<8x8xf32>
    %cst_19 = arith.constant dense<0.000000e+00> : vector<64x8xf32>
    %65 = tpu.matmul %62, %64, %cst_19 {dimension_numbers = #tpu.dot_dimension_numbers<[1], [0], [0], [1], [0, 0, 1, 1], [], []>} : vector<64x8xf32>, vector<8x8xf32>, vector<64x8xf32> -> vector<64x8xf32>
    %66 = arith.addf %60, %65 : vector<64x8xf32>
    %67 = vector.extract_strided_slice %29 {offsets = [2, 0, 0], sizes = [8, 8, 8], strides = [1, 1, 1]} : vector<10x10x8xf32> to vector<8x8x8xf32>
    %68 = vector.shape_cast %67 : vector<8x8x8xf32> to vector<64x8xf32>
    %69 = vector.extract_strided_slice %2 {offsets = [6, 0, 0], sizes = [1, 8, 8], strides = [1, 1, 1]} : vector<9x8x8xf32> to vector<1x8x8xf32>
    %70 = vector.shape_cast %69 : vector<1x8x8xf32> to vector<8x8xf32>
    %cst_20 = arith.constant dense<0.000000e+00> : vector<64x8xf32>
    %71 = tpu.matmul %68, %70, %cst_20 {dimension_numbers = #tpu.dot_dimension_numbers<[1], [0], [0], [1], [0, 0, 1, 1], [], []>} : vector<64x8xf32>, vector<8x8xf32>, vector<64x8xf32> -> vector<64x8xf32>
    %72 = arith.addf %66, %71 : vector<64x8xf32>
    %73 = vector.extract_strided_slice %29 {offsets = [2, 1, 0], sizes = [8, 8, 8], strides = [1, 1, 1]} : vector<10x10x8xf32> to vector<8x8x8xf32>
    %74 = vector.shape_cast %73 : vector<8x8x8xf32> to vector<64x8xf32>
    %75 = vector.extract_strided_slice %2 {offsets = [7, 0, 0], sizes = [1, 8, 8], strides = [1, 1, 1]} : vector<9x8x8xf32> to vector<1x8x8xf32>
    %76 = vector.shape_cast %75 : vector<1x8x8xf32> to vector<8x8xf32>
    %cst_21 = arith.constant dense<0.000000e+00> : vector<64x8xf32>
    %77 = tpu.matmul %74, %76, %cst_21 {dimension_numbers = #tpu.dot_dimension_numbers<[1], [0], [0], [1], [0, 0, 1, 1], [], []>} : vector<64x8xf32>, vector<8x8xf32>, vector<64x8xf32> -> vector<64x8xf32>
    %78 = arith.addf %72, %77 : vector<64x8xf32>
    %79 = vector.extract_strided_slice %29 {offsets = [2, 2, 0], sizes = [8, 8, 8], strides = [1, 1, 1]} : vector<10x10x8xf32> to vector<8x8x8xf32>
    %80 = vector.shape_cast %79 : vector<8x8x8xf32> to vector<64x8xf32>
    %81 = vector.extract_strided_slice %2 {offsets = [8, 0, 0], sizes = [1, 8, 8], strides = [1, 1, 1]} : vector<9x8x8xf32> to vector<1x8x8xf32>
    %82 = vector.shape_cast %81 : vector<1x8x8xf32> to vector<8x8xf32>
    %cst_22 = arith.constant dense<0.000000e+00> : vector<64x8xf32>
    %83 = tpu.matmul %80, %82, %cst_22 {dimension_numbers = #tpu.dot_dimension_numbers<[1], [0], [0], [1], [0, 0, 1, 1], [], []>} : vector<64x8xf32>, vector<8x8xf32>, vector<64x8xf32> -> vector<64x8xf32>
    %84 = arith.addf %78, %83 : vector<64x8xf32>
    %c0_23 = arith.constant 0 : index
    %c0_24 = arith.constant 0 : index
    %85 = vector.load %arg5[%c0_23, %c0_24] : memref<1x8xf32, #tpu.memory_space<vmem>>, vector<1x8xf32>
    %86 = vector.broadcast %85 : vector<1x8xf32> to vector<64x8xf32>
    %87 = arith.addf %84, %86 : vector<64x8xf32>
    %c0_25 = arith.constant 0 : index
    %c0_26 = arith.constant 0 : index
    %c0_27 = arith.constant 0 : index
    %c0_28 = arith.constant 0 : index
    %88 = vector.load %arg6[%c0_25, %c0_26, %c0_27, %c0_28] : memref<1x8x8x8xf32, #tpu.memory_space<vmem>>, vector<1x8x8x8xf32>
    %89 = vector.shape_cast %88 : vector<1x8x8x8xf32> to vector<64x8xf32>
    %90 = arith.addf %87, %89 : vector<64x8xf32>
    %91 = vector.shape_cast %90 : vector<64x8xf32> to vector<1x8x8x8xf32>
    %c0_29 = arith.constant 0 : index
    %c0_30 = arith.constant 0 : index
    %c0_31 = arith.constant 0 : index
    %c0_32 = arith.constant 0 : index
    %92 = vector.load %arg7[%c0_29, %c0_30, %c0_31, %c0_32] : memref<1x8x8x8xf32, #tpu.memory_space<vmem>>, vector<1x8x8x8xf32>
    tpu.vector_store %arg7[%c0_29, %c0_30, %c0_31, %c0_32], %91 {strides = array<i32>} : memref<1x8x8x8xf32, #tpu.memory_space<vmem>>, vector<1x8x8x8xf32>,
    return
  }
  func.func @transform_0(%arg0: i32) -> (i32, i32) {
    %c0_i32 = arith.constant 0 : i32
    %c0_i32_0 = arith.constant 0 : i32
    %c0_i32_1 = arith.constant 0 : i32
    return %c0_i32, %c0_i32_0 : i32, i32
  }
  func.func @transform_1(%arg0: i32) -> (i32, i32) {
    %c0_i32 = arith.constant 0 : i32
    %c0_i32_0 = arith.constant 0 : i32
    %c0_i32_1 = arith.constant 0 : i32
    return %c0_i32, %c0_i32_0 : i32, i32
  }
  func.func @transform_2(%arg0: i32) -> (i32, i32, i32, i32) {
    %c0_i32 = arith.constant 0 : i32
    %c0_i32_0 = arith.constant 0 : i32
    %c0_i32_1 = arith.constant 0 : i32
    %c0_i32_2 = arith.constant 0 : i32
    return %arg0, %c0_i32, %c0_i32_0, %c0_i32_1 : i32, i32, i32, i32
  }
  func.func @transform_3(%arg0: i32) -> (i32, i32, i32) {
    %c0_i32 = arith.constant 0 : i32
    %c0_i32_0 = arith.constant 0 : i32
    %c0_i32_1 = arith.constant 0 : i32
    %c0_i32_2 = arith.constant 0 : i32
    return %c0_i32, %c0_i32_0, %c0_i32_1 : i32, i32, i32
  }
  func.func @transform_4(%arg0: i32) -> (i32, i32) {
    %c0_i32 = arith.constant 0 : i32
    %c0_i32_0 = arith.constant 0 : i32
    %c0_i32_1 = arith.constant 0 : i32
    return %c0_i32, %c0_i32_0 : i32, i32
  }
  func.func @transform_5(%arg0: i32) -> (i32, i32, i32, i32) {
    %c0_i32 = arith.constant 0 : i32
    %c0_i32_0 = arith.constant 0 : i32
    %c0_i32_1 = arith.constant 0 : i32
    %c0_i32_2 = arith.constant 0 : i32
    return %arg0, %c0_i32, %c0_i32_0, %c0_i32_1 : i32, i32, i32, i32
  }
  func.func @transform_6(%arg0: i32) -> (i32, i32, i32, i32) {
    %c0_i32 = arith.constant 0 : i32
    %c0_i32_0 = arith.constant 0 : i32
    %c0_i32_1 = arith.constant 0 : i32
    %c0_i32_2 = arith.constant 0 : i32
    return %arg0, %c0_i32, %c0_i32_0, %c0_i32_1 : i32, i32, i32, i32
  }
}

</mosaic_0001>

<bundles_post_ra>
// kernel: _lambda_.11
= control target key start
LH: loop header
LB: loop body
LE: loop exit
PB: predicated region body
PF: predicated region fallthrough
CT: control target
= control target key end

     0   :  { %vm14_vm0 = vcmask 57344   ;;  %vm34_vm1 = vcmask 64512   ;;  %v140_v0 = vmov 0.0   ;;  %s258_s0 = inlined_call_operand.vmem [shape: f32[128,8], index: 0, kind: input, shape index: {}]   ;;  %s259_s1 = inlined_call_operand.vmem [shape: f32[1,8], index: 1, kind: output, shape index: {0}]   ;;  %s260_s2 = inlined_call_operand.vmem [shape: f32[1,8], index: 2, kind: output, shape index: {1}]  }
   0x1   :  { %15 = vst.msk [vmem:[%s259_s1] sm:$0x1] %vm14_vm0, %v140_v0  ;;  %v17_v1 = vld [vmem:[%s258_s0] sm:$0xff]  ;;  %v18_v2 = vld [vmem:[%s258_s0 + $0x8] sm:$0xff]  ;;  %v19_v3 = vld [vmem:[%s258_s0 + $0x10] sm:$0xff] }
   0x2   :  { %16 = vst.msk [vmem:[%s260_s2] sm:$0x1] %vm14_vm0, %v140_v0  ;;  %v35_v4 = vsel %vm34_vm1, %v17_v1, 0.0  ;;  %v36_v5 = vsel %vm34_vm1, %v18_v2, 0.0  ;;  %v38_v6 = vsel %vm34_vm1, %v19_v3, 0.0  ;;  %v20_v7 = vld [vmem:[%s258_s0 + $0x18] sm:$0xff]  ;;  %v76_v15 = vmul.f32 %v17_v1, %v17_v1 }
   0x3   :  { %v37_v8 = vadd.f32 %v36_v5, %v35_v4  ;;  %v40_v9 = vsel %vm34_vm1, %v20_v7, 0.0  ;;  %v21_v10 = vld [vmem:[%s258_s0 + $0x20] sm:$0xff]  ;;  %v22_v13 = vld [vmem:[%s258_s0 + $0x28] sm:$0xff]  ;;  %v77_v16 = vmul.f32 %v18_v2, %v18_v2  ;;  %v78_v17 = vmul.f32 %v19_v3, %v19_v3  ;;  %v23_v19 = vld [vmem:[%s258_s0 + $0x30] sm:$0xff] }
   0x4   :  { %v42_v12 = vsel %vm34_vm1, %v21_v10, 0.0  ;;  %v44_v18 = vsel %vm34_vm1, %v22_v13, 0.0  ;;  %v79_v21 = vmul.f32 %v20_v7, %v20_v7  ;;  %v46_v22 = vsel %vm34_vm1, %v23_v19, 0.0  ;;  %v24_v24 = vld [vmem:[%s258_s0 + $0x38] sm:$0xff]  ;;  %v25_v31 = vld [vmem:[%s258_s0 + $0x40] sm:$0xff]  ;;  %v26_v37 = vld [vmem:[%s258_s0 + $0x48] sm:$0xff] }
   0x5   :  { %v39_v11 = vadd.f32 %v38_v6, %v37_v8  ;;  %v80_v23 = vmul.f32 %v21_v10, %v21_v10  ;;  %v92_v26 = vsel %vm34_vm1, %v76_v15, 0.0  ;;  %v93_v27 = vsel %vm34_vm1, %v77_v16, 0.0  ;;  %v27_v43 = vld [vmem:[%s258_s0 + $0x50] sm:$0xff]  ;;  %v28_v49 = vld [vmem:[%s258_s0 + $0x58] sm:$0xff]  ;;  %v29_v55 = vld [vmem:[%s258_s0 + $0x60] sm:$0xff] }
   0x6   :  { %v95_v28 = vsel %vm34_vm1, %v78_v17, 0.0  ;;  %v48_v29 = vsel %vm34_vm1, %v24_v24, 0.0  ;;  %v94_v30 = vadd.f32 %v93_v27, %v92_v26  ;;  %v81_v33 = vmul.f32 %v22_v13, %v22_v13  ;;  %v30_v61 = vld [vmem:[%s258_s0 + $0x68] sm:$0xff]  ;;  %v31_v3 = vld [vmem:[%s258_s0 + $0x70] sm:$0xff] }
   0x7   :  { %v41_v14 = vadd.f32 %v40_v9, %v39_v11  ;;  %v97_v34 = vsel %vm34_vm1, %v79_v21, 0.0  ;;  %v50_v35 = vsel %vm34_vm1, %v25_v31, 0.0  ;;  %v82_v39 = vmul.f32 %v23_v19, %v23_v19  ;;  %v32_v9 = vld [vmem:[%s258_s0 + $0x78] sm:$0xff] }
   0x8   :  { %v96_v36 = vadd.f32 %v95_v28, %v94_v30  ;;  %v99_v40 = vsel %vm34_vm1, %v80_v23, 0.0  ;;  %v52_v41 = vsel %vm34_vm1, %v26_v37, 0.0  ;;  %v83_v45 = vmul.f32 %v24_v24, %v24_v24 }
   0x9   :  { %v43_v20 = vadd.f32 %v42_v12, %v41_v14  ;;  %v101_v46 = vsel %vm34_vm1, %v81_v33, 0.0  ;;  %v54_v47 = vsel %vm34_vm1, %v27_v43, 0.0  ;;  %v84_v51 = vmul.f32 %v25_v31, %v25_v31 }
   0xa   :  { %v98_v42 = vadd.f32 %v97_v34, %v96_v36  ;;  %v103_v52 = vsel %vm34_vm1, %v82_v39, 0.0  ;;  %v56_v53 = vsel %vm34_vm1, %v28_v49, 0.0  ;;  %v85_v57 = vmul.f32 %v26_v37, %v26_v37  ;;  %v33_v36 = vld [vmem:[%s259_s1] sm:$0x1] }
   0xb   :  { %v45_v25 = vadd.f32 %v44_v18, %v43_v20  ;;  %v105_v58 = vsel %vm34_vm1, %v83_v45, 0.0  ;;  %v58_v59 = vsel %vm34_vm1, %v29_v55, 0.0  ;;  %v86_v63 = vmul.f32 %v27_v43, %v27_v43 }
   0xc   :  { %v100_v48 = vadd.f32 %v99_v40, %v98_v42  ;;  %v107_v0 = vsel %vm34_vm1, %v84_v51, 0.0  ;;  %v60_v1 = vsel %vm34_vm1, %v30_v61, 0.0  ;;  %v87_v5 = vmul.f32 %v28_v49, %v28_v49 }
   0xd   :  { %v47_v32 = vadd.f32 %v46_v22, %v45_v25  ;;  %v109_v6 = vsel %vm34_vm1, %v85_v57, 0.0  ;;  %v62_v7 = vsel %vm34_vm1, %v31_v3, 0.0  ;;  %v88_v11 = vmul.f32 %v29_v55, %v29_v55 }
   0xe   :  { %v102_v54 = vadd.f32 %v101_v46, %v100_v48  ;;  %v111_v12 = vsel %vm34_vm1, %v86_v63, 0.0  ;;  %v64_v13 = vsel %vm34_vm1, %v32_v9, 0.0  ;;  %v89_v16 = vmul.f32 %v30_v61, %v30_v61 }
   0xf   :  { %v49_v38 = vadd.f32 %v48_v29, %v47_v32  ;;  %v113_v17 = vsel %vm34_vm1, %v87_v5, 0.0  ;;  %v90_v20 = vmul.f32 %v31_v3, %v31_v3  ;;  %v115_v21 = vsel %vm34_vm1, %v88_v11, 0.0 }
  0x10   :  { %v104_v60 = vadd.f32 %v103_v52, %v102_v54  ;;  %v91_v24 = vmul.f32 %v32_v9, %v32_v9  ;;  %v117_v25 = vsel %vm34_vm1, %v89_v16, 0.0 }
  0x11   :  { %v51_v44 = vadd.f32 %v50_v35, %v49_v38  ;;  %v119_v28 = vsel %vm34_vm1, %v90_v20, 0.0 }
  0x12   :  { %v106_v2 = vadd.f32 %v105_v58, %v104_v60  ;;  %v121_v31 = vsel %vm34_vm1, %v91_v24, 0.0 }
  0x13   :  { %v53_v50 = vadd.f32 %v52_v41, %v51_v44  ;;  %v75_v44 = vld [vmem:[%s260_s2] sm:$0x1] }
  0x14   :  { %v108_v8 = vadd.f32 %v107_v0, %v106_v2 }
  0x15   :  { %v55_v56 = vadd.f32 %v54_v47, %v53_v50 }
  0x16   :  { %v110_v14 = vadd.f32 %v109_v6, %v108_v8 }
  0x17   :  { %v57_v62 = vadd.f32 %v56_v53, %v55_v56 }
  0x18   :  { %v112_v18 = vadd.f32 %v111_v12, %v110_v14 }
  0x19   :  { %v59_v4 = vadd.f32 %v58_v59, %v57_v62 }
  0x1a   :  { %v114_v22 = vadd.f32 %v113_v17, %v112_v18 }
  0x1b   :  { %v61_v10 = vadd.f32 %v60_v1, %v59_v4 }
  0x1c   :  { %v116_v26 = vadd.f32 %v115_v21, %v114_v22 }
  0x1d   :  { %v63_v15 = vadd.f32 %v62_v7, %v61_v10 }
  0x1e   :  { %v118_v29 = vadd.f32 %v117_v25, %v116_v26 }
  0x1f   :  { %v65_v19 = vadd.f32 %v64_v13, %v63_v15 }
  0x20   :  { %v120_v32 = vadd.f32 %v119_v28, %v118_v29 }
  0x21   :  { %v66_v23 = vrot.slane %v65_v19, 4 }
  0x22   :  { %v122_v34 = vadd.f32 %v121_v31, %v120_v32 }
  0x23   :  { %v67_v27 = vadd.f32 %v66_v23, %v65_v19 }
  0x24   :  { %v123_v37 = vrot.slane %v122_v34, 4 }
  0x25   :  { %v68_v30 = vrot.slane %v67_v27, 2 }
  0x26   :  { %v124_v39 = vadd.f32 %v123_v37, %v122_v34 }
  0x27   :  { %v69_v33 = vadd.f32 %v68_v30, %v67_v27 }
  0x28   :  { %v125_v41 = vrot.slane %v124_v39, 2 }
  0x29   :  { %v70_v35 = vrot.slane %v69_v33, 1 }
  0x2a   :  { %v126_v42 = vadd.f32 %v125_v41, %v124_v39 }
  0x2b   :  { %v71_v38 = vadd.f32 %v70_v35, %v69_v33 }
  0x2c   :  { %v127_v43 = vrot.slane %v126_v42, 1 }
  0x2d   :  { %v72_v40 = vadd.f32 %v71_v38, %v33_v36 }
  0x2e   :  { %v128_v45 = vadd.f32 %v127_v43, %v126_v42 }
  0x2f   :  { %74 = vst.msk [vmem:[%s259_s1] sm:$0x1] %vm14_vm0, %v72_v40 }
  0x30   :  { %v129_v46 = vadd.f32 %v128_v45, %v75_v44 }
  0x32   :  { %130 = vst.msk [vmem:[%s260_s2] sm:$0x1] %vm14_vm0, %v129_v46 }

// kernel: _lambda_.9
= control target key start
LH: loop header
LB: loop body
LE: loop exit
PB: predicated region body
PF: predicated region fallthrough
CT: control target
= control target key end

     0   :  { %vm14_vm0 = vcmask 24576   ;;  %vm82_vm1 = vcmask 31744   ;;  %v428_v0 = vmov 0.0   ;;  %s1318_s0 = inlined_call_operand.vmem [shape: f32[512,4], index: 0, kind: input, shape index: {}]   ;;  %s1319_s1 = inlined_call_operand.vmem [shape: f32[1,4], index: 1, kind: output, shape index: {0}]   ;;  %s1320_s2 = inlined_call_operand.vmem [shape: f32[1,4], index: 2, kind: output, shape index: {1}]  }
   0x1   :  { %15 = vst.msk [vmem:[%s1319_s1] sm:$0x1] %vm14_vm0, %v428_v0  ;;  %16 = vst.msk [vmem:[%s1320_s2] sm:$0x1] %vm14_vm0, %v428_v0  ;;  %v455_v1 = vld [vmem:[%s1318_s0] sm:$0xff]  ;;  %v460_v2 = vld [vmem:[%s1318_s0 + $0x8] sm:$0xff] }
   0x2   :  { %v465_v3 = vld [vmem:[%s1318_s0 + $0x10] sm:$0xff]  ;;  %v83_v4 = vsel %vm82_vm1, %v455_v1, 0.0  ;;  %v84_v5 = vsel %vm82_vm1, %v460_v2, 0.0  ;;  %v476_v7 = vld [vmem:[%s1318_s0 + $0x18] sm:$0xff]  ;;  %v483_v10 = vld [vmem:[%s1318_s0 + $0x20] sm:$0xff] }
   0x3   :  { %v86_v6 = vsel %vm82_vm1, %v465_v3, 0.0  ;;  %v85_v8 = vadd.f32 %v84_v5, %v83_v4  ;;  %v88_v9 = vsel %vm82_vm1, %v476_v7, 0.0  ;;  %v90_v12 = vsel %vm82_vm1, %v483_v10, 0.0  ;;  %v490_v13 = vld [vmem:[%s1318_s0 + $0x28] sm:$0xff]  ;;  %v497_v16 = vld [vmem:[%s1318_s0 + $0x30] sm:$0xff]  ;;  %v502_v18 = vld [vmem:[%s1318_s0 + $0x38] sm:$0xff] }
   0x4   :  { %v92_v15 = vsel %vm82_vm1, %v490_v13, 0.0  ;;  %v507_v19 = vld [vmem:[%s1318_s0 + $0x40] sm:$0xff]  ;;  %v94_v20 = vsel %vm82_vm1, %v497_v16, 0.0  ;;  %v514_v21 = vld [vmem:[%s1318_s0 + $0x48] sm:$0xff]  ;;  %v519_v22 = vld [vmem:[%s1318_s0 + $0x50] sm:$0xff]  ;;  %v96_v25 = vsel %vm82_vm1, %v502_v18, 0.0 }
   0x5   :  { %v87_v11 = vadd.f32 %v86_v6, %v85_v8  ;;  %v524_v23 = vld [vmem:[%s1318_s0 + $0x58] sm:$0xff]  ;;  %v98_v26 = vsel %vm82_vm1, %v507_v19, 0.0  ;;  %v533_v27 = vld [vmem:[%s1318_s0 + $0x108] sm:$0xff]  ;;  %v538_v28 = vld [vmem:[%s1318_s0 + $0x110] sm:$0xff]  ;;  %v100_v30 = vsel %vm82_vm1, %v514_v21, 0.0  ;;  %v102_v31 = vsel %vm82_vm1, %v519_v22, 0.0 }
   0x6   :  { %v543_v29 = vld [vmem:[%s1318_s0 + $0x118] sm:$0xff]  ;;  %v551_v32 = vsel %vm82_vm1, %v524_v23, 0.0  ;;  %v556_v33 = vld [vmem:[%s1318_s0 + $0x120] sm:$0xff]  ;;  %v561_v34 = vld [vmem:[%s1318_s0 + $0x128] sm:$0xff]  ;;  %v570_v37 = vsel %vm82_vm1, %v533_v27, 0.0  ;;  %v574_v38 = vsel %vm82_vm1, %v538_v28, 0.0 }
   0x7   :  { %v89_v14 = vadd.f32 %v88_v9, %v87_v11  ;;  %v566_v35 = vld [vmem:[%s1318_s0 + $0x130] sm:$0xff]  ;;  %1339 = vst [vmem:[#allocation2_spill] sm:$0xff] %v570_v37  ;;  %1340 = vst [vmem:[#allocation3_spill] sm:$0xff] %v574_v38  ;;  %v578_v39 = vsel %vm82_vm1, %v543_v29, 0.0  ;;  %v583_v40 = vld [vmem:[%s1318_s0 + $0x138] sm:$0xff]  ;;  %v597_v43 = vsel %vm82_vm1, %v556_v33, 0.0  ;;  %v222_v37 = vmul.f32 %v465_v3, %v465_v3 }
   0x8   :  { %1341 = vst [vmem:[#allocation4_spill] sm:$0xff] %v578_v39  ;;  %v588_v41 = vld [vmem:[%s1318_s0 + $0x140] sm:$0xff]  ;;  %v593_v42 = vld [vmem:[%s1318_s0 + $0x148] sm:$0xff]  ;;  %1342 = vst [vmem:[#allocation5_spill] sm:$0xff] %v597_v43  ;;  %v601_v44 = vsel %vm82_vm1, %v561_v34, 0.0  ;;  %v605_v45 = vsel %vm82_vm1, %v566_v35, 0.0 }
   0x9   :  { %v91_v17 = vadd.f32 %v90_v12, %v89_v14  ;;  %1343 = vst [vmem:[#allocation6_spill] sm:$0xff] %v601_v44  ;;  %1344 = vst [vmem:[#allocation7_spill] sm:$0xff] %v605_v45  ;;  %v610_v46 = vld [vmem:[%s1318_s0 + $0x150] sm:$0xff]  ;;  %v615_v47 = vld [vmem:[%s1318_s0 + $0x158] sm:$0xff]  ;;  %v624_v50 = vsel %vm82_vm1, %v583_v40, 0.0  ;;  %v628_v51 = vsel %vm82_vm1, %v588_v41, 0.0 }
   0xa   :  { %v620_v48 = vld [vmem:[%s1318_s0 + $0x160] sm:$0xff]  ;;  %1345 = vst [vmem:[#allocation8_spill] sm:$0xff] %v624_v50  ;;  %1346 = vst [vmem:[#allocation9_spill] sm:$0xff] %v628_v51  ;;  %v632_v52 = vsel %vm82_vm1, %v593_v42, 0.0  ;;  %v637_v53 = vld [vmem:[%s1318_s0 + $0x168] sm:$0xff]  ;;  %v651_v56 = vsel %vm82_vm1, %v610_v46, 0.0 }
   0xb   :  { %v93_v24 = vadd.f32 %v92_v15, %v91_v17  ;;  %1347 = vst [vmem:[#allocation10_spill] sm:$0xff] %v632_v52  ;;  %v642_v54 = vld [vmem:[%s1318_s0 + $0x170] sm:$0xff]  ;;  %v647_v55 = vld [vmem:[%s1318_s0 + $0x178] sm:$0xff]  ;;  %1348 = vst [vmem:[#allocation11_spill] sm:$0xff] %v651_v56  ;;  %v655_v57 = vsel %vm82_vm1, %v615_v47, 0.0  ;;  %v659_v58 = vsel %vm82_vm1, %v620_v48, 0.0 }
   0xc   :  { %1349 = vst [vmem:[#allocation12_spill] sm:$0xff] %v655_v57  ;;  %1350 = vst [vmem:[#allocation13_spill] sm:$0xff] %v659_v58  ;;  %v664_v59 = vld [vmem:[%s1318_s0 + $0x180] sm:$0xff]  ;;  %v669_v60 = vld [vmem:[%s1318_s0 + $0x188] sm:$0xff]  ;;  %v678_v63 = vsel %vm82_vm1, %v637_v53, 0.0  ;;  %v682_v0 = vsel %vm82_vm1, %v642_v54, 0.0 }
   0xd   :  { %v95_v36 = vadd.f32 %v94_v20, %v93_v24  ;;  %v674_v61 = vld [vmem:[%s1318_s0 + $0x190] sm:$0xff]  ;;  %1351 = vst [vmem:[#allocation14_spill] sm:$0xff] %v678_v63  ;;  %1352 = vst [vmem:[#allocation15_spill] sm:$0xff] %v682_v0  ;;  %v686_v4 = vsel %vm82_vm1, %v647_v55, 0.0  ;;  %v691_v5 = vld [vmem:[%s1318_s0 + $0x198] sm:$0xff]  ;;  %v705_v9 = vsel %vm82_vm1, %v664_v59, 0.0 }
   0xe   :  { %1353 = vst [vmem:[#allocation16_spill] sm:$0xff] %v686_v4  ;;  %v696_v6 = vld [vmem:[%s1318_s0 + $0x1a0] sm:$0xff]  ;;  %v701_v8 = vld [vmem:[%s1318_s0 + $0x1a8] sm:$0xff]  ;;  %1354 = vst [vmem:[#allocation17_spill] sm:$0xff] %v705_v9  ;;  %v709_v11 = vsel %vm82_vm1, %v669_v60, 0.0  ;;  %v713_v12 = vsel %vm82_vm1, %v674_v61, 0.0 }
   0xf   :  { %v97_v49 = vadd.f32 %v96_v25, %v95_v36  ;;  %1355 = vst [vmem:[#allocation18_spill] sm:$0xff] %v709_v11  ;;  %1356 = vst [vmem:[#allocation19_spill] sm:$0xff] %v713_v12  ;;  %v718_v14 = vld [vmem:[%s1318_s0 + $0x60] sm:$0xff]  ;;  %v723_v15 = vld [vmem:[%s1318_s0 + $0x1b0] sm:$0xff]  ;;  %v737_v25 = vsel %vm82_vm1, %v691_v5, 0.0  ;;  %v745_v36 = vsel %vm82_vm1, %v701_v8, 0.0 }
  0x10   :  { %v728_v17 = vld [vmem:[%s1318_s0 + $0x1b8] sm:$0xff]  ;;  %v733_v20 = vld [vmem:[%s1318_s0 + $0x1c0] sm:$0xff]  ;;  %1357 = vst [vmem:[#allocation20_spill] sm:$0xff] %v737_v25  ;;  %1359 = vst [vmem:[#allocation22_spill] sm:$0xff] %v745_v36 }
  0x11   :  { %v99_v62 = vadd.f32 %v98_v26, %v97_v49  ;;  %v741_v26 = vsel %vm82_vm1, %v696_v6, 0.0  ;;  %v750_v49 = vld [vmem:[%s1318_s0 + $0x1c8] sm:$0xff]  ;;  %v768_v36 = vsel %vm82_vm1, %v728_v17, 0.0  ;;  %v772_v25 = vsel %vm82_vm1, %v733_v20, 0.0  ;;  %v777_v12 = vld [vmem:[%s1318_s0 + $0x1e0] sm:$0xff]  ;;  %v804_v0 = vld [vmem:[%s1318_s0 + $0x1f8] sm:$0xff] }
  0x12   :  { %1358 = vst [vmem:[#allocation21_spill] sm:$0xff] %v741_v26  ;;  %v764_v26 = vsel %vm82_vm1, %v723_v15, 0.0  ;;  %1361 = vst [vmem:[#allocation24_spill] sm:$0xff] %v768_v36  ;;  %v782_v11 = vld [vmem:[%s1318_s0 + $0x1e8] sm:$0xff]  ;;  %v791_v9 = vsel %vm82_vm1, %v750_v49, 0.0  ;;  %v826_v58 = vsel %vm82_vm1, %v804_v0, 0.0 }
  0x13   :  { %v101_v24 = vadd.f32 %v100_v30, %v99_v62  ;;  %v755_v30 = vld [vmem:[%s1318_s0 + $0x1d0] sm:$0xff]  ;;  %v760_v62 = vld [vmem:[%s1318_s0 + $0x1d8] sm:$0xff]  ;;  %1360 = vst [vmem:[#allocation23_spill] sm:$0xff] %v764_v26  ;;  %1362 = vst [vmem:[#allocation25_spill] sm:$0xff] %v772_v25 }
  0x14   :  { %v787_v26 = vld [vmem:[%s1318_s0 + $0x1f0] sm:$0xff]  ;;  %1364 = vst [vmem:[#allocation27_spill] sm:$0xff] %v791_v9  ;;  %v795_v25 = vsel %vm82_vm1, %v755_v30, 0.0  ;;  %v799_v4 = vsel %vm82_vm1, %v760_v62, 0.0  ;;  %1367 = vst [vmem:[#allocation30_spill] sm:$0xff] %v804_v0  ;;  %v814_v9 = vsel %vm82_vm1, %v782_v11, 0.0 }
  0x15   :  { %1363 = vst [vmem:[#allocation26_spill] sm:$0xff] %v787_v26  ;;  %v103_v36 = vadd.f32 %v102_v31, %v101_v24  ;;  %1365 = vst [vmem:[#allocation28_spill] sm:$0xff] %v795_v25  ;;  %v106_v31 = vsel %vm82_vm1, %v718_v14, 0.0  ;;  %v810_v24 = vsel %vm82_vm1, %v777_v12, 0.0  ;;  %v818_v25 = vsel %vm82_vm1, %v787_v26, 0.0  ;;  %v855_v56 = vld [vmem:[%s1318_s0 + $0x90] sm:$0xff] }
  0x16   :  { %1366 = vst [vmem:[#allocation29_spill] sm:$0xff] %v799_v4  ;;  %1368 = vst [vmem:[#allocation31_spill] sm:$0xff] %v810_v24  ;;  %v30_v4 = vld [vmem:[%s1318_s0 + $0x68] sm:$0xff]  ;;  %v860_v52 = vld [vmem:[%s1318_s0 + $0x98] sm:$0xff] }
  0x17   :  { %1369 = vst [vmem:[#allocation32_spill] sm:$0xff] %v814_v9  ;;  %1370 = vst [vmem:[#allocation33_spill] sm:$0xff] %v818_v25  ;;  %v105_v63 = vadd.f32 %v551_v32, %v103_v36  ;;  %v108_v24 = vsel %vm82_vm1, %v30_v4, 0.0  ;;  %v31_v9 = vld [vmem:[%s1318_s0 + $0x70] sm:$0xff]  ;;  %v835_v25 = vld [vmem:[%s1318_s0 + $0x78] sm:$0xff]  ;;  %v120_v39 = vsel %vm82_vm1, %v860_v52, 0.0 }
  0x18   :  { %1371 = vst [vmem:[#allocation34_spill] sm:$0xff] %v826_v58  ;;  %1372 = vst [vmem:[#allocation35_spill] sm:$0xff] %v835_v25  ;;  %v840_v32 = vld [vmem:[%s1318_s0 + $0x80] sm:$0xff]  ;;  %v845_v36 = vld [vmem:[%s1318_s0 + $0x88] sm:$0xff]  ;;  %v110_v58 = vsel %vm82_vm1, %v31_v9, 0.0 }
  0x19   :  { %v107_v57 = vadd.f32 %v106_v31, %v105_v63  ;;  %1373 = vst [vmem:[#allocation36_spill] sm:$0xff] %v840_v32  ;;  %1374 = vst [vmem:[#allocation37_spill] sm:$0xff] %v845_v36  ;;  %v220_v63 = vmul.f32 %v455_v1, %v455_v1  ;;  %v221_v31 = vmul.f32 %v460_v2, %v460_v2  ;;  %v865_v51 = vld [vmem:[%s1318_s0 + $0xa0] sm:$0xff]  ;;  %v112_v1 = vsel %vm82_vm1, %v835_v25, 0.0  ;;  %v876_v44 = vld [vmem:[%s1318_s0 + $0xa8] sm:$0xff] }
  0x1a   :  { %1375 = vst [vmem:[#allocation38_spill] sm:$0xff] %v855_v56  ;;  %1376 = vst [vmem:[#allocation39_spill] sm:$0xff] %v860_v52  ;;  %v114_v2 = vsel %vm82_vm1, %v840_v32, 0.0  ;;  %v116_v45 = vsel %vm82_vm1, %v845_v36, 0.0  ;;  %v881_v43 = vld [vmem:[%s1318_s0 + $0xb0] sm:$0xff]  ;;  %v122_v38 = vsel %vm82_vm1, %v865_v51, 0.0  ;;  %v223_v25 = vmul.f32 %v476_v7, %v476_v7 }
  0x1b   :  { %1377 = vst [vmem:[#allocation40_spill] sm:$0xff] %v865_v51  ;;  %v109_v50 = vadd.f32 %v108_v24, %v107_v57  ;;  %1378 = vst [vmem:[#allocation41_spill] sm:$0xff] %v876_v44  ;;  %v886_v57 = vld [vmem:[%s1318_s0 + $0xb8] sm:$0xff]  ;;  %v118_v24 = vsel %vm82_vm1, %v855_v56, 0.0  ;;  %v899_v36 = vld [vmem:[%s1318_s0 + $0xc0] sm:$0xff]  ;;  %v124_v51 = vsel %vm82_vm1, %v876_v44, 0.0 }
  0x1c   :  { %1379 = vst [vmem:[#allocation42_spill] sm:$0xff] %v881_v43  ;;  %1380 = vst [vmem:[#allocation43_spill] sm:$0xff] %v886_v57  ;;  %v904_v32 = vld [vmem:[%s1318_s0 + $0xc8] sm:$0xff]  ;;  %v909_v52 = vld [vmem:[%s1318_s0 + $0xd0] sm:$0xff]  ;;  %v915_v3 = vsel %vm82_vm1, %v881_v43, 0.0 }
  0x1d   :  { %1381 = vst [vmem:[#allocation44_spill] sm:$0xff] %v899_v36  ;;  %1382 = vst [vmem:[#allocation45_spill] sm:$0xff] %v904_v32  ;;  %v111_v56 = vadd.f32 %v110_v58, %v109_v50  ;;  %v922_v0 = vld [vmem:[%s1318_s0 + $0xd8] sm:$0xff]  ;;  %v927_v26 = vld [vmem:[%s1318_s0 + $0xe0] sm:$0xff]  ;;  %v931_v50 = vsel %vm82_vm1, %v886_v57, 0.0  ;;  %v935_v58 = vsel %vm82_vm1, %v899_v36, 0.0 }
  0x1e   :  { %1383 = vst [vmem:[#allocation46_spill] sm:$0xff] %v909_v52  ;;  %1384 = vst [vmem:[#allocation47_spill] sm:$0xff] %v922_v0  ;;  %v939_v7 = vsel %vm82_vm1, %v904_v32, 0.0  ;;  %v943_v43 = vsel %vm82_vm1, %v909_v52, 0.0  ;;  %v948_v44 = vld [vmem:[%s1318_s0 + $0xe8] sm:$0xff]  ;;  %v953_v57 = vld [vmem:[%s1318_s0 + $0xf0] sm:$0xff]  ;;  %v224_v52 = vmul.f32 %v483_v10, %v483_v10  ;;  %v228_v10 = vmul.f32 %v507_v19, %v507_v19 }
  0x1f   :  { %1385 = vst [vmem:[#allocation48_spill] sm:$0xff] %v927_v26  ;;  %1386 = vst [vmem:[#allocation49_spill] sm:$0xff] %v935_v58  ;;  %v113_v36 = vadd.f32 %v112_v1, %v111_v56  ;;  %v957_v58 = vsel %vm82_vm1, %v922_v0, 0.0  ;;  %v961_v32 = vsel %vm82_vm1, %v927_v26, 0.0  ;;  %v225_v56 = vmul.f32 %v490_v13, %v490_v13 }
  0x20   :  { %1387 = vst [vmem:[#allocation50_spill] sm:$0xff] %v939_v7  ;;  %1388 = vst [vmem:[#allocation51_spill] sm:$0xff] %v943_v43  ;;  %v967_v43 = vsel %vm82_vm1, %v948_v44, 0.0  ;;  %v971_v7 = vsel %vm82_vm1, %v953_v57, 0.0  ;;  %v226_v1 = vmul.f32 %v497_v16, %v497_v16  ;;  %v227_v26 = vmul.f32 %v502_v18, %v502_v18 }
  0x21   :  { %1389 = vst [vmem:[#allocation52_spill] sm:$0xff] %v948_v44  ;;  %1390 = vst [vmem:[#allocation53_spill] sm:$0xff] %v953_v57  ;;  %v115_v0 = vadd.f32 %v114_v2, %v113_v36  ;;  %v229_v44 = vmul.f32 %v514_v21, %v514_v21  ;;  %v230_v57 = vmul.f32 %v519_v22, %v519_v22 }
  0x22   :  { %1391 = vst [vmem:[#allocation54_spill] sm:$0xff] %v971_v7  ;;  %v231_v7 = vmul.f32 %v524_v23, %v524_v23  ;;  %v232_v13 = vmul.f32 %v718_v14, %v718_v14  ;;  %v989_v16 = vmul.f32 %v30_v4, %v30_v4  ;;  %v991_v2 = vmul.f32 %v31_v9, %v31_v9 }
  0x23   :  { %v117_v36 = vadd.f32 %v116_v45, %v115_v0  ;;  %v253_v18 = vmul.f32 %v533_v27, %v533_v27  ;;  %v254_v19 = vmul.f32 %v538_v28, %v538_v28  ;;  %v255_v21 = vmul.f32 %v543_v29, %v543_v29 }
  0x24   :  { %v256_v22 = vmul.f32 %v556_v33, %v556_v33  ;;  %v257_v23 = vmul.f32 %v561_v34, %v561_v34  ;;  %v258_v45 = vmul.f32 %v566_v35, %v566_v35  ;;  %v259_v4 = vmul.f32 %v583_v40, %v583_v40 }
  0x25   :  { %v119_v0 = vadd.f32 %v118_v24, %v117_v36  ;;  %v260_v27 = vmul.f32 %v588_v41, %v588_v41  ;;  %v261_v28 = vmul.f32 %v593_v42, %v593_v42  ;;  %v262_v29 = vmul.f32 %v610_v46, %v610_v46 }
  0x26   :  { %v263_v33 = vmul.f32 %v615_v47, %v615_v47  ;;  %v284_v34 = vsel %vm82_vm1, %v220_v63, 0.0  ;;  %v285_v35 = vsel %vm82_vm1, %v221_v31, 0.0  ;;  %v264_v40 = vmul.f32 %v620_v48, %v620_v48 }
  0x27   :  { %v121_v9 = vadd.f32 %v120_v39, %v119_v0  ;;  %v286_v14 = vadd.f32 %v285_v35, %v284_v34  ;;  %v287_v41 = vsel %vm82_vm1, %v222_v37, 0.0  ;;  %v265_v42 = vmul.f32 %v637_v53, %v637_v53  ;;  %v1392_v0 = vld [vmem:[#allocation26_spill] sm:$0xff] }
  0x28   :  { %v266_v46 = vmul.f32 %v642_v54, %v642_v54  ;;  %v267_v47 = vmul.f32 %v647_v55, %v647_v55  ;;  %v289_v63 = vsel %vm82_vm1, %v223_v25, 0.0  ;;  %v268_v39 = vmul.f32 %v664_v59, %v664_v59  ;;  %v1393_v34 = vld [vmem:[#allocation30_spill] sm:$0xff] }
  0x29   :  { %v123_v24 = vadd.f32 %v122_v38, %v121_v9  ;;  %v269_v48 = vmul.f32 %v669_v60, %v669_v60  ;;  %v288_v31 = vadd.f32 %v287_v41, %v286_v14  ;;  %v270_v37 = vmul.f32 %v674_v61, %v674_v61  ;;  %v1394_v41 = vld [vmem:[#allocation49_spill] sm:$0xff] }
  0x2a   :  { %v271_v53 = vmul.f32 %v691_v5, %v691_v5  ;;  %v272_v54 = vmul.f32 %v696_v6, %v696_v6  ;;  %v291_v55 = vsel %vm82_vm1, %v224_v52, 0.0  ;;  %v273_v38 = vmul.f32 %v701_v8, %v701_v8 }
  0x2b   :  { %v125_v25 = vadd.f32 %v124_v51, %v123_v24  ;;  %v274_v59 = vmul.f32 %v723_v15, %v723_v15  ;;  %v290_v60 = vadd.f32 %v289_v63, %v288_v31  ;;  %v275_v36 = vmul.f32 %v728_v17, %v728_v17 }
  0x2c   :  { %v276_v61 = vmul.f32 %v733_v20, %v733_v20  ;;  %v277_v5 = vmul.f32 %v750_v49, %v750_v49  ;;  %v293_v6 = vsel %vm82_vm1, %v225_v56, 0.0  ;;  %v278_v52 = vmul.f32 %v755_v30, %v755_v30 }
  0x2d   :  { %v127_v51 = vadd.f32 %v915_v3, %v125_v25  ;;  %v279_v8 = vmul.f32 %v760_v62, %v760_v62  ;;  %v292_v15 = vadd.f32 %v291_v55, %v290_v60  ;;  %v280_v17 = vmul.f32 %v777_v12, %v777_v12  ;;  %v1396_v25 = vld [vmem:[#allocation51_spill] sm:$0xff] }
  0x2e   :  { %v281_v20 = vmul.f32 %v782_v11, %v782_v11  ;;  %v282_v49 = vmul.f32 %v1392_v0, %v1392_v0  ;;  %v295_v56 = vsel %vm82_vm1, %v226_v1, 0.0  ;;  %v283_v30 = vmul.f32 %v1393_v34, %v1393_v34  ;;  %v1398_v34 = vld [vmem:[#allocation54_spill] sm:$0xff] }
  0x2f   :  { %v129_v3 = vadd.f32 %v931_v50, %v127_v51  ;;  %v294_v35 = vadd.f32 %v293_v6, %v292_v15  ;;  %v297_v62 = vsel %vm82_vm1, %v227_v26, 0.0  ;;  %v299_v9 = vsel %vm82_vm1, %v228_v10, 0.0 }
  0x30   :  { %v301_v12 = vsel %vm82_vm1, %v229_v44, 0.0  ;;  %v303_v14 = vsel %vm82_vm1, %v230_v57, 0.0  ;;  %v305_v11 = vsel %vm82_vm1, %v231_v7, 0.0  ;;  %v307_v1 = vsel %vm82_vm1, %v232_v13, 0.0  ;;  %v1395_v7 = vld [vmem:[#allocation50_spill] sm:$0xff] }
  0x31   :  { %v131_v63 = vadd.f32 %v1394_v41, %v129_v3  ;;  %v296_v24 = vadd.f32 %v295_v56, %v294_v35  ;;  %v1072_v50 = vsel %vm82_vm1, %v253_v18, 0.0  ;;  %v1075_v31 = vsel %vm82_vm1, %v254_v19, 0.0  ;;  %v1397_v56 = vld [vmem:[#allocation35_spill] sm:$0xff] }
  0x32   :  { %v1078_v26 = vsel %vm82_vm1, %v255_v21, 0.0  ;;  %v1081_v44 = vsel %vm82_vm1, %v256_v22, 0.0  ;;  %v1084_v57 = vsel %vm82_vm1, %v257_v23, 0.0  ;;  %v1088_v13 = vsel %vm82_vm1, %v258_v45, 0.0 }
  0x33   :  { %v133_v10 = vadd.f32 %v1395_v7, %v131_v63  ;;  %v298_v55 = vadd.f32 %v297_v62, %v296_v24  ;;  %v1091_v18 = vsel %vm82_vm1, %v259_v4, 0.0  ;;  %v1094_v19 = vsel %vm82_vm1, %v260_v27, 0.0  ;;  %v1399_v62 = vld [vmem:[#allocation36_spill] sm:$0xff] }
  0x34   :  { %v1097_v21 = vsel %vm82_vm1, %v261_v28, 0.0  ;;  %v1100_v22 = vsel %vm82_vm1, %v262_v29, 0.0  ;;  %v1103_v23 = vsel %vm82_vm1, %v263_v33, 0.0  ;;  %v1107_v45 = vsel %vm82_vm1, %v264_v40, 0.0 }
  0x35   :  { %v135_v60 = vadd.f32 %v1396_v25, %v133_v10  ;;  %v300_v6 = vadd.f32 %v299_v9, %v298_v55  ;;  %v1110_v4 = vsel %vm82_vm1, %v265_v42, 0.0  ;;  %v1113_v27 = vsel %vm82_vm1, %v266_v46, 0.0  ;;  %v1401_v10 = vld [vmem:[#allocation38_spill] sm:$0xff] }
  0x36   :  { %v1116_v28 = vsel %vm82_vm1, %v267_v47, 0.0  ;;  %v1119_v29 = vsel %vm82_vm1, %v268_v39, 0.0  ;;  %v1122_v33 = vsel %vm82_vm1, %v269_v48, 0.0  ;;  %v1126_v40 = vsel %vm82_vm1, %v270_v37, 0.0  ;;  %v1402_v25 = vld [vmem:[#allocation2_spill] sm:$0xff] }
  0x37   :  { %v137_v51 = vadd.f32 %v957_v58, %v135_v60  ;;  %v302_v15 = vadd.f32 %v301_v12, %v300_v6  ;;  %v1129_v42 = vsel %vm82_vm1, %v271_v53, 0.0  ;;  %v1132_v46 = vsel %vm82_vm1, %v272_v54, 0.0 }
  0x38   :  { %v1135_v47 = vsel %vm82_vm1, %v273_v38, 0.0  ;;  %v1138_v39 = vsel %vm82_vm1, %v274_v59, 0.0  ;;  %v1141_v48 = vsel %vm82_vm1, %v275_v36, 0.0  ;;  %v1145_v37 = vsel %vm82_vm1, %v276_v61, 0.0 }
  0x39   :  { %v139_v58 = vadd.f32 %v961_v32, %v137_v51  ;;  %v304_v0 = vadd.f32 %v303_v14, %v302_v15  ;;  %v1148_v53 = vsel %vm82_vm1, %v277_v5, 0.0  ;;  %v1151_v54 = vsel %vm82_vm1, %v278_v52, 0.0  ;;  %v1165_v32 = vld [vmem:[%s1318_s0 + $0xf8] sm:$0xff]  ;;  %v1403_v51 = vld [vmem:[#allocation39_spill] sm:$0xff] }
  0x3a   :  { %v1154_v38 = vsel %vm82_vm1, %v279_v8, 0.0  ;;  %v1157_v59 = vsel %vm82_vm1, %v280_v17, 0.0  ;;  %v1160_v36 = vsel %vm82_vm1, %v281_v20, 0.0  ;;  %v1169_v52 = vsel %vm82_vm1, %v282_v49, 0.0 }
  0x3b   :  { %v141_v61 = vadd.f32 %v967_v43, %v139_v58  ;;  %v306_v5 = vadd.f32 %v305_v11, %v304_v0  ;;  %v1172_v8 = vsel %vm82_vm1, %v283_v30, 0.0  ;;  %v144_v17 = vsel %vm82_vm1, %v1165_v32, 0.0  ;;  %v1183_v43 = vld [vmem:[%s1318_s0 + $0x100] sm:$0xff]  ;;  %v1404_v58 = vld [vmem:[#allocation3_spill] sm:$0xff] }
  0x3c   :  { %v235_v20 = vmul.f32 %v1397_v56, %v1397_v56  ;;  %v309_v3 = vsel %vm82_vm1, %v989_v16, 0.0  ;;  %v146_v30 = vsel %vm82_vm1, %v1183_v43, 0.0  ;;  %v236_v9 = vmul.f32 %v1399_v62, %v1399_v62  ;;  %v1400_v16 = vld [vmem:[#allocation37_spill] sm:$0xff] }
  0x3d   :  { %v143_v49 = vadd.f32 %v1398_v34, %v141_v61  ;;  %v308_v35 = vadd.f32 %v307_v1, %v306_v5  ;;  %v311_v12 = vsel %vm82_vm1, %v991_v2, 0.0  ;;  %v237_v41 = vmul.f32 %v1400_v16, %v1400_v16  ;;  %v1405_v5 = vld [vmem:[#allocation40_spill] sm:$0xff]  ;;  %v1408_v62 = vld [vmem:[#allocation5_spill] sm:$0xff] }
  0x3e   :  { %v313_v63 = vsel %vm82_vm1, %v235_v20, 0.0  ;;  %v238_v1 = vmul.f32 %v1401_v10, %v1401_v10  ;;  %v315_v55 = vsel %vm82_vm1, %v236_v9, 0.0  ;;  %v239_v2 = vmul.f32 %v1403_v51, %v1403_v51  ;;  %v1406_v20 = vld [vmem:[#allocation4_spill] sm:$0xff] }
  0x3f   :  { %v145_v14 = vadd.f32 %v144_v17, %v143_v49  ;;  %v310_v11 = vadd.f32 %v309_v3, %v308_v35  ;;  %v317_v15 = vsel %vm82_vm1, %v237_v41, 0.0  ;;  %v240_v17 = vmul.f32 %v1405_v5, %v1405_v5  ;;  %v1407_v49 = vld [vmem:[#allocation41_spill] sm:$0xff]  ;;  %v1410_v41 = vld [vmem:[#allocation6_spill] sm:$0xff] }
  0x40   :  { %v319_v56 = vsel %vm82_vm1, %v238_v1, 0.0  ;;  %v241_v35 = vmul.f32 %v1407_v49, %v1407_v49 }
  0x41   :  { %v147_v24 = vadd.f32 %v146_v30, %v145_v14  ;;  %v312_v7 = vadd.f32 %v311_v12, %v310_v11  ;;  %v321_v30 = vsel %vm82_vm1, %v239_v2, 0.0  ;;  %v1409_v14 = vld [vmem:[#allocation42_spill] sm:$0xff]  ;;  %v323_v16 = vsel %vm82_vm1, %v240_v17, 0.0 }
  0x42   :  { %v242_v11 = vmul.f32 %v1409_v14, %v1409_v14  ;;  %v325_v1 = vsel %vm82_vm1, %v241_v35, 0.0 }
  0x43   :  { %v149_v60 = vadd.f32 %v1402_v25, %v147_v24  ;;  %v314_v6 = vadd.f32 %v313_v63, %v312_v7  ;;  %v1411_v7 = vld [vmem:[#allocation43_spill] sm:$0xff] }
  0x44   :  { %v243_v10 = vmul.f32 %v1411_v7, %v1411_v7  ;;  %v327_v2 = vsel %vm82_vm1, %v242_v11, 0.0 }
  0x45   :  { %v151_v0 = vadd.f32 %v1404_v58, %v149_v60  ;;  %v316_v61 = vadd.f32 %v315_v55, %v314_v6  ;;  %v1412_v55 = vld [vmem:[#allocation7_spill] sm:$0xff]  ;;  %v1413_v6 = vld [vmem:[#allocation44_spill] sm:$0xff] }
  0x46   :  { %v244_v51 = vmul.f32 %v1413_v6, %v1413_v6  ;;  %v329_v17 = vsel %vm82_vm1, %v243_v10, 0.0 }
  0x47   :  { %v153_v3 = vadd.f32 %v1406_v20, %v151_v0  ;;  %v318_v34 = vadd.f32 %v317_v15, %v316_v61  ;;  %v1414_v15 = vld [vmem:[#allocation8_spill] sm:$0xff]  ;;  %v1415_v61 = vld [vmem:[#allocation45_spill] sm:$0xff] }
  0x48   :  { %v245_v5 = vmul.f32 %v1415_v61, %v1415_v61  ;;  %v331_v35 = vsel %vm82_vm1, %v244_v51, 0.0 }
  0x49   :  { %v155_v9 = vadd.f32 %v1408_v62, %v153_v3  ;;  %v320_v12 = vadd.f32 %v319_v56, %v318_v34  ;;  %v1416_v56 = vld [vmem:[#allocation9_spill] sm:$0xff]  ;;  %v1417_v34 = vld [vmem:[#allocation46_spill] sm:$0xff] }
  0x4a   :  { %v246_v49 = vmul.f32 %v1417_v34, %v1417_v34  ;;  %v333_v11 = vsel %vm82_vm1, %v245_v5, 0.0 }
  0x4b   :  { %v157_v63 = vadd.f32 %v1410_v41, %v155_v9  ;;  %v322_v24 = vadd.f32 %v321_v30, %v320_v12  ;;  %v1418_v30 = vld [vmem:[#allocation10_spill] sm:$0xff]  ;;  %v1419_v12 = vld [vmem:[#allocation47_spill] sm:$0xff] }
  0x4c   :  { %v247_v14 = vmul.f32 %v1419_v12, %v1419_v12  ;;  %v335_v10 = vsel %vm82_vm1, %v246_v49, 0.0  ;;  %v1427_v49 = vld [vmem:[#allocation15_spill] sm:$0xff]  ;;  %v1428_v12 = vld [vmem:[#allocation16_spill] sm:$0xff] }
  0x4d   :  { %v159_v25 = vadd.f32 %v1412_v55, %v157_v63  ;;  %v324_v60 = vadd.f32 %v323_v16, %v322_v24  ;;  %v1420_v16 = vld [vmem:[#allocation11_spill] sm:$0xff]  ;;  %v1421_v24 = vld [vmem:[#allocation48_spill] sm:$0xff] }
  0x4e   :  { %v248_v7 = vmul.f32 %v1421_v24, %v1421_v24  ;;  %v337_v51 = vsel %vm82_vm1, %v247_v14, 0.0 }
  0x4f   :  { %v161_v58 = vadd.f32 %v1414_v15, %v159_v25  ;;  %v326_v0 = vadd.f32 %v325_v1, %v324_v60  ;;  %v1422_v1 = vld [vmem:[#allocation12_spill] sm:$0xff] }
  0x50   :  { %v1423_v60 = vld [vmem:[#allocation52_spill] sm:$0xff]  ;;  %v339_v5 = vsel %vm82_vm1, %v248_v7, 0.0  ;;  %v1430_v7 = vld [vmem:[#allocation18_spill] sm:$0xff] }
  0x51   :  { %v163_v20 = vadd.f32 %v1416_v56, %v161_v58  ;;  %v328_v3 = vadd.f32 %v327_v2, %v326_v0  ;;  %v249_v6 = vmul.f32 %v1423_v60, %v1423_v60  ;;  %v1424_v2 = vld [vmem:[#allocation13_spill] sm:$0xff] }
  0x52   :  { %v1425_v0 = vld [vmem:[#allocation53_spill] sm:$0xff] }
  0x53   :  { %v165_v62 = vadd.f32 %v1418_v30, %v163_v20  ;;  %v330_v9 = vadd.f32 %v329_v17, %v328_v3  ;;  %v250_v61 = vmul.f32 %v1425_v0, %v1425_v0  ;;  %v1426_v17 = vld [vmem:[#allocation14_spill] sm:$0xff]  ;;  %v251_v3 = vmul.f32 %v1165_v32, %v1165_v32 }
  0x54   :  { %v341_v34 = vsel %vm82_vm1, %v249_v6, 0.0  ;;  %v1432_v6 = vld [vmem:[#allocation20_spill] sm:$0xff]  ;;  %v1434_v0 = vld [vmem:[#allocation22_spill] sm:$0xff] }
  0x55   :  { %v167_v41 = vadd.f32 %v1420_v16, %v165_v62  ;;  %v332_v63 = vadd.f32 %v331_v35, %v330_v9  ;;  %v252_v62 = vmul.f32 %v1183_v43, %v1183_v43  ;;  %v343_v9 = vsel %vm82_vm1, %v250_v61, 0.0 }
  0x56   :  { %v345_v16 = vsel %vm82_vm1, %v251_v3, 0.0  ;;  %v1436_v3 = vld [vmem:[#allocation24_spill] sm:$0xff] }
  0x57   :  { %v169_v55 = vadd.f32 %v1422_v1, %v167_v41  ;;  %v334_v25 = vadd.f32 %v333_v11, %v332_v63  ;;  %v1429_v41 = vld [vmem:[#allocation17_spill] sm:$0xff]  ;;  %v347_v32 = vsel %vm82_vm1, %v252_v62, 0.0  ;;  %v1438_v62 = vld [vmem:[#allocation27_spill] sm:$0xff] }
  0x59   :  { %v171_v15 = vadd.f32 %v1424_v2, %v169_v55  ;;  %v336_v58 = vadd.f32 %v335_v10, %v334_v25  ;;  %v1431_v55 = vld [vmem:[#allocation19_spill] sm:$0xff]  ;;  %v1433_v2 = vld [vmem:[#allocation21_spill] sm:$0xff] }
  0x5b   :  { %v173_v56 = vadd.f32 %v1426_v17, %v171_v15  ;;  %v338_v20 = vadd.f32 %v337_v51, %v336_v58  ;;  %v1435_v17 = vld [vmem:[#allocation23_spill] sm:$0xff] }
  0x5d   :  { %v175_v35 = vadd.f32 %v1427_v49, %v173_v56  ;;  %v340_v30 = vadd.f32 %v339_v5, %v338_v20 }
  0x5f   :  { %v177_v14 = vadd.f32 %v1428_v12, %v175_v35  ;;  %v342_v11 = vadd.f32 %v341_v34, %v340_v30  ;;  %v1437_v35 = vld [vmem:[#allocation25_spill] sm:$0xff]  ;;  %v1439_v12 = vld [vmem:[#allocation28_spill] sm:$0xff] }
  0x61   :  { %v179_v63 = vadd.f32 %v1429_v41, %v177_v14  ;;  %v344_v24 = vadd.f32 %v343_v9, %v342_v11  ;;  %v1440_v11 = vld [vmem:[#allocation29_spill] sm:$0xff]  ;;  %v1441_v41 = vld [vmem:[#allocation31_spill] sm:$0xff] }
  0x63   :  { %v181_v10 = vadd.f32 %v1430_v7, %v179_v63  ;;  %v346_v1 = vadd.f32 %v345_v16, %v344_v24  ;;  %v1442_v24 = vld [vmem:[#allocation32_spill] sm:$0xff]  ;;  %v1443_v7 = vld [vmem:[#allocation33_spill] sm:$0xff] }
  0x65   :  { %v183_v25 = vadd.f32 %v1431_v55, %v181_v10  ;;  %v348_v60 = vadd.f32 %v347_v32, %v346_v1  ;;  %v1444_v1 = vld [vmem:[#allocation34_spill] sm:$0xff] }
  0x67   :  { %v185_v43 = vadd.f32 %v1432_v6, %v183_v25  ;;  %v350_v51 = vadd.f32 %v1072_v50, %v348_v60 }
  0x69   :  { %v187_v15 = vadd.f32 %v1433_v2, %v185_v43  ;;  %v352_v58 = vadd.f32 %v1075_v31, %v350_v51 }
  0x6b   :  { %v189_v61 = vadd.f32 %v1434_v0, %v187_v15  ;;  %v354_v5 = vadd.f32 %v1078_v26, %v352_v58 }
  0x6d   :  { %v191_v56 = vadd.f32 %v1435_v17, %v189_v61  ;;  %v356_v20 = vadd.f32 %v1081_v44, %v354_v5 }
  0x6f   :  { %v193_v34 = vadd.f32 %v1436_v3, %v191_v56  ;;  %v358_v49 = vadd.f32 %v1084_v57, %v356_v20 }
  0x71   :  { %v195_v30 = vadd.f32 %v1437_v35, %v193_v34  ;;  %v360_v50 = vadd.f32 %v1088_v13, %v358_v49 }
  0x73   :  { %v197_v9 = vadd.f32 %v1438_v62, %v195_v30  ;;  %v362_v31 = vadd.f32 %v1091_v18, %v360_v50 }
  0x75   :  { %v199_v14 = vadd.f32 %v1439_v12, %v197_v9  ;;  %v364_v26 = vadd.f32 %v1094_v19, %v362_v31 }
  0x77   :  { %v201_v16 = vadd.f32 %v1440_v11, %v199_v14  ;;  %v366_v44 = vadd.f32 %v1097_v21, %v364_v26 }
  0x79   :  { %v203_v63 = vadd.f32 %v1441_v41, %v201_v16  ;;  %v368_v57 = vadd.f32 %v1100_v22, %v366_v44 }
  0x7b   :  { %v205_v32 = vadd.f32 %v1442_v24, %v203_v63  ;;  %v370_v13 = vadd.f32 %v1103_v23, %v368_v57 }
  0x7d   :  { %v207_v10 = vadd.f32 %v1443_v7, %v205_v32  ;;  %v372_v18 = vadd.f32 %v1107_v45, %v370_v13  ;;  %v81_v45 = vld [vmem:[%s1319_s1] sm:$0x1] }
  0x7f   :  { %v209_v55 = vadd.f32 %v1444_v1, %v207_v10  ;;  %v374_v19 = vadd.f32 %v1110_v4, %v372_v18 }
  0x81   :  { %v210_v25 = vrot.slane %v209_v55, 4  ;;  %v376_v60 = vadd.f32 %v1113_v27, %v374_v19 }
  0x83   :  { %v211_v21 = vadd.f32 %v210_v25, %v209_v55  ;;  %v378_v6 = vadd.f32 %v1116_v28, %v376_v60 }
  0x85   :  { %v212_v43 = vrot.slane %v211_v21, 2  ;;  %v380_v22 = vadd.f32 %v1119_v29, %v378_v6 }
  0x87   :  { %v213_v51 = vadd.f32 %v212_v43, %v211_v21  ;;  %v382_v23 = vadd.f32 %v1122_v33, %v380_v22 }
  0x89   :  { %v214_v2 = vrot.slane %v213_v51, 1  ;;  %v384_v15 = vadd.f32 %v1126_v40, %v382_v23 }
  0x8b   :  { %v215_v4 = vadd.f32 %v214_v2, %v213_v51  ;;  %v386_v58 = vadd.f32 %v1129_v42, %v384_v15 }
  0x8d   :  { %v216_v27 = vadd.f32 %v215_v4, %v81_v45  ;;  %v388_v0 = vadd.f32 %v1132_v46, %v386_v58 }
  0x8f   :  { %218 = vst.msk [vmem:[%s1319_s1] sm:$0x1] %vm14_vm0, %v216_v27  ;;  %v390_v28 = vadd.f32 %v1135_v47, %v388_v0 }
  0x91   :  { %v392_v29 = vadd.f32 %v1138_v39, %v390_v28 }
  0x93   :  { %v394_v33 = vadd.f32 %v1141_v48, %v392_v29 }
  0x95   :  { %v396_v40 = vadd.f32 %v1145_v37, %v394_v33  ;;  %v219_v37 = vld [vmem:[%s1320_s2] sm:$0x1] }
  0x97   :  { %v398_v61 = vadd.f32 %v1148_v53, %v396_v40 }
  0x99   :  { %v400_v42 = vadd.f32 %v1151_v54, %v398_v61 }
  0x9b   :  { %v402_v5 = vadd.f32 %v1154_v38, %v400_v42 }
  0x9d   :  { %v404_v46 = vadd.f32 %v1157_v59, %v402_v5 }
  0x9f   :  { %v406_v17 = vadd.f32 %v1160_v36, %v404_v46 }
  0xa1   :  { %v408_v56 = vadd.f32 %v1169_v52, %v406_v17 }
  0xa3   :  { %v410_v47 = vadd.f32 %v1172_v8, %v408_v56 }
  0xa5   :  { %v411_v20 = vrot.slane %v410_v47, 4 }
  0xa7   :  { %v412_v39 = vadd.f32 %v411_v20, %v410_v47 }
  0xa9   :  { %v413_v3 = vrot.slane %v412_v39, 2 }
  0xab   :  { %v414_v48 = vadd.f32 %v413_v3, %v412_v39 }
  0xad   :  { %v415_v34 = vrot.slane %v414_v48, 1 }
  0xaf   :  { %v416_v53 = vadd.f32 %v415_v34, %v414_v48 }
  0xb1   :  { %v417_v54 = vadd.f32 %v416_v53, %v219_v37 }
  0xb3   :  { %418 = vst.msk [vmem:[%s1320_s2] sm:$0x1] %vm14_vm0, %v417_v54 }

// kernel: _lambda_.13
= control target key start
LH: loop header
LB: loop body
LE: loop exit
PB: predicated region body
PF: predicated region fallthrough
CT: control target
= control target key end

     0   :  { %s1241_s21 = smov 0   ;;  %s1481_s0 = inlined_call_operand.vmem [shape: f32[1,4], index: 0, kind: input, shape index: {}]   ;;  %s1482_s1 = inlined_call_operand.vmem [shape: f32[1,4], index: 1, kind: input, shape index: {}]   ;;  %s1483_s2 = inlined_call_operand.vmem [shape: f32[2,16,16,4], index: 2, kind: input, shape index: {}]   ;;  %s1484_s3 = inlined_call_operand.vmem [shape: f32[1,4,8], index: 3, kind: input, shape index: {}]   ;;  %s1485_s4 = inlined_call_operand.vmem [shape: f32[1,8], index: 4, kind: input, shape index: {}]   ;;  %s1486_s5 = inlined_call_operand.vmem [shape: f32[2,8,8,8], index: 5, kind: input, shape index: {}]   ;;  %s1487_s6 = inlined_call_operand.vmem [shape: f32[2,8,8,8], index: 6, kind: output, shape index: {}]  }
   0x1 LB: > { %s1121_s0 = sadd.s32 4294967295, %s1203_s21   ;;  %p1125_p0 = scmp.ge.s32.totalorder %s1203_s21, 1  ;;  %s1203_s21 = sphi %s1241_s21, %s16_s21  }
   0x2   : > { %p222_p1 = scmp.lt.s32.totalorder %s1203_s21, 3 }
   0x4   : > { %p223_p2 = pnand %p1125_p0, %p222_p1 }
   0x5   : > { %p257_p3 = scmp.lt.s32.totalorder (!%p223_p2), %s1121_s0, 1 }
   0x6   : > { %226 = sbr.rel (%p223_p2) target bundleno = 271 (0x10f), region = 44 }
   0xb   : > { %v288_v0 = vld [vmem:[%s1484_s3] sm:$0xf]  ;;  %vm920_vm0 = vcmask 1043456   ;;  %v309_v1 = vlaneseq  ;;  %v1205_v2 = vmov 1983009808   ;;  %s1489_s0 = smov (!%p257_p3, %s1121_s0), 1 }
   0xc   : > { %1156 = vmatprep.subr.msk.mxu0 %vm920_vm0, %v288_v0  ;;  %1170 = vmatprep.subr.msk.mxu1 %vm920_vm0, %v288_v0  ;;  %v307_v3 = vunpack.c.l.s4 %v1205_v2  ;;  %s1144_s23 = sshll.u32 %s1489_s0, 8  ;;  %vm840_vm1 = vcmask 1041409   ;;  %vm842_vm2 = vcmask 1042434   ;;  %vm844_vm3 = vcmask 1043459   ;;  %s1145_s27 = sshll.u32 %s1489_s0, 6 }
   0xd   : > { %1157 = vmatpush3.msk.msra.mxu0 %vm920_vm0, %v288_v0  ;;  %1171 = vmatpush3.msk.msra.mxu1 %vm920_vm0, %v288_v0  ;;  %v310_v4 = vshrl.u32 %v309_v1, 7  ;;  %s1258_s26 = scalar_lea.vmem %s1483_s2, %s1144_s23  ;;  %vm846_vm4 = vcmask 1044484   ;;  %vm848_vm5 = vcmask 1045509   ;;  %vm850_vm6 = vcmask 1046534   ;;  %s1444_s30 = scalar_lea.vmem %s1486_s5, %s1145_s27 }
   0xe   : > { %v308_v5 = vunpack.c.0.s8 %v307_v3  ;;  %v272_v7 = vld [vmem:[%s1258_s26] sm:$0xff]  ;;  %v273_v8 = vld [vmem:[%s1258_s26 + $0x8] sm:$0xff]  ;;  %vm852_vm7 = vcmask 1047559   ;;  %vm903_vm8 = vcmask 31744   ;;  %s1453_s11 = scalar_lea.vmem %s1487_s6, %s1145_s27  ;;  %vm1045_vm9 = vcmask 64512  }
   0xf   : > { %v1264_v9 = vsub.s32 0, %v310_v4  ;;  %v280_v10 = vld [vmem:[%s1258_s26 + $0x80] sm:$0xff]  ;;  %v305_v11 = vcombine.high %v272_v7, %v272_v7  ;;  %v322_v13 = vcombine.high %v273_v8, %v273_v8  ;;  %v281_v15 = vld [vmem:[%s1258_s26 + $0x88] sm:$0xff] }
  0x10   : > { %v1260_v6 = vsub.s32 %v308_v5, %v310_v4  ;;  %v441_v16 = vcombine.high %v280_v10, %v280_v10  ;;  %v458_v18 = vcombine.high %v281_v15, %v281_v15  ;;  %v274_v44 = vld [vmem:[%s1258_s26 + $0x20] sm:$0xff]  ;;  %v275_v49 = vld [vmem:[%s1258_s26 + $0x28] sm:$0xff] }
  0x11   : > { %v339_v56 = vcombine.high %v274_v44, %v274_v44  ;;  %v356_v60 = vcombine.high %v275_v49, %v275_v49 }
  0x12   : > { %v312_v12 = vrot.slane %v272_v7, %v1260_v6  ;;  %v329_v14 = vrot.slane %v273_v8, %v1260_v6  ;;  %v448_v17 = vrot.slane %v280_v10, %v1260_v6  ;;  %v465_v19 = vrot.slane %v281_v15, %v1260_v6 }
  0x13   : > { %v319_v20 = vrot.slane %v305_v11, %v1260_v6  ;;  %v336_v22 = vrot.slane %v322_v13, %v1260_v6  ;;  %v455_v26 = vrot.slane %v441_v16, %v1260_v6  ;;  %v472_v35 = vrot.slane %v458_v18, %v1260_v6  ;;  %v276_v18 = vld [vmem:[%s1258_s26 + $0x40] sm:$0xff] }
  0x14   : > { %v320_v21 = vcombine.high %v312_v12, %v312_v12  ;;  %v337_v23 = vcombine.high %v329_v14, %v329_v14  ;;  %v587_v24 = vrot.slane %v312_v12, %v1264_v9  ;;  %v603_v25 = vrot.slane %v329_v14, %v1264_v9  ;;  %v282_v12 = vld [vmem:[%s1258_s26 + $0xa0] sm:$0xff] }
  0x15   : > { %v456_v27 = vcombine.high %v448_v17, %v448_v17  ;;  %v321_v28 = vcombine.high %v319_v20, %v319_v20  ;;  %v338_v29 = vcombine.high %v336_v22, %v336_v22  ;;  %v595_v31 = vrot.slane %v319_v20, %v1264_v9 }
  0x16   : > { %v591_v30 = vrot.slane %v320_v21, %v1264_v9  ;;  %v607_v32 = vrot.slane %v337_v23, %v1264_v9  ;;  %v611_v33 = vrot.slane %v336_v22, %v1264_v9  ;;  %v457_v34 = vcombine.high %v455_v26, %v455_v26 }
  0x17   : > { %v599_v36 = vrot.slane %v321_v28, %v1264_v9  ;;  %v615_v37 = vrot.slane %v338_v29, %v1264_v9  ;;  %v473_v39 = vcombine.high %v465_v19, %v465_v19  ;;  %v474_v41 = vcombine.high %v472_v35, %v472_v35 }
  0x18   : > { %v841_v38 = vsel %vm840_vm1, %v591_v30, %v587_v24  ;;  %v715_v42 = vrot.slane %v448_v17, %v1264_v9  ;;  %v719_v43 = vrot.slane %v456_v27, %v1264_v9  ;;  %v723_v46 = vrot.slane %v455_v26, %v1264_v9  ;;  %v283_v17 = vld [vmem:[%s1258_s26 + $0xa8] sm:$0xff] }
  0x19   : > { %v843_v40 = vsel %vm842_vm2, %v595_v31, %v841_v38  ;;  %v727_v47 = vrot.slane %v457_v34, %v1264_v9  ;;  %v731_v48 = vrot.slane %v465_v19, %v1264_v9  ;;  %v735_v51 = vrot.slane %v473_v39, %v1264_v9 }
  0x1a   : > { %v845_v45 = vsel %vm844_vm3, %v599_v36, %v843_v40  ;;  %v739_v52 = vrot.slane %v472_v35, %v1264_v9  ;;  %v743_v53 = vrot.slane %v474_v41, %v1264_v9  ;;  %v875_v55 = vsel %vm840_vm1, %v719_v43, %v715_v42  ;;  %v277_v43 = vld [vmem:[%s1258_s26 + $0x48] sm:$0xff] }
  0x1b   : > { %v847_v50 = vsel %vm846_vm4, %v603_v25, %v845_v45  ;;  %v346_v57 = vrot.slane %v274_v44, %v1260_v6  ;;  %v876_v59 = vsel %vm842_vm2, %v723_v46, %v875_v55  ;;  %v363_v61 = vrot.slane %v275_v49, %v1260_v6 }
  0x1c   : > { %v849_v54 = vsel %vm848_vm5, %v607_v32, %v847_v50  ;;  %v877_v63 = vsel %vm844_vm3, %v727_v47, %v876_v59  ;;  %v353_v0 = vrot.slane %v339_v56, %v1260_v6  ;;  %v370_v3 = vrot.slane %v356_v60, %v1260_v6 }
  0x1d   : > { %v851_v58 = vsel %vm850_vm6, %v611_v33, %v849_v54  ;;  %v354_v1 = vcombine.high %v346_v57, %v346_v57  ;;  %v878_v2 = vsel %vm846_vm4, %v731_v48, %v877_v63  ;;  %v371_v4 = vcombine.high %v363_v61, %v363_v61 }
  0x1e   : > { %v853_v62 = vsel %vm852_vm7, %v615_v37, %v851_v58  ;;  %v619_v5 = vrot.slane %v346_v57, %v1264_v9  ;;  %v879_v7 = vsel %vm848_vm5, %v735_v51, %v878_v2  ;;  %v355_v8 = vcombine.high %v353_v0, %v353_v0 }
  0x1f   : > { %1158 = vmatprep.mubr.msk.f32.mxu0 %vm903_vm8, %v853_v62  ;;  %v623_v10 = vrot.slane %v354_v1, %v1264_v9  ;;  %v627_v11 = vrot.slane %v353_v0, %v1264_v9  ;;  %v880_v13 = vsel %vm850_vm6, %v739_v52, %v879_v7  ;;  %v372_v14 = vcombine.high %v370_v3, %v370_v3  ;;  %v284_v0 = vld [vmem:[%s1258_s26 + $0xc0] sm:$0xff] }
  0x20   : > { %v635_v15 = vrot.slane %v363_v61, %v1264_v9  ;;  %v639_v16 = vrot.slane %v371_v4, %v1264_v9  ;;  %v881_v19 = vsel %vm852_vm7, %v743_v53, %v880_v13  ;;  %v631_v20 = vrot.slane %v355_v8, %v1264_v9 }
  0x21   : > { %v643_v21 = vrot.slane %v370_v3, %v1264_v9  ;;  %v854_v22 = vsel %vm840_vm1, %v623_v10, %v619_v5  ;;  %1164 = vmatprep.mubr.msk.f32.mxu1 %vm903_vm8, %v881_v19  ;;  %v647_v23 = vrot.slane %v372_v14, %v1264_v9  ;;  %v475_v25 = vcombine.high %v282_v12, %v282_v12  ;;  %v285_v5 = vld [vmem:[%s1258_s26 + $0xc8] sm:$0xff] }
  0x22   : > { %v855_v24 = vsel %vm842_vm2, %v627_v11, %v854_v22  ;;  %v482_v26 = vrot.slane %v282_v12, %v1260_v6  ;;  %v492_v28 = vcombine.high %v283_v17, %v283_v17  ;;  %v499_v29 = vrot.slane %v283_v17, %v1260_v6 }
  0x23   : > { %v856_v27 = vsel %vm844_vm3, %v631_v20, %v855_v24  ;;  %v373_v30 = vcombine.high %v276_v18, %v276_v18  ;;  %v489_v32 = vrot.slane %v475_v25, %v1260_v6  ;;  %v380_v50 = vrot.slane %v276_v18, %v1260_v6 }
  0x24   : > { %v857_v31 = vsel %vm846_vm4, %v635_v15, %v856_v27  ;;  %v490_v33 = vcombine.high %v482_v26, %v482_v26  ;;  %v747_v34 = vrot.slane %v482_v26, %v1264_v9  ;;  %v506_v36 = vrot.slane %v492_v28, %v1260_v6  ;;  %v278_v28 = vld [vmem:[%s1258_s26 + $0x60] sm:$0xff] }
  0x25   : > { %v858_v35 = vsel %vm848_vm5, %v639_v16, %v857_v31  ;;  %v507_v37 = vcombine.high %v499_v29, %v499_v29  ;;  %v763_v38 = vrot.slane %v499_v29, %v1264_v9  ;;  %v491_v40 = vcombine.high %v489_v32, %v489_v32 }
  0x26   : > { %v859_v39 = vsel %vm850_vm6, %v643_v21, %v858_v35  ;;  %v751_v41 = vrot.slane %v490_v33, %v1264_v9  ;;  %v755_v42 = vrot.slane %v489_v32, %v1264_v9  ;;  %v508_v45 = vcombine.high %v506_v36, %v506_v36  ;;  %v279_v33 = vld [vmem:[%s1258_s26 + $0x68] sm:$0xff] }
  0x27   : > { %v860_v44 = vsel %vm852_vm7, %v647_v23, %v859_v39  ;;  %v767_v46 = vrot.slane %v507_v37, %v1264_v9  ;;  %v771_v47 = vrot.slane %v506_v36, %v1264_v9  ;;  %v759_v48 = vrot.slane %v491_v40, %v1264_v9 }
  0x28   : > { %1159 = vmatmul.mubr.msk.f32.vlgmr.msra.gmra.mxu0 %vm903_vm8, %v860_v44  ;;  %v882_v49 = vsel %vm840_vm1, %v751_v41, %v747_v34  ;;  %v387_v51 = vrot.slane %v373_v30, %v1260_v6  ;;  %v775_v52 = vrot.slane %v508_v45, %v1264_v9  ;;  %v390_v54 = vcombine.high %v277_v43, %v277_v43 }
  0x29   : > { %v883_v53 = vsel %vm842_vm2, %v755_v42, %v882_v49  ;;  %v397_v55 = vrot.slane %v277_v43, %v1260_v6  ;;  %v388_v57 = vcombine.high %v380_v50, %v380_v50  ;;  %v651_v59 = vrot.slane %v380_v50, %v1264_v9 }
  0x2a   : > { %v884_v56 = vsel %vm844_vm3, %v759_v48, %v883_v53  ;;  %v389_v58 = vcombine.high %v387_v51, %v387_v51  ;;  %v404_v61 = vrot.slane %v390_v54, %v1260_v6  ;;  %v659_v63 = vrot.slane %v387_v51, %v1264_v9 }
  0x2b   : > { %v885_v60 = vsel %vm846_vm4, %v763_v38, %v884_v56  ;;  %v405_v62 = vcombine.high %v397_v55, %v397_v55  ;;  %v655_v2 = vrot.slane %v388_v57, %v1264_v9  ;;  %v667_v4 = vrot.slane %v397_v55, %v1264_v9  ;;  %v286_v38 = vld [vmem:[%s1258_s26 + $0xe0] sm:$0xff] }
  0x2c   : > { %v886_v1 = vsel %vm848_vm5, %v767_v46, %v885_v60  ;;  %v663_v3 = vrot.slane %v389_v58, %v1264_v9  ;;  %v406_v8 = vcombine.high %v404_v61, %v404_v61  ;;  %v675_v11 = vrot.slane %v404_v61, %v1264_v9 }
  0x2d   : > { %v887_v7 = vsel %vm850_vm6, %v771_v47, %v886_v1  ;;  %v671_v10 = vrot.slane %v405_v62, %v1264_v9  ;;  %v861_v13 = vsel %vm840_vm1, %v655_v2, %v651_v59  ;;  %v509_v14 = vcombine.high %v284_v0, %v284_v0  ;;  %v287_v62 = vld [vmem:[%s1258_s26 + $0xe8] sm:$0xff] }
  0x2e   : > { %v888_v12 = vsel %vm852_vm7, %v775_v52, %v887_v7  ;;  %v516_v15 = vrot.slane %v284_v0, %v1260_v6  ;;  %v679_v16 = vrot.slane %v406_v8, %v1264_v9  ;;  %v862_v17 = vsel %vm842_vm2, %v659_v63, %v861_v13 }
  0x2f   : > { %1165 = vmatmul.mubr.msk.f32.vlgmr.msra.gmra.mxu1 %vm903_vm8, %v888_v12  ;;  %v526_v18 = vcombine.high %v285_v5, %v285_v5  ;;  %v533_v19 = vrot.slane %v285_v5, %v1260_v6  ;;  %v863_v20 = vsel %vm844_vm3, %v663_v3, %v862_v17  ;;  %v523_v21 = vrot.slane %v509_v14, %v1260_v6 }
  0x30   : > { %v524_v22 = vcombine.high %v516_v15, %v516_v15  ;;  %v779_v23 = vrot.slane %v516_v15, %v1264_v9  ;;  %v864_v24 = vsel %vm846_vm4, %v667_v4, %v863_v20  ;;  %v407_v42 = vcombine.high %v278_v28, %v278_v28 }
  0x31   : > { %v540_v25 = vrot.slane %v526_v18, %v1260_v6  ;;  %v541_v26 = vcombine.high %v533_v19, %v533_v19  ;;  %v795_v27 = vrot.slane %v533_v19, %v1264_v9  ;;  %v865_v29 = vsel %vm848_vm5, %v671_v10, %v864_v24 }
  0x32   : > { %v525_v30 = vcombine.high %v523_v21, %v523_v21  ;;  %v783_v31 = vrot.slane %v524_v22, %v1264_v9  ;;  %v787_v32 = vrot.slane %v523_v21, %v1264_v9  ;;  %v866_v34 = vsel %vm850_vm6, %v675_v11, %v865_v29 }
  0x33   : > { %v542_v35 = vcombine.high %v540_v25, %v540_v25  ;;  %v799_v36 = vrot.slane %v541_v26, %v1264_v9  ;;  %v803_v37 = vrot.slane %v540_v25, %v1264_v9  ;;  %v867_v39 = vsel %vm852_vm7, %v679_v16, %v866_v34 }
  0x34   : > { %v791_v40 = vrot.slane %v525_v30, %v1264_v9  ;;  %v889_v41 = vsel %vm840_vm1, %v783_v31, %v779_v23  ;;  %1161 = vmatprep.mubr.msk.f32.mxu0 %vm903_vm8, %v867_v39  ;;  %v414_v45 = vrot.slane %v278_v28, %v1260_v6  ;;  %v424_v46 = vcombine.high %v279_v33, %v279_v33 }
  0x35   : > { %v807_v43 = vrot.slane %v542_v35, %v1264_v9  ;;  %v890_v44 = vsel %vm842_vm2, %v787_v32, %v889_v41  ;;  %v421_v48 = vrot.slane %v407_v42, %v1260_v6  ;;  %v431_v49 = vrot.slane %v279_v33, %v1260_v6  ;;  %v1029_v41 = vld [vmem:[%s1444_s30] sm:$0xff] }
  0x36   : > { %v891_v47 = vsel %vm844_vm3, %v791_v40, %v890_v44  ;;  %v543_v50 = vcombine.high %v286_v38, %v286_v38  ;;  %v422_v52 = vcombine.high %v414_v45, %v414_v45  ;;  %v438_v53 = vrot.slane %v424_v46, %v1260_v6  ;;  %v1034_v46 = vld [vmem:[%s1444_s30 + $0x28] sm:$0xff] }
  0x37   : > { %v892_v51 = vsel %vm846_vm4, %v795_v27, %v891_v47  ;;  %v683_v54 = vrot.slane %v414_v45, %v1264_v9  ;;  %v423_v56 = vcombine.high %v421_v48, %v421_v48  ;;  %v439_v57 = vcombine.high %v431_v49, %v431_v49 }
  0x38   : > { %v893_v55 = vsel %vm848_vm5, %v799_v36, %v892_v51  ;;  %v691_v58 = vrot.slane %v421_v48, %v1264_v9  ;;  %v440_v60 = vcombine.high %v438_v53, %v438_v53  ;;  %v687_v61 = vrot.slane %v422_v52, %v1264_v9 }
  0x39   : > { %v894_v59 = vsel %vm850_vm6, %v803_v37, %v893_v55  ;;  %v695_v0 = vrot.slane %v423_v56, %v1264_v9  ;;  %v699_v1 = vrot.slane %v431_v49, %v1264_v9  ;;  %v703_v2 = vrot.slane %v439_v57, %v1264_v9  ;;  %v1033_v49 = vld [vmem:[%s1444_s30 + $0x20] sm:$0xff]  ;;  %v1031_v57 = vld [vmem:[%s1444_s30 + $0x10] sm:$0xff] }
  0x3a   : > { %v895_v63 = vsel %vm852_vm7, %v807_v43, %v894_v59  ;;  %v707_v3 = vrot.slane %v438_v53, %v1264_v9  ;;  %v868_v4 = vsel %vm840_vm1, %v687_v61, %v683_v54  ;;  %v550_v5 = vrot.slane %v286_v38, %v1260_v6  ;;  %v1030_v38 = vld [vmem:[%s1444_s30 + $0x8] sm:$0xff]  ;;  %v1032_v54 = vld [vmem:[%s1444_s30 + $0x18] sm:$0xff] }
  0x3b   : > { %1167 = vmatprep.mubr.msk.f32.mxu1 %vm903_vm8, %v895_v63  ;;  %v557_v7 = vrot.slane %v543_v50, %v1260_v6  ;;  %v711_v8 = vrot.slane %v440_v60, %v1264_v9  ;;  %v869_v10 = vsel %vm842_vm2, %v691_v58, %v868_v4  ;;  %v560_v11 = vcombine.high %v287_v62, %v287_v62 }
  0x3c   : > { %v567_v12 = vrot.slane %v287_v62, %v1260_v6  ;;  %v870_v13 = vsel %vm844_vm3, %v695_v0, %v869_v10  ;;  %v558_v14 = vcombine.high %v550_v5, %v550_v5  ;;  %v811_v16 = vrot.slane %v550_v5, %v1264_v9  ;;  %v1036_v62 = vld [vmem:[%s1444_s30 + $0x38] sm:$0xff] }
  0x3d   : > { %v559_v15 = vcombine.high %v557_v7, %v557_v7  ;;  %v871_v17 = vsel %vm846_vm4, %v699_v1, %v870_v13  ;;  %v574_v18 = vrot.slane %v560_v11, %v1260_v6  ;;  %v819_v20 = vrot.slane %v557_v7, %v1264_v9  ;;  %v1035_v1 = vld [vmem:[%s1444_s30 + $0x30] sm:$0xff] }
  0x3e   : > { %v575_v19 = vcombine.high %v567_v12, %v567_v12  ;;  %v872_v21 = vsel %vm848_vm5, %v703_v2, %v871_v17  ;;  %v815_v22 = vrot.slane %v558_v14, %v1264_v9  ;;  %v827_v26 = vrot.slane %v567_v12, %v1264_v9 }
  0x3f   : > { %v823_v23 = vrot.slane %v559_v15, %v1264_v9  ;;  %v873_v24 = vsel %vm850_vm6, %v707_v3, %v872_v21  ;;  %v576_v25 = vcombine.high %v574_v18, %v574_v18  ;;  %v835_v29 = vrot.slane %v574_v18, %v1264_v9 }
  0x40   : > { %v874_v27 = vsel %vm852_vm7, %v711_v8, %v873_v24  ;;  %v831_v28 = vrot.slane %v575_v19, %v1264_v9  ;;  %v896_v6 = vsel %vm840_vm1, %v815_v22, %v811_v16 }
  0x41   : > { %1162 = vmatmul.mubr.msk.f32.gmra.mxu0 %vm903_vm8, %v874_v27  ;;  %v897_v30 = vsel %vm842_vm2, %v819_v20, %v896_v6  ;;  %v839_v31 = vrot.slane %v576_v25, %v1264_v9  ;;  %v1132_v9 = vld [vmem:[%s1485_s4] ss:$0 sm:$0xff] }
  0x42   : > { %v898_v32 = vsel %vm844_vm3, %v823_v23, %v897_v30 }
  0x43   : > { %v899_v33 = vsel %vm846_vm4, %v827_v26, %v898_v32 }
  0x44   : > { %v900_v34 = vsel %vm848_vm5, %v831_v28, %v899_v33 }
  0x45   : > { %v901_v35 = vsel %vm850_vm6, %v835_v29, %v900_v34 }
  0x46   : > { %v902_v36 = vsel %vm852_vm7, %v839_v31, %v901_v35 }
  0x47   : > { %1168 = vmatmul.mubr.msk.f32.gmra.mxu1 %vm903_vm8, %v902_v36 }
  0xe8   : > { %v1160_v37 = vpop.f32.mrf.mxu0 }
  0xe9   : > { %v996_v39 = vadd.f32 %v1160_v37, %v1132_v9 }
  0xea   : > { %v990_v40 = vpop.f32.mrf.mxu0 }
  0xeb   : > { %v1038_v42 = vadd.f32 %v1030_v38, %v996_v39  ;;  %v991_v43 = vadd.f32 %v1132_v9, %v990_v40 }
  0xed   : > { %1047 = vst.msk [vmem:[%s1453_s11 + $0x8] sm:$0xff] %vm1045_vm9, %v1038_v42  ;;  %v1037_v44 = vadd.f32 %v1029_v41, %v991_v43 }
  0xef   : > { %v1166_v45 = vpop.f32.mrf.mxu1  ;;  %1046 = vst.msk [vmem:[%s1453_s11] sm:$0xff] %vm1045_vm9, %v1037_v44 }
  0xf0   : > { %v1016_v47 = vadd.f32 %v1166_v45, %v1132_v9 }
  0xf1   : > { %v1010_v48 = vpop.f32.mrf.mxu1 }
  0xf2   : > { %v1042_v50 = vadd.f32 %v1034_v46, %v1016_v47  ;;  %v1011_v51 = vadd.f32 %v1132_v9, %v1010_v48 }
  0xf4   : > { %1051 = vst.msk [vmem:[%s1453_s11 + $0x28] sm:$0xff] %vm1045_vm9, %v1042_v50  ;;  %v1041_v52 = vadd.f32 %v1033_v49, %v1011_v51 }
  0xf6   : > { %1050 = vst.msk [vmem:[%s1453_s11 + $0x20] sm:$0xff] %vm1045_vm9, %v1041_v52 }
 0x101   : > { %v1163_v53 = vpop.f32.mrf.mxu0 }
 0x102   : > { %v1006_v55 = vadd.f32 %v1163_v53, %v1132_v9 }
 0x103   : > { %v1000_v56 = vpop.f32.mrf.mxu0 }
 0x104   : > { %v1040_v58 = vadd.f32 %v1032_v54, %v1006_v55  ;;  %v1001_v59 = vadd.f32 %v1132_v9, %v1000_v56 }
 0x106   : > { %1049 = vst.msk [vmem:[%s1453_s11 + $0x18] sm:$0xff] %vm1045_vm9, %v1040_v58  ;;  %v1039_v60 = vadd.f32 %v1031_v57, %v1001_v59 }
 0x107   : > { %v1169_v61 = vpop.f32.mrf.mxu1 }
 0x108   : > { %v1026_v63 = vadd.f32 %v1169_v61, %v1132_v9  ;;  %1048 = vst.msk [vmem:[%s1453_s11 + $0x10] sm:$0xff] %vm1045_vm9, %v1039_v60 }
 0x109   : > { %v1020_v0 = vpop.f32.mrf.mxu1 }
 0x10a   : > { %v1044_v2 = vadd.f32 %v1036_v62, %v1026_v63  ;;  %v1021_v3 = vadd.f32 %v1132_v9, %v1020_v0 }
 0x10c   : > { %1053 = vst.msk [vmem:[%s1453_s11 + $0x38] sm:$0xff] %vm1045_vm9, %v1044_v2  ;;  %v1043_v4 = vadd.f32 %v1035_v1, %v1021_v3 }
 0x10e   : > { %1052 = vst.msk [vmem:[%s1453_s11 + $0x30] sm:$0xff] %vm1045_vm9, %v1043_v4 }
 0x10f PF: > { %s16_s21 = sadd.s32 1, %s1203_s21  }
 0x110   : > { %p13_p4 = scmp.ge.s32.totalorder %s16_s21, 4  }
 0x112   :  { %15 = sbr.rel (!%p13_p4) target bundleno = 1 (0x1), region = 77 }

// kernel: _lambda_.12
= control target key start
LH: loop header
LB: loop body
LE: loop exit
PB: predicated region body
PF: predicated region fallthrough
CT: control target
= control target key end

     0   :  { %s1935_s18 = smov 0   ;;  %s2360_s0 = inlined_call_operand.vmem [shape: f32[1,8], index: 0, kind: input, shape index: {}]   ;;  %s2361_s1 = inlined_call_operand.vmem [shape: f32[1,8], index: 1, kind: input, shape index: {}]   ;;  %s2362_s2 = inlined_call_operand.vmem [shape: f32[2,10,10,8], index: 2, kind: input, shape index: {}]   ;;  %s2363_s3 = inlined_call_operand.vmem [shape: f32[9,8,8], index: 3, kind: input, shape index: {}]   ;;  %s2364_s4 = inlined_call_operand.vmem [shape: f32[1,8], index: 4, kind: input, shape index: {}]   ;;  %s2365_s5 = inlined_call_operand.vmem [shape: f32[2,8,8,8], index: 5, kind: output, shape index: {}]  }
   0x1 LB: > { %s1593_s19 = sadd.s32 4294967295, %s1902_s18   ;;  %p1597_p0 = scmp.ge.s32.totalorder %s1902_s18, 1  ;;  %s1902_s18 = sphi %s1935_s18, %s15_s18  }
   0x2   : > { %p187_p1 = scmp.lt.s32.totalorder %s1902_s18, 3 }
   0x4   : > { %p188_p2 = pnand %p1597_p0, %p187_p1 }
   0x5   : > { %p215_p3 = scmp.lt.s32.totalorder (!%p188_p2), %s1593_s19, 1 }
   0x6   : > { %191 = sbr.rel (%p188_p2) target bundleno = 306 (0x132), region = 40 }
   0xb   : > { %v246_v0 = vld [vmem:[%s2363_s3 + $0x8] sm:$0xff]  ;;  %vm412_vm0 = vcmask 64512   ;;  %v328_v1 = vlaneseq  ;;  %v1904_v2 = vmov 0.0   ;;  %v1952_v4 = vld [vmem:[%s2363_s3] sm:$0xff]  ;;  %v1957_v5 = vld [vmem:[%s2363_s3 + $0x10] sm:$0xff]  ;;  %s2367_s19 = smov (!%p215_p3, %s1593_s19), 1 }
   0xc   : > { %1884 = vmatprep.subr.mxu1 %v246_v0  ;;  %1758 = vmatprep.subr.mxu0 %v246_v0  ;;  %v1947_v3 = vrot.slane %v1904_v2, 1  ;;  %s1886_s26 = smul.u32 160, %s2367_s19  ;;  %v1971_v7 = vld [vmem:[%s2360_s0] ss:$0 sm:$0xff]  ;;  %vm387_vm1 = vcmask 1046528   ;;  %vm655_vm4 = vcmask 1045504  }
   0xd   : > { %1885 = vmatpush3.msra.mxu1 %v246_v0  ;;  %1759 = vmatpush3.msra.mxu0 %v246_v0  ;;  %v1961_v6 = vshrl.u32 %v328_v1, 7  ;;  %v1984_v9 = vld [vmem:[%s2361_s1] ss:$0 sm:$0xff]  ;;  %s1676_s23 = sshll.u32 %s2367_s19, 6 }
   0xe   : > { %1760 = vmatprep.mubr.msk.f32.mxu0 %vm412_vm0, %v1947_v3  ;;  %1772 = vmatprep.subr.mxu1 %v1952_v4  ;;  %s1979_s6 = scalar_lea.vmem %s2362_s2, %s1886_s26  ;;  %v2065_v1 = vld [vmem:[%s2363_s3 + $0x20] sm:$0xff]  ;;  %s2337_s28 = scalar_lea.vmem %s2365_s5, %s1676_s23 }
   0xf   : > { %1786 = vmatprep.subr.mxu0 %v1957_v5  ;;  %v1974_v8 = vadd.s32 8, %v1961_v6  ;;  %v233_v10 = vld [vmem:[%s1979_s6 + $0x40] sm:$0xff]  ;;  %v234_v11 = vld [vmem:[%s1979_s6 + $0x48] sm:$0x3]  ;;  %v227_v12 = vld [vmem:[%s1979_s6 + $0x10] sm:$0xff]  ;;  %vm331_vm2 = vcmp.ge.s32.totalorder %v1961_v6, 1 }
  0x10   : > { %v269_v13 = vmul.f32 %v1971_v7, %v233_v10  ;;  %v270_v14 = vmul.f32 %v1971_v7, %v234_v11  ;;  %v228_v15 = vld [vmem:[%s1979_s6 + $0x18] sm:$0x3]  ;;  %v263_v16 = vmul.f32 %v1971_v7, %v227_v12  ;;  %v235_v17 = vld [vmem:[%s1979_s6 + $0x50] sm:$0xff]  ;;  %v229_v22 = vld [vmem:[%s1979_s6 + $0x20] sm:$0xff] }
  0x11   : > { %v236_v18 = vld [vmem:[%s1979_s6 + $0x58] sm:$0x3]  ;;  %vm338_vm3 = vcmp.lt.s32.totalorder %v1974_v8, 9  ;;  %v264_v19 = vmul.f32 %v1971_v7, %v228_v15  ;;  %v271_v20 = vmul.f32 %v1971_v7, %v235_v17  ;;  %v230_v23 = vld [vmem:[%s1979_s6 + $0x28] sm:$0x3]  ;;  %v265_v27 = vmul.f32 %v1971_v7, %v229_v22  ;;  %v237_v44 = vld [vmem:[%s1979_s6 + $0x60] sm:$0xff] }
  0x12   : > { %v272_v21 = vmul.f32 %v1971_v7, %v236_v18  ;;  %v296_v24 = vadd.f32 %v1984_v9, %v269_v13  ;;  %v297_v25 = vadd.f32 %v1984_v9, %v270_v14  ;;  %v290_v26 = vadd.f32 %v1984_v9, %v263_v16  ;;  %v238_v49 = vld [vmem:[%s1979_s6 + $0x68] sm:$0x3]  ;;  %v231_v53 = vld [vmem:[%s1979_s6 + $0x30] sm:$0xff]  ;;  %v232_v58 = vld [vmem:[%s1979_s6 + $0x38] sm:$0x3] }
  0x13   : > { %v291_v28 = vadd.f32 %v1984_v9, %v264_v19  ;;  %v298_v29 = vadd.f32 %v1984_v9, %v271_v20  ;;  %v266_v31 = vmul.f32 %v1971_v7, %v230_v23  ;;  %v292_v35 = vadd.f32 %v1984_v9, %v265_v27  ;;  %v239_v63 = vld [vmem:[%s1979_s6 + $0x70] sm:$0xff]  ;;  %v240_v0 = vld [vmem:[%s1979_s6 + $0x78] sm:$0x3] }
  0x14   : > { %v299_v30 = vadd.f32 %v1984_v9, %v272_v21  ;;  %v316_v32 = vmax.f32 %v296_v24, 0.0  ;;  %v317_v33 = vmax.f32 %v297_v25, 0.0  ;;  %v310_v34 = vmax.f32 %v290_v26, 0.0  ;;  %v2079_v14 = vld [vmem:[%s2363_s3 + $0x18] sm:$0xff] }
  0x15   : > { %v311_v36 = vmax.f32 %v291_v28, 0.0  ;;  %v318_v37 = vmax.f32 %v298_v29, 0.0  ;;  %v293_v39 = vadd.f32 %v1984_v9, %v266_v31  ;;  %v312_v43 = vmax.f32 %v292_v35, 0.0 }
  0x16   : > { %v319_v38 = vmax.f32 %v299_v30, 0.0  ;;  %v2014_v40 = vsel %vm331_vm2, %v316_v32, 0.0  ;;  %v2018_v41 = vsel %vm338_vm3, %v317_v33, 0.0  ;;  %v2022_v42 = vsel %vm331_vm2, %v310_v34, 0.0 }
  0x17   : > { %v400_v45 = vrot.slane %v2014_v40, 1  ;;  %v401_v46 = vrot.slane %v2018_v41, 1  ;;  %v2029_v47 = vsel %vm338_vm3, %v311_v36, 0.0  ;;  %v391_v48 = vrot.slane %v2022_v42, 1 }
  0x18   : > { %v392_v50 = vrot.slane %v2029_v47, 1  ;;  %v2036_v51 = vsel %vm331_vm2, %v318_v37, 0.0  ;;  %v2040_v52 = vsel %vm338_vm3, %v319_v38, 0.0  ;;  %v313_v57 = vmax.f32 %v293_v39, 0.0 }
  0x19   : > { %v2044_v54 = vsel %vm387_vm1, %v400_v45, %v401_v46  ;;  %v403_v55 = vrot.slane %v2036_v51, 1  ;;  %v404_v56 = vrot.slane %v2040_v52, 1  ;;  %v2056_v60 = vsel %vm331_vm2, %v312_v43, 0.0 }
  0x1a   : > { %1766 = vmatprep.mubr.msk.f32.mxu1 %vm412_vm0, %v2044_v54  ;;  %v2052_v59 = vsel %vm387_vm1, %v391_v48, %v392_v50  ;;  %v273_v61 = vmul.f32 %v1971_v7, %v237_v44  ;;  %v274_v62 = vmul.f32 %v1971_v7, %v238_v49  ;;  %v356_v11 = vsel %vm338_vm3, %v313_v57, 0.0 }
  0x1b   : > { %1761 = vmatmul.mubr.msk.f32.vlgmr.msra.gmra.mxu0 %vm412_vm0, %v2052_v59  ;;  %v2070_v10 = vsel %vm387_vm1, %v403_v55, %v404_v56  ;;  %v394_v12 = vrot.slane %v2056_v60, 1  ;;  %v267_v13 = vmul.f32 %v1971_v7, %v231_v53  ;;  %v395_v15 = vrot.slane %v356_v11, 1 }
  0x1c   : > { %1767 = vmatmul.mubr.msk.f32.vlgmr.msra.gmra.mxu1 %vm412_vm0, %v2070_v10  ;;  %1787 = vmatpush3.msra.mxu0 %v1957_v5  ;;  %v300_v16 = vadd.f32 %v1984_v9, %v273_v61  ;;  %v301_v17 = vadd.f32 %v1984_v9, %v274_v62  ;;  %v268_v18 = vmul.f32 %v1971_v7, %v232_v58  ;;  %v2102_v27 = vrot.slane %v1904_v2, 2 }
  0x1d   : > { %1773 = vmatpush3.msra.mxu1 %v1952_v4  ;;  %v294_v19 = vadd.f32 %v1984_v9, %v267_v13  ;;  %v275_v20 = vmul.f32 %v1971_v7, %v239_v63  ;;  %v276_v21 = vmul.f32 %v1971_v7, %v240_v0  ;;  %1814 = vmatprep.subr.mxu0 %v2065_v1  ;;  %v660_v35 = vrot.slane %v2029_v47, 2  ;;  %v251_v0 = vld [vmem:[%s2363_s3 + $0x30] sm:$0xff]  ;;  %v250_v13 = vld [vmem:[%s2363_s3 + $0x28] sm:$0xff] }
  0x1e   : > { %v2093_v22 = vsel %vm387_vm1, %v394_v12, %v395_v15  ;;  %v320_v5 = vmax.f32 %v300_v16, 0.0  ;;  %v321_v23 = vmax.f32 %v301_v17, 0.0  ;;  %v295_v24 = vadd.f32 %v1984_v9, %v268_v18  ;;  %1800 = vmatprep.subr.mxu1 %v2079_v14  ;;  %v242_v17 = vld [vmem:[%s1979_s6 + $0x88] sm:$0x3] }
  0x1f   : > { %1763 = vmatprep.mubr.msk.f32.mxu0 %vm412_vm0, %v2093_v22  ;;  %v314_v4 = vmax.f32 %v294_v19, 0.0  ;;  %v302_v25 = vadd.f32 %v1984_v9, %v275_v20  ;;  %v303_v26 = vadd.f32 %v1984_v9, %v276_v21  ;;  %v659_v45 = vrot.slane %v2022_v42, 2 }
  0x20   : > { %v2106_v28 = vsel %vm331_vm2, %v320_v5, 0.0  ;;  %v364_v29 = vsel %vm338_vm3, %v321_v23, 0.0  ;;  %v315_v30 = vmax.f32 %v295_v24, 0.0  ;;  %v662_v48 = vrot.slane %v2056_v60, 2 }
  0x21   : > { %v406_v31 = vrot.slane %v2106_v28, 1  ;;  %v407_v32 = vrot.slane %v364_v29, 1  ;;  %v2113_v33 = vsel %vm331_vm2, %v314_v4, 0.0  ;;  %v322_v34 = vmax.f32 %v302_v25, 0.0 }
  0x22   : > { %v358_v36 = vsel %vm338_vm3, %v315_v30, 0.0  ;;  %v397_v37 = vrot.slane %v2113_v33, 1  ;;  %v323_v38 = vmax.f32 %v303_v26, 0.0  ;;  %v663_v49 = vrot.slane %v356_v11, 2 }
  0x23   : > { %v2120_v39 = vsel %vm387_vm1, %v406_v31, %v407_v32  ;;  %v398_v43 = vrot.slane %v358_v36, 1  ;;  %v2124_v44 = vsel %vm331_vm2, %v322_v34, 0.0  ;;  %v2144_v56 = vsel %vm655_vm4, %v659_v45, %v660_v35 }
  0x24   : > { %1769 = vmatprep.mubr.msk.f32.mxu1 %vm412_vm0, %v2120_v39  ;;  %v366_v46 = vsel %vm338_vm3, %v323_v38, 0.0  ;;  %v409_v47 = vrot.slane %v2124_v44, 1  ;;  %v665_v57 = vrot.slane %v2113_v33, 2  ;;  %v666_v58 = vrot.slane %v358_v36, 2 }
  0x25   : > { %v2134_v50 = vsel %vm387_vm1, %v397_v37, %v398_v43  ;;  %v410_v53 = vrot.slane %v366_v46, 1  ;;  %v2150_v61 = vsel %vm655_vm4, %v662_v48, %v663_v49  ;;  %v668_v62 = vrot.slane %v2014_v40, 2 }
  0x26   : > { %1764 = vmatmul.mubr.msk.f32.gmra.mxu0 %vm412_vm0, %v2134_v50  ;;  %v669_v63 = vrot.slane %v2018_v41, 2  ;;  %v2164_v11 = vsel %vm655_vm4, %v665_v57, %v666_v58  ;;  %v671_v41 = vrot.slane %v2036_v51, 2  ;;  %v672_v12 = vrot.slane %v2040_v52, 2  ;;  %v241_v52 = vld [vmem:[%s1979_s6 + $0x80] sm:$0xff] }
  0x27   : > { %v2139_v55 = vsel %vm387_vm1, %v409_v47, %v410_v53  ;;  %1788 = vmatprep.mubr.msk.f32.mxu0 %vm412_vm0, %v2102_v27  ;;  %v675_v16 = vrot.slane %v364_v29, 2  ;;  %v677_v19 = vrot.slane %v2124_v44, 2  ;;  %v678_v20 = vrot.slane %v366_v46, 2 }
  0x28   : > { %1770 = vmatmul.mubr.msk.f32.gmra.mxu1 %vm412_vm0, %v2139_v55  ;;  %v2174_v15 = vsel %vm655_vm4, %v668_v62, %v669_v63  ;;  %v2187_v18 = vsel %vm655_vm4, %v671_v41, %v672_v12  ;;  %v277_v21 = vmul.f32 %v1971_v7, %v241_v52  ;;  %v278_v5 = vmul.f32 %v1971_v7, %v242_v17 }
  0x29   : > { %1774 = vmatprep.mubr.f32.mxu1 %v1904_v2  ;;  %v2204_v23 = vsel %vm655_vm4, %v677_v19, %v678_v20 }
  0x2a   : > { %1789 = vmatmul.mubr.msk.f32.vlgmr.msra.gmra.mxu0 %vm412_vm0, %v2144_v56  ;;  %v304_v24 = vadd.f32 %v1984_v9, %v277_v21  ;;  %v305_v4 = vadd.f32 %v1984_v9, %v278_v5  ;;  %v253_v9 = vld [vmem:[%s2363_s3 + $0x40] sm:$0xff] }
  0x2b   : > { %1815 = vmatpush3.msra.mxu0 %v2065_v1  ;;  %1791 = vmatprep.mubr.msk.f32.mxu0 %vm412_vm0, %v2150_v61  ;;  %v674_v1 = vrot.slane %v2106_v28, 2 }
  0x2c   : > { %1775 = vmatmul.mubr.msk.f32.vlgmr.msra.gmra.mxu1 %vm412_vm0, %v2022_v42  ;;  %1842 = vmatprep.subr.mxu0 %v251_v0  ;;  %v324_v7 = vmax.f32 %v304_v24, 0.0  ;;  %v325_v25 = vmax.f32 %v305_v4, 0.0 }
  0x2d   : > { %1801 = vmatpush3.msra.mxu1 %v2079_v14  ;;  %1777 = vmatprep.mubr.msk.f32.mxu1 %vm412_vm0, %v2056_v60  ;;  %v2193_v14 = vsel %vm655_vm4, %v674_v1, %v675_v16 }
  0x2e   : > { %1792 = vmatmul.mubr.msk.f32.gmra.mxu0 %vm412_vm0, %v2164_v11  ;;  %1828 = vmatprep.subr.mxu1 %v250_v13  ;;  %v368_v26 = vsel %vm338_vm3, %v325_v25, 0.0 }
  0x2f   : > { %1794 = vmatprep.mubr.msk.f32.mxu0 %vm412_vm0, %v2174_v15  ;;  %v927_v30 = vrot.slane %v368_v26, 1 }
  0x30   : > { %1778 = vmatmul.mubr.msk.f32.gmra.mxu1 %vm412_vm0, %v2113_v33 }
  0x31   : > { %1780 = vmatprep.mubr.msk.f32.mxu1 %vm412_vm0, %v2014_v40 }
  0x32   : > { %1795 = vmatmul.mubr.msk.f32.gmra.mxu0 %vm412_vm0, %v2187_v18 }
  0x33   : > { %1797 = vmatprep.mubr.msk.f32.mxu0 %vm412_vm0, %v2193_v14 }
  0x34   : > { %1781 = vmatmul.mubr.msk.f32.gmra.mxu1 %vm412_vm0, %v2036_v51 }
  0x35   : > { %1783 = vmatprep.mubr.msk.f32.mxu1 %vm412_vm0, %v2106_v28 }
  0x36   : > { %1798 = vmatmul.mubr.msk.f32.gmra.mxu0 %vm412_vm0, %v2204_v23 }
  0x37   : > { %1816 = vmatprep.mubr.msk.f32.mxu0 %vm412_vm0, %v2052_v59  ;;  %v252_v59 = vld [vmem:[%s2363_s3 + $0x38] sm:$0xff] }
  0x38   : > { %1784 = vmatmul.mubr.msk.f32.gmra.mxu1 %vm412_vm0, %v2124_v44 }
  0x39   : > { %1802 = vmatprep.mubr.msk.f32.mxu1 %vm412_vm0, %v2022_v42  ;;  %v367_v42 = vsel %vm331_vm2, %v324_v7, 0.0 }
  0x3a   : > { %1817 = vmatmul.mubr.msk.f32.vlgmr.msra.gmra.mxu0 %vm412_vm0, %v2093_v22  ;;  %v926_v29 = vrot.slane %v367_v42, 1  ;;  %v1044_v8 = vrot.slane %v367_v42, 2 }
  0x3b   : > { %1843 = vmatpush3.msra.mxu0 %v251_v0  ;;  %1819 = vmatprep.mubr.msk.f32.mxu0 %vm412_vm0, %v2134_v50 }
  0x3c   : > { %1803 = vmatmul.mubr.msk.f32.vlgmr.msra.gmra.mxu1 %vm412_vm0, %v2056_v60  ;;  %1870 = vmatprep.subr.mxu0 %v253_v9  ;;  %v928_v6 = vsel %vm387_vm1, %v926_v29, %v927_v30 }
  0x3d   : > { %1829 = vmatpush3.msra.mxu1 %v250_v13  ;;  %1805 = vmatprep.mubr.msk.f32.mxu1 %vm412_vm0, %v2113_v33 }
  0x3e   : > { %1820 = vmatmul.mubr.msk.f32.gmra.mxu0 %vm412_vm0, %v2044_v54  ;;  %1856 = vmatprep.subr.mxu1 %v252_v59 }
  0x3f   : > { %1822 = vmatprep.mubr.msk.f32.mxu0 %vm412_vm0, %v2070_v10 }
  0x40   : > { %1806 = vmatmul.mubr.msk.f32.gmra.mxu1 %vm412_vm0, %v2014_v40 }
  0x41   : > { %1808 = vmatprep.mubr.msk.f32.mxu1 %vm412_vm0, %v2036_v51 }
  0x42   : > { %1823 = vmatmul.mubr.msk.f32.gmra.mxu0 %vm412_vm0, %v2120_v39 }
  0x43   : > { %1825 = vmatprep.mubr.msk.f32.mxu0 %vm412_vm0, %v2139_v55 }
  0x44   : > { %1809 = vmatmul.mubr.msk.f32.gmra.mxu1 %vm412_vm0, %v2106_v28 }
  0x45   : > { %1811 = vmatprep.mubr.msk.f32.mxu1 %vm412_vm0, %v2124_v44 }
  0x46   : > { %1826 = vmatmul.mubr.msk.f32.gmra.mxu0 %vm412_vm0, %v928_v6 }
  0x47   : > { %1844 = vmatprep.mubr.msk.f32.mxu0 %vm412_vm0, %v2056_v60 }
  0x48   : > { %1812 = vmatmul.mubr.msk.f32.gmra.mxu1 %vm412_vm0, %v367_v42 }
  0x49   : > { %1830 = vmatprep.mubr.msk.f32.mxu1 %vm412_vm0, %v2144_v56 }
  0x4a   : > { %1845 = vmatmul.mubr.msk.f32.vlgmr.msra.gmra.mxu0 %vm412_vm0, %v2113_v33 }
  0x4b   : > { %1871 = vmatpush3.msra.mxu0 %v253_v9  ;;  %1847 = vmatprep.mubr.msk.f32.mxu0 %vm412_vm0, %v2014_v40  ;;  %v1045_v40 = vrot.slane %v368_v26, 2 }
  0x4c   : > { %1831 = vmatmul.mubr.msk.f32.vlgmr.msra.gmra.mxu1 %vm412_vm0, %v2150_v61 }
  0x4d   : > { %1857 = vmatpush3.msra.mxu1 %v252_v59  ;;  %1833 = vmatprep.mubr.msk.f32.mxu1 %vm412_vm0, %v2164_v11 }
  0x4e   : > { %1848 = vmatmul.mubr.msk.f32.gmra.mxu0 %vm412_vm0, %v2036_v51  ;;  %v1046_v51 = vsel %vm655_vm4, %v1044_v8, %v1045_v40 }
  0x4f   : > { %1850 = vmatprep.mubr.msk.f32.mxu0 %vm412_vm0, %v2106_v28 }
  0x50   : > { %1834 = vmatmul.mubr.msk.f32.gmra.mxu1 %vm412_vm0, %v2174_v15 }
  0x51   : > { %1836 = vmatprep.mubr.msk.f32.mxu1 %vm412_vm0, %v2187_v18 }
  0x52   : > { %1851 = vmatmul.mubr.msk.f32.gmra.mxu0 %vm412_vm0, %v2124_v44 }
  0x53   : > { %1853 = vmatprep.mubr.msk.f32.mxu0 %vm412_vm0, %v367_v42 }
  0x54   : > { %1837 = vmatmul.mubr.msk.f32.gmra.mxu1 %vm412_vm0, %v2193_v14 }
  0x55   : > { %1839 = vmatprep.mubr.msk.f32.mxu1 %vm412_vm0, %v2204_v23 }
  0x56   : > { %1854 = vmatmul.mubr.f32.gmra.mxu0 %v1904_v2 }
  0x57   : > { %1872 = vmatprep.mubr.msk.f32.mxu0 %vm412_vm0, %v2150_v61 }
  0x58   : > { %1840 = vmatmul.mubr.msk.f32.gmra.mxu1 %vm412_vm0, %v1046_v51 }
  0x59   : > { %1858 = vmatprep.mubr.msk.f32.mxu1 %vm412_vm0, %v2093_v22 }
  0x5a   : > { %1873 = vmatmul.mubr.msk.f32.vlgmr.msra.gmra.mxu0 %vm412_vm0, %v2164_v11 }
  0x5b   : > { %1875 = vmatprep.mubr.msk.f32.mxu0 %vm412_vm0, %v2174_v15 }
  0x5c   : > { %1859 = vmatmul.mubr.msk.f32.vlgmr.msra.gmra.mxu1 %vm412_vm0, %v2134_v50 }
  0x5d   : > { %1861 = vmatprep.mubr.msk.f32.mxu1 %vm412_vm0, %v2044_v54 }
  0x5e   : > { %1876 = vmatmul.mubr.msk.f32.gmra.mxu0 %vm412_vm0, %v2187_v18 }
  0x5f   : > { %1878 = vmatprep.mubr.msk.f32.mxu0 %vm412_vm0, %v2193_v14 }
  0x60   : > { %1862 = vmatmul.mubr.msk.f32.gmra.mxu1 %vm412_vm0, %v2070_v10 }
  0x61   : > { %1864 = vmatprep.mubr.msk.f32.mxu1 %vm412_vm0, %v2120_v39 }
  0x62   : > { %1879 = vmatmul.mubr.msk.f32.gmra.mxu0 %vm412_vm0, %v2204_v23 }
  0x63   : > { %1881 = vmatprep.mubr.msk.f32.mxu0 %vm412_vm0, %v1046_v51 }
  0x64   : > { %1865 = vmatmul.mubr.msk.f32.gmra.mxu1 %vm412_vm0, %v2139_v55 }
  0x65   : > { %1867 = vmatprep.mubr.msk.f32.mxu1 %vm412_vm0, %v928_v6 }
  0x66   : > { %1882 = vmatmul.mubr.msk.f32.gmra.mxu0 %vm412_vm0, %v2102_v27 }
  0x68   : > { %1868 = vmatmul.mubr.msk.f32.gmra.mxu1 %vm412_vm0, %v1947_v3 }
  0xdb   : > { %v1762_v2 = vpop.f32.mrf.mxu0 }
  0xdc   : > { %v1768_v54 = vpop.f32.mrf.mxu1 }
  0xdd   : > { %v495_v60 = vpop.f32.mrf.mxu0 }
  0xde   : > { %v515_v10 = vpop.f32.mrf.mxu1 }
  0xe6   : > { %v1765_v22 = vpop.f32.mrf.mxu0 }
  0xe8   : > { %v1771_v28 = vpop.f32.mrf.mxu1  ;;  %v505_v31 = vpop.f32.mrf.mxu0 }
  0xea   : > { %v2317_v32 = vpop.f32.mrf.mxu1  ;;  %v1790_v33 = vpop.f32.mrf.mxu0 }
  0xec   : > { %v1776_v34 = vpop.f32.mrf.mxu1  ;;  %v762_v35 = vpop.f32.mrf.mxu0 }
  0xed   : > { %v622_v52 = vadd.f32 %v1776_v34, %v1762_v2 }
  0xee   : > { %v616_v36 = vpop.f32.mrf.mxu1  ;;  %v1793_v37 = vpop.f32.mrf.mxu0 }
  0xef   : > { %v617_v19 = vadd.f32 %v616_v36, %v495_v60  ;;  %v802_v21 = vadd.f32 %v1790_v33, %v622_v52 }
  0xf0   : > { %v1779_v38 = vpop.f32.mrf.mxu1  ;;  %v772_v39 = vpop.f32.mrf.mxu0 }
  0xf1   : > { %v632_v5 = vadd.f32 %v1779_v38, %v1765_v22  ;;  %v801_v4 = vadd.f32 %v762_v35, %v617_v19 }
  0xf2   : > { %v626_v27 = vpop.f32.mrf.mxu1  ;;  %v1796_v43 = vpop.f32.mrf.mxu0 }
  0xf3   : > { %v627_v7 = vadd.f32 %v626_v27, %v505_v31  ;;  %v804_v26 = vadd.f32 %v1793_v37, %v632_v5 }
  0xf4   : > { %v1782_v44 = vpop.f32.mrf.mxu1  ;;  %v782_v3 = vpop.f32.mrf.mxu0 }
  0xf5   : > { %v642_v9 = vadd.f32 %v1782_v44, %v1768_v54  ;;  %v803_v40 = vadd.f32 %v772_v39, %v627_v7 }
  0xf6   : > { %v636_v45 = vpop.f32.mrf.mxu1  ;;  %v1799_v46 = vpop.f32.mrf.mxu0 }
  0xf7   : > { %v637_v30 = vadd.f32 %v636_v45, %v515_v10  ;;  %v806_v60 = vadd.f32 %v1796_v43, %v642_v9 }
  0xf8   : > { %v1785_v47 = vpop.f32.mrf.mxu1  ;;  %v2319_v48 = vpop.f32.mrf.mxu0 }
  0xf9   : > { %v652_v34 = vadd.f32 %v1785_v47, %v1771_v28  ;;  %v805_v38 = vadd.f32 %v782_v3, %v637_v30 }
  0xfa   : > { %v646_v49 = vpop.f32.mrf.mxu1  ;;  %v1818_v50 = vpop.f32.mrf.mxu0 }
  0xfb   : > { %v647_v54 = vadd.f32 %v646_v49, %v2317_v32  ;;  %v808_v39 = vadd.f32 %v1799_v46, %v652_v34  ;;  %v1673_v46 = vld [vmem:[%s2364_s4] ss:$0 sm:$0xff] }
  0xfc   : > { %v1804_v53 = vpop.f32.mrf.mxu1  ;;  %v997_v55 = vpop.f32.mrf.mxu0 }
  0xfd   : > { %v918_v25 = vadd.f32 %v1804_v53, %v802_v21 }
  0xfe   : > { %v878_v56 = vpop.f32.mrf.mxu1  ;;  %v1821_v57 = vpop.f32.mrf.mxu0 }
  0xff   : > { %v917_v29 = vadd.f32 %v878_v56, %v801_v4  ;;  %v1037_v51 = vadd.f32 %v1818_v50, %v918_v25 }
 0x100   : > { %v1807_v58 = vpop.f32.mrf.mxu1  ;;  %v1007_v61 = vpop.f32.mrf.mxu0 }
 0x101   : > { %v920_v2 = vadd.f32 %v1807_v58, %v804_v26  ;;  %v1036_v36 = vadd.f32 %v997_v55, %v917_v29  ;;  %v807_v55 = vadd.f32 %v2319_v48, %v647_v54 }
 0x102   : > { %v888_v62 = vpop.f32.mrf.mxu1  ;;  %v1824_v63 = vpop.f32.mrf.mxu0 }
 0x103   : > { %v919_v35 = vadd.f32 %v888_v62, %v803_v40  ;;  %v1039_v10 = vadd.f32 %v1821_v57, %v920_v2 }
 0x104   : > { %v1810_v0 = vpop.f32.mrf.mxu1  ;;  %v1017_v11 = vpop.f32.mrf.mxu0 }
 0x105   : > { %v922_v27 = vadd.f32 %v1810_v0, %v806_v60  ;;  %v1038_v28 = vadd.f32 %v1007_v61, %v919_v35 }
 0x106   : > { %v898_v41 = vpop.f32.mrf.mxu1  ;;  %v2321_v12 = vpop.f32.mrf.mxu0 }
 0x107   : > { %v921_v50 = vadd.f32 %v898_v41, %v805_v38  ;;  %v1041_v58 = vadd.f32 %v1824_v63, %v922_v27 }
 0x108   : > { %v1813_v13 = vpop.f32.mrf.mxu1  ;;  %v2323_v15 = vpop.f32.mrf.mxu0 }
 0x109   : > { %v924_v62 = vadd.f32 %v1813_v13, %v808_v39  ;;  %v1040_v57 = vadd.f32 %v1017_v11, %v921_v50 }
 0x10a   : > { %v908_v1 = vpop.f32.mrf.mxu1  ;;  %v1846_v16 = vpop.f32.mrf.mxu0 }
 0x10b   : > { %v1043_v63 = vadd.f32 %v2321_v12, %v924_v62 }
 0x10c   : > { %v1832_v17 = vpop.f32.mrf.mxu1  ;;  %v1231_v18 = vpop.f32.mrf.mxu0 }
 0x10d   : > { %v1155_v31 = vadd.f32 %v1832_v17, %v1037_v51  ;;  %v923_v17 = vadd.f32 %v908_v1, %v807_v55 }
 0x10e   : > { %v1115_v20 = vpop.f32.mrf.mxu1  ;;  %v1849_v14 = vpop.f32.mrf.mxu0 }
 0x10f   : > { %v1154_v45 = vadd.f32 %v1115_v20, %v1036_v36  ;;  %v1271_v47 = vadd.f32 %v1846_v16, %v1155_v31 }
 0x110   : > { %v1835_v23 = vpop.f32.mrf.mxu1  ;;  %v1241_v24 = vpop.f32.mrf.mxu0 }
 0x111   : > { %v1157_v56 = vadd.f32 %v1835_v23, %v1039_v10  ;;  %v1270_v32 = vadd.f32 %v1231_v18, %v1154_v45 }
 0x112   : > { %v1125_v59 = vpop.f32.mrf.mxu1  ;;  %v1852_v42 = vpop.f32.mrf.mxu0 }
 0x113   : > { %v1156_v49 = vadd.f32 %v1125_v59, %v1038_v28  ;;  %v1273_v16 = vadd.f32 %v1849_v14, %v1157_v56  ;;  %v1042_v14 = vadd.f32 %v2323_v15, %v923_v17 }
 0x114   : > { %v1838_v6 = vpop.f32.mrf.mxu1  ;;  %v1251_v8 = vpop.f32.mrf.mxu0 }
 0x115   : > { %v1159_v19 = vadd.f32 %v1838_v6, %v1041_v58  ;;  %v1272_v18 = vadd.f32 %v1241_v24, %v1156_v49 }
 0x116   : > { %v1135_v33 = vpop.f32.mrf.mxu1  ;;  %v2325_v22 = vpop.f32.mrf.mxu0 }
 0x117   : > { %v1158_v13 = vadd.f32 %v1135_v33, %v1040_v57  ;;  %v1275_v4 = vadd.f32 %v1852_v42, %v1159_v19 }
 0x118   : > { %v1841_v37 = vpop.f32.mrf.mxu1  ;;  %v1261_v44 = vpop.f32.mrf.mxu0 }
 0x119   : > { %v1161_v12 = vadd.f32 %v1841_v37, %v1043_v63  ;;  %v1274_v29 = vadd.f32 %v1251_v8, %v1158_v13 }
 0x11a   : > { %v1145_v53 = vpop.f32.mrf.mxu1  ;;  %v1874_v43 = vpop.f32.mrf.mxu0 }
 0x11b   : > { %v1160_v6 = vadd.f32 %v1145_v53, %v1042_v14  ;;  %v1277_v2 = vadd.f32 %v2325_v22, %v1161_v12 }
 0x11c   : > { %v1860_v3 = vpop.f32.mrf.mxu1  ;;  %v1468_v52 = vpop.f32.mrf.mxu0 }
 0x11d   : > { %v1390_v0 = vadd.f32 %v1860_v3, %v1271_v47  ;;  %v1276_v35 = vadd.f32 %v1261_v44, %v1160_v6 }
 0x11e   : > { %v1350_v61 = vpop.f32.mrf.mxu1  ;;  %v1877_v41 = vpop.f32.mrf.mxu0 }
 0x11f   : > { %v1508_v20 = vadd.f32 %v1874_v43, %v1390_v0  ;;  %v1389_v48 = vadd.f32 %v1350_v61, %v1270_v32 }
 0x120   : > { %v1863_v11 = vpop.f32.mrf.mxu1  ;;  %v1478_v1 = vpop.f32.mrf.mxu0 }
 0x121   : > { %v1523_v21 = vadd.f32 %v1673_v46, %v1508_v20  ;;  %v1507_v5 = vadd.f32 %v1468_v52, %v1389_v48  ;;  %v1392_v23 = vadd.f32 %v1863_v11, %v1273_v16 }
 0x122   : > { %v1360_v7 = vpop.f32.mrf.mxu1  ;;  %v1880_v25 = vpop.f32.mrf.mxu0 }
 0x123   : > { %1531 = vst.msk [vmem:[%s2337_s28 + $0x8] sm:$0xff] %vm412_vm0, %v1523_v21  ;;  %v1522_v9 = vadd.f32 %v1673_v46, %v1507_v5  ;;  %v1510_v59 = vadd.f32 %v1877_v41, %v1392_v23  ;;  %v1391_v26 = vadd.f32 %v1360_v7, %v1272_v18 }
 0x124   : > { %v1866_v30 = vpop.f32.mrf.mxu1  ;;  %v1488_v24 = vpop.f32.mrf.mxu0 }
 0x125   : > { %1530 = vst.msk [vmem:[%s2337_s28] sm:$0xff] %vm412_vm0, %v1522_v9  ;;  %v1525_v40 = vadd.f32 %v1673_v46, %v1510_v59  ;;  %v1509_v51 = vadd.f32 %v1478_v1, %v1391_v26  ;;  %v1394_v15 = vadd.f32 %v1866_v30, %v1275_v4 }
 0x126   : > { %v1370_v42 = vpop.f32.mrf.mxu1  ;;  %v1883_v36 = vpop.f32.mrf.mxu0 }
 0x127   : > { %1533 = vst.msk [vmem:[%s2337_s28 + $0x18] sm:$0xff] %vm412_vm0, %v1525_v40  ;;  %v1524_v60 = vadd.f32 %v1673_v46, %v1509_v51  ;;  %v1512_v34 = vadd.f32 %v1880_v25, %v1394_v15  ;;  %v1393_v33 = vadd.f32 %v1370_v42, %v1274_v29 }
 0x128   : > { %v1869_v8 = vpop.f32.mrf.mxu1  ;;  %v1498_v45 = vpop.f32.mrf.mxu0 }
 0x129   : > { %1532 = vst.msk [vmem:[%s2337_s28 + $0x10] sm:$0xff] %vm412_vm0, %v1524_v60  ;;  %v1527_v31 = vadd.f32 %v1673_v46, %v1512_v34  ;;  %v1511_v38 = vadd.f32 %v1488_v24, %v1393_v33  ;;  %v1396_v54 = vadd.f32 %v1869_v8, %v1277_v2 }
 0x12a   : > { %v1380_v27 = vpop.f32.mrf.mxu1 }
 0x12b   : > { %1535 = vst.msk [vmem:[%s2337_s28 + $0x28] sm:$0xff] %vm412_vm0, %v1527_v31  ;;  %v1526_v22 = vadd.f32 %v1673_v46, %v1511_v38  ;;  %v1514_v37 = vadd.f32 %v1883_v36, %v1396_v54  ;;  %v1395_v10 = vadd.f32 %v1380_v27, %v1276_v35 }
 0x12d   : > { %1534 = vst.msk [vmem:[%s2337_s28 + $0x20] sm:$0xff] %vm412_vm0, %v1526_v22  ;;  %v1529_v39 = vadd.f32 %v1673_v46, %v1514_v37  ;;  %v1513_v50 = vadd.f32 %v1498_v45, %v1395_v10 }
 0x12f   : > { %1537 = vst.msk [vmem:[%s2337_s28 + $0x38] sm:$0xff] %vm412_vm0, %v1529_v39  ;;  %v1528_v44 = vadd.f32 %v1673_v46, %v1513_v50 }
 0x131   : > { %1536 = vst.msk [vmem:[%s2337_s28 + $0x30] sm:$0xff] %vm412_vm0, %v1528_v44 }
 0x132 PF: > { %s15_s18 = sadd.s32 1, %s1902_s18  }
 0x133   : > { %p12_p4 = scmp.ge.s32.totalorder %s15_s18, 4  }
 0x135   :  { %14 = sbr.rel (!%p12_p4) target bundleno = 1 (0x1), region = 70 }

// kernel: _lambda_.17
= control target key start
LH: loop header
LB: loop body
LE: loop exit
PB: predicated region body
PF: predicated region fallthrough
CT: control target
= control target key end

     0   :  { %s2018_s21 = smov 0   ;;  %s2476_s0 = inlined_call_operand.vmem [shape: f32[1,8], index: 0, kind: input, shape index: {}]   ;;  %s2477_s1 = inlined_call_operand.vmem [shape: f32[1,8], index: 1, kind: input, shape index: {}]   ;;  %s2478_s2 = inlined_call_operand.vmem [shape: f32[2,10,10,8], index: 2, kind: input, shape index: {}]   ;;  %s2479_s3 = inlined_call_operand.vmem [shape: f32[9,8,8], index: 3, kind: input, shape index: {}]   ;;  %s2480_s4 = inlined_call_operand.vmem [shape: f32[1,8], index: 4, kind: input, shape index: {}]   ;;  %s2481_s5 = inlined_call_operand.vmem [shape: f32[2,8,8,8], index: 5, kind: input, shape index: {}]   ;;  %s2482_s6 = inlined_call_operand.vmem [shape: f32[2,8,8,8], index: 6, kind: output, shape index: {}]  }
   0x1 LB: > { %s1668_s22 = sadd.s32 4294967295, %s1980_s21   ;;  %p1672_p0 = scmp.ge.s32.totalorder %s1980_s21, 1  ;;  %s1980_s21 = sphi %s2018_s21, %s16_s21  }
   0x2   : > { %p222_p1 = scmp.lt.s32.totalorder %s1980_s21, 3 }
   0x4   : > { %p223_p2 = pnand %p1672_p0, %p222_p1 }
   0x5   : > { %p257_p3 = scmp.lt.s32.totalorder (!%p223_p2), %s1668_s22, 1 }
   0x6   : > { %226 = sbr.rel (%p223_p2) target bundleno = 308 (0x134), region = 44 }
   0xb   : > { %v293_v0 = vld [vmem:[%s2479_s3 + $0x8] sm:$0xff]  ;;  %vm459_vm0 = vcmask 64512   ;;  %v375_v1 = vlaneseq  ;;  %v1982_v2 = vmov 0.0   ;;  %v2035_v4 = vld [vmem:[%s2479_s3] sm:$0xff]  ;;  %v2040_v5 = vld [vmem:[%s2479_s3 + $0x10] sm:$0xff]  ;;  %s2484_s22 = smov (!%p257_p3, %s1668_s22), 1 }
   0xc   : > { %1962 = vmatprep.subr.mxu1 %v293_v0  ;;  %1836 = vmatprep.subr.mxu0 %v293_v0  ;;  %v2030_v3 = vrot.slane %v1982_v2, 1  ;;  %s1964_s29 = smul.u32 160, %s2484_s22  ;;  %v2054_v7 = vld [vmem:[%s2476_s0] ss:$0 sm:$0xff]  ;;  %vm434_vm1 = vcmask 1046528   ;;  %vm702_vm4 = vcmask 1045504  }
   0xd   : > { %1963 = vmatpush3.msra.mxu1 %v293_v0  ;;  %1837 = vmatpush3.msra.mxu0 %v293_v0  ;;  %v2044_v6 = vshrl.u32 %v375_v1, 7  ;;  %v2067_v9 = vld [vmem:[%s2477_s1] ss:$0 sm:$0xff]  ;;  %s1753_s27 = sshll.u32 %s2484_s22, 6 }
   0xe   : > { %1838 = vmatprep.mubr.msk.f32.mxu0 %vm459_vm0, %v2030_v3  ;;  %1850 = vmatprep.subr.mxu1 %v2035_v4  ;;  %s2062_s10 = scalar_lea.vmem %s2478_s2, %s1964_s29  ;;  %v2148_v1 = vld [vmem:[%s2479_s3 + $0x20] sm:$0xff]  ;;  %s2422_s30 = scalar_lea.vmem %s2481_s5, %s1753_s27 }
   0xf   : > { %1864 = vmatprep.subr.mxu0 %v2040_v5  ;;  %v2057_v8 = vadd.s32 8, %v2044_v6  ;;  %v280_v10 = vld [vmem:[%s2062_s10 + $0x40] sm:$0xff]  ;;  %v281_v11 = vld [vmem:[%s2062_s10 + $0x48] sm:$0x3]  ;;  %v274_v12 = vld [vmem:[%s2062_s10 + $0x10] sm:$0xff]  ;;  %vm378_vm2 = vcmp.ge.s32.totalorder %v2044_v6, 1  ;;  %s2438_s11 = scalar_lea.vmem %s2482_s6, %s1753_s27 }
  0x10   : > { %v316_v13 = vmul.f32 %v2054_v7, %v280_v10  ;;  %v317_v14 = vmul.f32 %v2054_v7, %v281_v11  ;;  %v275_v15 = vld [vmem:[%s2062_s10 + $0x18] sm:$0x3]  ;;  %v310_v16 = vmul.f32 %v2054_v7, %v274_v12  ;;  %v282_v17 = vld [vmem:[%s2062_s10 + $0x50] sm:$0xff]  ;;  %v276_v22 = vld [vmem:[%s2062_s10 + $0x20] sm:$0xff] }
  0x11   : > { %v283_v18 = vld [vmem:[%s2062_s10 + $0x58] sm:$0x3]  ;;  %vm385_vm3 = vcmp.lt.s32.totalorder %v2057_v8, 9  ;;  %v311_v19 = vmul.f32 %v2054_v7, %v275_v15  ;;  %v318_v20 = vmul.f32 %v2054_v7, %v282_v17  ;;  %v277_v23 = vld [vmem:[%s2062_s10 + $0x28] sm:$0x3]  ;;  %v312_v27 = vmul.f32 %v2054_v7, %v276_v22  ;;  %v284_v44 = vld [vmem:[%s2062_s10 + $0x60] sm:$0xff] }
  0x12   : > { %v319_v21 = vmul.f32 %v2054_v7, %v283_v18  ;;  %v343_v24 = vadd.f32 %v2067_v9, %v316_v13  ;;  %v344_v25 = vadd.f32 %v2067_v9, %v317_v14  ;;  %v337_v26 = vadd.f32 %v2067_v9, %v310_v16  ;;  %v285_v49 = vld [vmem:[%s2062_s10 + $0x68] sm:$0x3]  ;;  %v278_v53 = vld [vmem:[%s2062_s10 + $0x30] sm:$0xff]  ;;  %v279_v58 = vld [vmem:[%s2062_s10 + $0x38] sm:$0x3] }
  0x13   : > { %v338_v28 = vadd.f32 %v2067_v9, %v311_v19  ;;  %v345_v29 = vadd.f32 %v2067_v9, %v318_v20  ;;  %v313_v31 = vmul.f32 %v2054_v7, %v277_v23  ;;  %v339_v35 = vadd.f32 %v2067_v9, %v312_v27  ;;  %v286_v63 = vld [vmem:[%s2062_s10 + $0x70] sm:$0xff]  ;;  %v287_v0 = vld [vmem:[%s2062_s10 + $0x78] sm:$0x3] }
  0x14   : > { %v346_v30 = vadd.f32 %v2067_v9, %v319_v21  ;;  %v363_v32 = vmax.f32 %v343_v24, 0.0  ;;  %v364_v33 = vmax.f32 %v344_v25, 0.0  ;;  %v357_v34 = vmax.f32 %v337_v26, 0.0  ;;  %v2162_v14 = vld [vmem:[%s2479_s3 + $0x18] sm:$0xff] }
  0x15   : > { %v358_v36 = vmax.f32 %v338_v28, 0.0  ;;  %v365_v37 = vmax.f32 %v345_v29, 0.0  ;;  %v340_v39 = vadd.f32 %v2067_v9, %v313_v31  ;;  %v359_v43 = vmax.f32 %v339_v35, 0.0 }
  0x16   : > { %v366_v38 = vmax.f32 %v346_v30, 0.0  ;;  %v2097_v40 = vsel %vm378_vm2, %v363_v32, 0.0  ;;  %v2101_v41 = vsel %vm385_vm3, %v364_v33, 0.0  ;;  %v2105_v42 = vsel %vm378_vm2, %v357_v34, 0.0 }
  0x17   : > { %v447_v45 = vrot.slane %v2097_v40, 1  ;;  %v448_v46 = vrot.slane %v2101_v41, 1  ;;  %v2112_v47 = vsel %vm385_vm3, %v358_v36, 0.0  ;;  %v438_v48 = vrot.slane %v2105_v42, 1 }
  0x18   : > { %v439_v50 = vrot.slane %v2112_v47, 1  ;;  %v2119_v51 = vsel %vm378_vm2, %v365_v37, 0.0  ;;  %v2123_v52 = vsel %vm385_vm3, %v366_v38, 0.0  ;;  %v360_v57 = vmax.f32 %v340_v39, 0.0 }
  0x19   : > { %v2127_v54 = vsel %vm434_vm1, %v447_v45, %v448_v46  ;;  %v450_v55 = vrot.slane %v2119_v51, 1  ;;  %v451_v56 = vrot.slane %v2123_v52, 1  ;;  %v2139_v60 = vsel %vm378_vm2, %v359_v43, 0.0 }
  0x1a   : > { %1844 = vmatprep.mubr.msk.f32.mxu1 %vm459_vm0, %v2127_v54  ;;  %v2135_v59 = vsel %vm434_vm1, %v438_v48, %v439_v50  ;;  %v320_v61 = vmul.f32 %v2054_v7, %v284_v44  ;;  %v321_v62 = vmul.f32 %v2054_v7, %v285_v49  ;;  %v403_v11 = vsel %vm385_vm3, %v360_v57, 0.0 }
  0x1b   : > { %1839 = vmatmul.mubr.msk.f32.vlgmr.msra.gmra.mxu0 %vm459_vm0, %v2135_v59  ;;  %v2153_v10 = vsel %vm434_vm1, %v450_v55, %v451_v56  ;;  %v441_v12 = vrot.slane %v2139_v60, 1  ;;  %v314_v13 = vmul.f32 %v2054_v7, %v278_v53  ;;  %v442_v15 = vrot.slane %v403_v11, 1 }
  0x1c   : > { %1845 = vmatmul.mubr.msk.f32.vlgmr.msra.gmra.mxu1 %vm459_vm0, %v2153_v10  ;;  %1865 = vmatpush3.msra.mxu0 %v2040_v5  ;;  %v347_v16 = vadd.f32 %v2067_v9, %v320_v61  ;;  %v348_v17 = vadd.f32 %v2067_v9, %v321_v62  ;;  %v315_v18 = vmul.f32 %v2054_v7, %v279_v58  ;;  %v2185_v27 = vrot.slane %v1982_v2, 2 }
  0x1d   : > { %1851 = vmatpush3.msra.mxu1 %v2035_v4  ;;  %v341_v19 = vadd.f32 %v2067_v9, %v314_v13  ;;  %v322_v20 = vmul.f32 %v2054_v7, %v286_v63  ;;  %v323_v21 = vmul.f32 %v2054_v7, %v287_v0  ;;  %1892 = vmatprep.subr.mxu0 %v2148_v1  ;;  %v707_v35 = vrot.slane %v2112_v47, 2  ;;  %v298_v0 = vld [vmem:[%s2479_s3 + $0x30] sm:$0xff]  ;;  %v297_v13 = vld [vmem:[%s2479_s3 + $0x28] sm:$0xff] }
  0x1e   : > { %v2176_v22 = vsel %vm434_vm1, %v441_v12, %v442_v15  ;;  %v367_v5 = vmax.f32 %v347_v16, 0.0  ;;  %v368_v23 = vmax.f32 %v348_v17, 0.0  ;;  %v342_v24 = vadd.f32 %v2067_v9, %v315_v18  ;;  %1878 = vmatprep.subr.mxu1 %v2162_v14  ;;  %v289_v17 = vld [vmem:[%s2062_s10 + $0x88] sm:$0x3] }
  0x1f   : > { %1841 = vmatprep.mubr.msk.f32.mxu0 %vm459_vm0, %v2176_v22  ;;  %v361_v4 = vmax.f32 %v341_v19, 0.0  ;;  %v349_v25 = vadd.f32 %v2067_v9, %v322_v20  ;;  %v350_v26 = vadd.f32 %v2067_v9, %v323_v21  ;;  %v706_v45 = vrot.slane %v2105_v42, 2 }
  0x20   : > { %v2189_v28 = vsel %vm378_vm2, %v367_v5, 0.0  ;;  %v411_v29 = vsel %vm385_vm3, %v368_v23, 0.0  ;;  %v362_v30 = vmax.f32 %v342_v24, 0.0  ;;  %v709_v48 = vrot.slane %v2139_v60, 2 }
  0x21   : > { %v453_v31 = vrot.slane %v2189_v28, 1  ;;  %v454_v32 = vrot.slane %v411_v29, 1  ;;  %v2196_v33 = vsel %vm378_vm2, %v361_v4, 0.0  ;;  %v369_v34 = vmax.f32 %v349_v25, 0.0 }
  0x22   : > { %v405_v36 = vsel %vm385_vm3, %v362_v30, 0.0  ;;  %v444_v37 = vrot.slane %v2196_v33, 1  ;;  %v370_v38 = vmax.f32 %v350_v26, 0.0  ;;  %v710_v49 = vrot.slane %v403_v11, 2 }
  0x23   : > { %v2203_v39 = vsel %vm434_vm1, %v453_v31, %v454_v32  ;;  %v445_v43 = vrot.slane %v405_v36, 1  ;;  %v2207_v44 = vsel %vm378_vm2, %v369_v34, 0.0  ;;  %v2227_v56 = vsel %vm702_vm4, %v706_v45, %v707_v35 }
  0x24   : > { %1847 = vmatprep.mubr.msk.f32.mxu1 %vm459_vm0, %v2203_v39  ;;  %v413_v46 = vsel %vm385_vm3, %v370_v38, 0.0  ;;  %v456_v47 = vrot.slane %v2207_v44, 1  ;;  %v712_v57 = vrot.slane %v2196_v33, 2  ;;  %v713_v58 = vrot.slane %v405_v36, 2 }
  0x25   : > { %v2217_v50 = vsel %vm434_vm1, %v444_v37, %v445_v43  ;;  %v457_v53 = vrot.slane %v413_v46, 1  ;;  %v2233_v61 = vsel %vm702_vm4, %v709_v48, %v710_v49  ;;  %v715_v62 = vrot.slane %v2097_v40, 2 }
  0x26   : > { %1842 = vmatmul.mubr.msk.f32.gmra.mxu0 %vm459_vm0, %v2217_v50  ;;  %v716_v63 = vrot.slane %v2101_v41, 2  ;;  %v2247_v11 = vsel %vm702_vm4, %v712_v57, %v713_v58  ;;  %v718_v41 = vrot.slane %v2119_v51, 2  ;;  %v719_v12 = vrot.slane %v2123_v52, 2  ;;  %v288_v52 = vld [vmem:[%s2062_s10 + $0x80] sm:$0xff] }
  0x27   : > { %v2222_v55 = vsel %vm434_vm1, %v456_v47, %v457_v53  ;;  %1866 = vmatprep.mubr.msk.f32.mxu0 %vm459_vm0, %v2185_v27  ;;  %v722_v16 = vrot.slane %v411_v29, 2  ;;  %v724_v19 = vrot.slane %v2207_v44, 2  ;;  %v725_v20 = vrot.slane %v413_v46, 2 }
  0x28   : > { %1848 = vmatmul.mubr.msk.f32.gmra.mxu1 %vm459_vm0, %v2222_v55  ;;  %v2257_v15 = vsel %vm702_vm4, %v715_v62, %v716_v63  ;;  %v2270_v18 = vsel %vm702_vm4, %v718_v41, %v719_v12  ;;  %v324_v21 = vmul.f32 %v2054_v7, %v288_v52  ;;  %v325_v5 = vmul.f32 %v2054_v7, %v289_v17 }
  0x29   : > { %1852 = vmatprep.mubr.f32.mxu1 %v1982_v2  ;;  %v2287_v23 = vsel %vm702_vm4, %v724_v19, %v725_v20 }
  0x2a   : > { %1867 = vmatmul.mubr.msk.f32.vlgmr.msra.gmra.mxu0 %vm459_vm0, %v2227_v56  ;;  %v351_v24 = vadd.f32 %v2067_v9, %v324_v21  ;;  %v352_v4 = vadd.f32 %v2067_v9, %v325_v5  ;;  %v300_v9 = vld [vmem:[%s2479_s3 + $0x40] sm:$0xff] }
  0x2b   : > { %1893 = vmatpush3.msra.mxu0 %v2148_v1  ;;  %1869 = vmatprep.mubr.msk.f32.mxu0 %vm459_vm0, %v2233_v61  ;;  %v721_v1 = vrot.slane %v2189_v28, 2 }
  0x2c   : > { %1853 = vmatmul.mubr.msk.f32.vlgmr.msra.gmra.mxu1 %vm459_vm0, %v2105_v42  ;;  %1920 = vmatprep.subr.mxu0 %v298_v0  ;;  %v371_v7 = vmax.f32 %v351_v24, 0.0  ;;  %v372_v25 = vmax.f32 %v352_v4, 0.0 }
  0x2d   : > { %1879 = vmatpush3.msra.mxu1 %v2162_v14  ;;  %1855 = vmatprep.mubr.msk.f32.mxu1 %vm459_vm0, %v2139_v60  ;;  %v2276_v14 = vsel %vm702_vm4, %v721_v1, %v722_v16 }
  0x2e   : > { %1870 = vmatmul.mubr.msk.f32.gmra.mxu0 %vm459_vm0, %v2247_v11  ;;  %1906 = vmatprep.subr.mxu1 %v297_v13  ;;  %v415_v26 = vsel %vm385_vm3, %v372_v25, 0.0 }
  0x2f   : > { %1872 = vmatprep.mubr.msk.f32.mxu0 %vm459_vm0, %v2257_v15  ;;  %v974_v30 = vrot.slane %v415_v26, 1 }
  0x30   : > { %1856 = vmatmul.mubr.msk.f32.gmra.mxu1 %vm459_vm0, %v2196_v33 }
  0x31   : > { %1858 = vmatprep.mubr.msk.f32.mxu1 %vm459_vm0, %v2097_v40 }
  0x32   : > { %1873 = vmatmul.mubr.msk.f32.gmra.mxu0 %vm459_vm0, %v2270_v18 }
  0x33   : > { %1875 = vmatprep.mubr.msk.f32.mxu0 %vm459_vm0, %v2276_v14 }
  0x34   : > { %1859 = vmatmul.mubr.msk.f32.gmra.mxu1 %vm459_vm0, %v2119_v51 }
  0x35   : > { %1861 = vmatprep.mubr.msk.f32.mxu1 %vm459_vm0, %v2189_v28 }
  0x36   : > { %1876 = vmatmul.mubr.msk.f32.gmra.mxu0 %vm459_vm0, %v2287_v23 }
  0x37   : > { %1894 = vmatprep.mubr.msk.f32.mxu0 %vm459_vm0, %v2135_v59  ;;  %v299_v59 = vld [vmem:[%s2479_s3 + $0x38] sm:$0xff] }
  0x38   : > { %1862 = vmatmul.mubr.msk.f32.gmra.mxu1 %vm459_vm0, %v2207_v44 }
  0x39   : > { %1880 = vmatprep.mubr.msk.f32.mxu1 %vm459_vm0, %v2105_v42  ;;  %v414_v42 = vsel %vm378_vm2, %v371_v7, 0.0 }
  0x3a   : > { %1895 = vmatmul.mubr.msk.f32.vlgmr.msra.gmra.mxu0 %vm459_vm0, %v2176_v22  ;;  %v973_v29 = vrot.slane %v414_v42, 1  ;;  %v1091_v8 = vrot.slane %v414_v42, 2 }
  0x3b   : > { %1921 = vmatpush3.msra.mxu0 %v298_v0  ;;  %1897 = vmatprep.mubr.msk.f32.mxu0 %vm459_vm0, %v2217_v50 }
  0x3c   : > { %1881 = vmatmul.mubr.msk.f32.vlgmr.msra.gmra.mxu1 %vm459_vm0, %v2139_v60  ;;  %1948 = vmatprep.subr.mxu0 %v300_v9  ;;  %v975_v6 = vsel %vm434_vm1, %v973_v29, %v974_v30 }
  0x3d   : > { %1907 = vmatpush3.msra.mxu1 %v297_v13  ;;  %1883 = vmatprep.mubr.msk.f32.mxu1 %vm459_vm0, %v2196_v33 }
  0x3e   : > { %1898 = vmatmul.mubr.msk.f32.gmra.mxu0 %vm459_vm0, %v2127_v54  ;;  %1934 = vmatprep.subr.mxu1 %v299_v59 }
  0x3f   : > { %1900 = vmatprep.mubr.msk.f32.mxu0 %vm459_vm0, %v2153_v10 }
  0x40   : > { %1884 = vmatmul.mubr.msk.f32.gmra.mxu1 %vm459_vm0, %v2097_v40 }
  0x41   : > { %1886 = vmatprep.mubr.msk.f32.mxu1 %vm459_vm0, %v2119_v51 }
  0x42   : > { %1901 = vmatmul.mubr.msk.f32.gmra.mxu0 %vm459_vm0, %v2203_v39 }
  0x43   : > { %1903 = vmatprep.mubr.msk.f32.mxu0 %vm459_vm0, %v2222_v55 }
  0x44   : > { %1887 = vmatmul.mubr.msk.f32.gmra.mxu1 %vm459_vm0, %v2189_v28 }
  0x45   : > { %1889 = vmatprep.mubr.msk.f32.mxu1 %vm459_vm0, %v2207_v44 }
  0x46   : > { %1904 = vmatmul.mubr.msk.f32.gmra.mxu0 %vm459_vm0, %v975_v6 }
  0x47   : > { %1922 = vmatprep.mubr.msk.f32.mxu0 %vm459_vm0, %v2139_v60 }
  0x48   : > { %1890 = vmatmul.mubr.msk.f32.gmra.mxu1 %vm459_vm0, %v414_v42 }
  0x49   : > { %1908 = vmatprep.mubr.msk.f32.mxu1 %vm459_vm0, %v2227_v56 }
  0x4a   : > { %1923 = vmatmul.mubr.msk.f32.vlgmr.msra.gmra.mxu0 %vm459_vm0, %v2196_v33 }
  0x4b   : > { %1949 = vmatpush3.msra.mxu0 %v300_v9  ;;  %1925 = vmatprep.mubr.msk.f32.mxu0 %vm459_vm0, %v2097_v40  ;;  %v1092_v40 = vrot.slane %v415_v26, 2 }
  0x4c   : > { %1909 = vmatmul.mubr.msk.f32.vlgmr.msra.gmra.mxu1 %vm459_vm0, %v2233_v61 }
  0x4d   : > { %1935 = vmatpush3.msra.mxu1 %v299_v59  ;;  %1911 = vmatprep.mubr.msk.f32.mxu1 %vm459_vm0, %v2247_v11 }
  0x4e   : > { %1926 = vmatmul.mubr.msk.f32.gmra.mxu0 %vm459_vm0, %v2119_v51  ;;  %v1093_v51 = vsel %vm702_vm4, %v1091_v8, %v1092_v40 }
  0x4f   : > { %1928 = vmatprep.mubr.msk.f32.mxu0 %vm459_vm0, %v2189_v28 }
  0x50   : > { %1912 = vmatmul.mubr.msk.f32.gmra.mxu1 %vm459_vm0, %v2257_v15 }
  0x51   : > { %1914 = vmatprep.mubr.msk.f32.mxu1 %vm459_vm0, %v2270_v18 }
  0x52   : > { %1929 = vmatmul.mubr.msk.f32.gmra.mxu0 %vm459_vm0, %v2207_v44 }
  0x53   : > { %1931 = vmatprep.mubr.msk.f32.mxu0 %vm459_vm0, %v414_v42 }
  0x54   : > { %1915 = vmatmul.mubr.msk.f32.gmra.mxu1 %vm459_vm0, %v2276_v14 }
  0x55   : > { %1917 = vmatprep.mubr.msk.f32.mxu1 %vm459_vm0, %v2287_v23 }
  0x56   : > { %1932 = vmatmul.mubr.f32.gmra.mxu0 %v1982_v2 }
  0x57   : > { %1950 = vmatprep.mubr.msk.f32.mxu0 %vm459_vm0, %v2233_v61 }
  0x58   : > { %1918 = vmatmul.mubr.msk.f32.gmra.mxu1 %vm459_vm0, %v1093_v51 }
  0x59   : > { %1936 = vmatprep.mubr.msk.f32.mxu1 %vm459_vm0, %v2176_v22 }
  0x5a   : > { %1951 = vmatmul.mubr.msk.f32.vlgmr.msra.gmra.mxu0 %vm459_vm0, %v2247_v11 }
  0x5b   : > { %1953 = vmatprep.mubr.msk.f32.mxu0 %vm459_vm0, %v2257_v15 }
  0x5c   : > { %1937 = vmatmul.mubr.msk.f32.vlgmr.msra.gmra.mxu1 %vm459_vm0, %v2217_v50 }
  0x5d   : > { %1939 = vmatprep.mubr.msk.f32.mxu1 %vm459_vm0, %v2127_v54 }
  0x5e   : > { %1954 = vmatmul.mubr.msk.f32.gmra.mxu0 %vm459_vm0, %v2270_v18 }
  0x5f   : > { %1956 = vmatprep.mubr.msk.f32.mxu0 %vm459_vm0, %v2276_v14 }
  0x60   : > { %1940 = vmatmul.mubr.msk.f32.gmra.mxu1 %vm459_vm0, %v2153_v10 }
  0x61   : > { %1942 = vmatprep.mubr.msk.f32.mxu1 %vm459_vm0, %v2203_v39 }
  0x62   : > { %1957 = vmatmul.mubr.msk.f32.gmra.mxu0 %vm459_vm0, %v2287_v23 }
  0x63   : > { %1959 = vmatprep.mubr.msk.f32.mxu0 %vm459_vm0, %v1093_v51 }
  0x64   : > { %1943 = vmatmul.mubr.msk.f32.gmra.mxu1 %vm459_vm0, %v2222_v55 }
  0x65   : > { %1945 = vmatprep.mubr.msk.f32.mxu1 %vm459_vm0, %v975_v6 }
  0x66   : > { %1960 = vmatmul.mubr.msk.f32.gmra.mxu0 %vm459_vm0, %v2185_v27 }
  0x68   : > { %1946 = vmatmul.mubr.msk.f32.gmra.mxu1 %vm459_vm0, %v2030_v3 }
  0xdb   : > { %v1840_v2 = vpop.f32.mrf.mxu0 }
  0xdc   : > { %v1846_v54 = vpop.f32.mrf.mxu1 }
  0xdd   : > { %v542_v60 = vpop.f32.mrf.mxu0 }
  0xde   : > { %v562_v10 = vpop.f32.mrf.mxu1 }
  0xe6   : > { %v1843_v22 = vpop.f32.mrf.mxu0 }
  0xe8   : > { %v1849_v28 = vpop.f32.mrf.mxu1  ;;  %v552_v31 = vpop.f32.mrf.mxu0 }
  0xea   : > { %v2400_v32 = vpop.f32.mrf.mxu1  ;;  %v1868_v33 = vpop.f32.mrf.mxu0 }
  0xec   : > { %v1854_v34 = vpop.f32.mrf.mxu1  ;;  %v809_v35 = vpop.f32.mrf.mxu0 }
  0xed   : > { %v669_v52 = vadd.f32 %v1854_v34, %v1840_v2 }
  0xee   : > { %v663_v36 = vpop.f32.mrf.mxu1  ;;  %v1871_v37 = vpop.f32.mrf.mxu0 }
  0xef   : > { %v664_v19 = vadd.f32 %v663_v36, %v542_v60  ;;  %v849_v21 = vadd.f32 %v1868_v33, %v669_v52 }
  0xf0   : > { %v1857_v38 = vpop.f32.mrf.mxu1  ;;  %v819_v39 = vpop.f32.mrf.mxu0 }
  0xf1   : > { %v679_v5 = vadd.f32 %v1857_v38, %v1843_v22  ;;  %v848_v4 = vadd.f32 %v809_v35, %v664_v19 }
  0xf2   : > { %v673_v27 = vpop.f32.mrf.mxu1  ;;  %v1874_v43 = vpop.f32.mrf.mxu0 }
  0xf3   : > { %v674_v7 = vadd.f32 %v673_v27, %v552_v31  ;;  %v851_v26 = vadd.f32 %v1871_v37, %v679_v5 }
  0xf4   : > { %v1860_v44 = vpop.f32.mrf.mxu1  ;;  %v829_v3 = vpop.f32.mrf.mxu0 }
  0xf5   : > { %v689_v9 = vadd.f32 %v1860_v44, %v1846_v54  ;;  %v850_v40 = vadd.f32 %v819_v39, %v674_v7 }
  0xf6   : > { %v683_v45 = vpop.f32.mrf.mxu1  ;;  %v1877_v46 = vpop.f32.mrf.mxu0 }
  0xf7   : > { %v684_v30 = vadd.f32 %v683_v45, %v562_v10  ;;  %v853_v60 = vadd.f32 %v1874_v43, %v689_v9 }
  0xf8   : > { %v1863_v47 = vpop.f32.mrf.mxu1  ;;  %v2402_v48 = vpop.f32.mrf.mxu0 }
  0xf9   : > { %v699_v33 = vadd.f32 %v1863_v47, %v1849_v28  ;;  %v852_v36 = vadd.f32 %v829_v3, %v684_v30 }
  0xfa   : > { %v693_v49 = vpop.f32.mrf.mxu1  ;;  %v1896_v50 = vpop.f32.mrf.mxu0 }
  0xfb   : > { %v694_v37 = vadd.f32 %v693_v49, %v2400_v32  ;;  %v855_v45 = vadd.f32 %v1877_v46, %v699_v33 }
  0xfc   : > { %v1882_v53 = vpop.f32.mrf.mxu1  ;;  %v1044_v55 = vpop.f32.mrf.mxu0 }
  0xfd   : > { %v965_v25 = vadd.f32 %v1882_v53, %v849_v21 }
  0xfe   : > { %v925_v56 = vpop.f32.mrf.mxu1  ;;  %v1899_v57 = vpop.f32.mrf.mxu0 }
  0xff   : > { %v964_v29 = vadd.f32 %v925_v56, %v848_v4  ;;  %v1084_v51 = vadd.f32 %v1896_v50, %v965_v25  ;;  %v854_v56 = vadd.f32 %v2402_v48, %v694_v37  ;;  %v2427_v48 = vld [vmem:[%s2480_s4] ss:$0 sm:$0xff] }
 0x100   : > { %v1885_v58 = vpop.f32.mrf.mxu1  ;;  %v1054_v61 = vpop.f32.mrf.mxu0 }
 0x101   : > { %v967_v2 = vadd.f32 %v1885_v58, %v851_v26  ;;  %v1083_v31 = vadd.f32 %v1044_v55, %v964_v29 }
 0x102   : > { %v935_v62 = vpop.f32.mrf.mxu1  ;;  %v1902_v63 = vpop.f32.mrf.mxu0 }
 0x103   : > { %v966_v35 = vadd.f32 %v935_v62, %v850_v40  ;;  %v1086_v44 = vadd.f32 %v1899_v57, %v967_v2 }
 0x104   : > { %v1888_v0 = vpop.f32.mrf.mxu1  ;;  %v1064_v11 = vpop.f32.mrf.mxu0 }
 0x105   : > { %v969_v38 = vadd.f32 %v1888_v0, %v853_v60  ;;  %v1085_v50 = vadd.f32 %v1054_v61, %v966_v35  ;;  %v1579_v35 = vld [vmem:[%s2422_s30 + $0x10] sm:$0xff] }
 0x106   : > { %v945_v41 = vpop.f32.mrf.mxu1  ;;  %v2404_v12 = vpop.f32.mrf.mxu0 }
 0x107   : > { %v968_v43 = vadd.f32 %v945_v41, %v852_v36  ;;  %v1088_v3 = vadd.f32 %v1902_v63, %v969_v38 }
 0x108   : > { %v1891_v13 = vpop.f32.mrf.mxu1  ;;  %v2406_v15 = vpop.f32.mrf.mxu0 }
 0x109   : > { %v971_v58 = vadd.f32 %v1891_v13, %v855_v45  ;;  %v1087_v46 = vadd.f32 %v1064_v11, %v968_v43 }
 0x10a   : > { %v955_v1 = vpop.f32.mrf.mxu1  ;;  %v1924_v16 = vpop.f32.mrf.mxu0 }
 0x10b   : > { %v970_v57 = vadd.f32 %v955_v1, %v854_v56 }
 0x10c   : > { %v1910_v17 = vpop.f32.mrf.mxu1  ;;  %v1278_v18 = vpop.f32.mrf.mxu0 }
 0x10d   : > { %v1202_v54 = vadd.f32 %v1910_v17, %v1084_v51  ;;  %v1089_v7 = vadd.f32 %v2406_v15, %v970_v57 }
 0x10e   : > { %v1162_v20 = vpop.f32.mrf.mxu1  ;;  %v1927_v14 = vpop.f32.mrf.mxu0 }
 0x10f   : > { %v1201_v39 = vadd.f32 %v1162_v20, %v1083_v31  ;;  %v1318_v53 = vadd.f32 %v1924_v16, %v1202_v54  ;;  %v1578_v20 = vld [vmem:[%s2422_s30 + $0x8] sm:$0xff] }
 0x110   : > { %v1913_v23 = vpop.f32.mrf.mxu1  ;;  %v1288_v24 = vpop.f32.mrf.mxu0 }
 0x111   : > { %v1204_v55 = vadd.f32 %v1913_v23, %v1086_v44  ;;  %v1317_v62 = vadd.f32 %v1278_v18, %v1201_v39  ;;  %v1090_v18 = vadd.f32 %v2404_v12, %v971_v58  ;;  %v1577_v12 = vld [vmem:[%s2422_s30] sm:$0xff]  ;;  %v1582_v44 = vld [vmem:[%s2422_s30 + $0x28] sm:$0xff]  ;;  %v1584_v58 = vld [vmem:[%s2422_s30 + $0x38] sm:$0xff] }
 0x112   : > { %v1172_v59 = vpop.f32.mrf.mxu1  ;;  %v1930_v42 = vpop.f32.mrf.mxu0 }
 0x113   : > { %v1203_v0 = vadd.f32 %v1172_v59, %v1085_v50  ;;  %v1320_v13 = vadd.f32 %v1927_v14, %v1204_v55  ;;  %v1581_v50 = vld [vmem:[%s2422_s30 + $0x20] sm:$0xff] }
 0x114   : > { %v1916_v6 = vpop.f32.mrf.mxu1  ;;  %v2408_v8 = vpop.f32.mrf.mxu0 }
 0x115   : > { %v1206_v61 = vadd.f32 %v1916_v6, %v1088_v3  ;;  %v1319_v1 = vadd.f32 %v1288_v24, %v1203_v0  ;;  %v1580_v6 = vld [vmem:[%s2422_s30 + $0x18] sm:$0xff] }
 0x116   : > { %v1182_v22 = vpop.f32.mrf.mxu1  ;;  %v2410_v34 = vpop.f32.mrf.mxu0 }
 0x117   : > { %v1205_v19 = vadd.f32 %v1182_v22, %v1087_v46  ;;  %v1322_v25 = vadd.f32 %v1930_v42, %v1206_v61 }
 0x118   : > { %v1919_v10 = vpop.f32.mrf.mxu1  ;;  %v2413_v27 = vpop.f32.mrf.mxu0 }
 0x119   : > { %v1208_v9 = vadd.f32 %v1919_v10, %v1090_v18  ;;  %v1321_v15 = vadd.f32 %v2408_v8, %v1205_v19 }
 0x11a   : > { %v1192_v28 = vpop.f32.mrf.mxu1  ;;  %v1952_v47 = vpop.f32.mrf.mxu0 }
 0x11b   : > { %v1207_v42 = vadd.f32 %v1192_v28, %v1089_v7  ;;  %v1324_v31 = vadd.f32 %v2410_v34, %v1208_v9 }
 0x11c   : > { %v1938_v32 = vpop.f32.mrf.mxu1  ;;  %v1515_v49 = vpop.f32.mrf.mxu0 }
 0x11d   : > { %v1437_v52 = vadd.f32 %v1938_v32, %v1318_v53  ;;  %v1323_v10 = vadd.f32 %v2413_v27, %v1207_v42 }
 0x11e   : > { %v1397_v63 = vpop.f32.mrf.mxu1  ;;  %v1955_v41 = vpop.f32.mrf.mxu0 }
 0x11f   : > { %v1555_v16 = vadd.f32 %v1952_v47, %v1437_v52  ;;  %v1436_v17 = vadd.f32 %v1397_v63, %v1317_v62  ;;  %v1583_v52 = vld [vmem:[%s2422_s30 + $0x30] sm:$0xff] }
 0x120   : > { %v1941_v21 = vpop.f32.mrf.mxu1  ;;  %v1525_v11 = vpop.f32.mrf.mxu0 }
 0x121   : > { %v1570_v5 = vadd.f32 %v2427_v48, %v1555_v16  ;;  %v1554_v23 = vadd.f32 %v1515_v49, %v1436_v17  ;;  %v1439_v4 = vadd.f32 %v1941_v21, %v1320_v13 }
 0x122   : > { %v1407_v14 = vpop.f32.mrf.mxu1  ;;  %v1958_v59 = vpop.f32.mrf.mxu0 }
 0x123   : > { %v1586_v24 = vadd.f32 %v1578_v20, %v1570_v5  ;;  %v1569_v26 = vadd.f32 %v2427_v48, %v1554_v23  ;;  %v1557_v29 = vadd.f32 %v1955_v41, %v1439_v4  ;;  %v1438_v30 = vadd.f32 %v1407_v14, %v1319_v1 }
 0x124   : > { %v1944_v40 = vpop.f32.mrf.mxu1  ;;  %v1535_v51 = vpop.f32.mrf.mxu0 }
 0x125   : > { %1594 = vst.msk [vmem:[%s2438_s11 + $0x8] sm:$0xff] %vm459_vm0, %v1586_v24  ;;  %v1585_v2 = vadd.f32 %v1577_v12, %v1569_v26  ;;  %v1572_v60 = vadd.f32 %v2427_v48, %v1557_v29  ;;  %v1556_v33 = vadd.f32 %v1525_v11, %v1438_v30  ;;  %v1441_v22 = vadd.f32 %v1944_v40, %v1322_v25 }
 0x126   : > { %v1417_v54 = vpop.f32.mrf.mxu1  ;;  %v1961_v45 = vpop.f32.mrf.mxu0 }
 0x127   : > { %1593 = vst.msk [vmem:[%s2438_s11] sm:$0xff] %vm459_vm0, %v1585_v2  ;;  %v1588_v8 = vadd.f32 %v1580_v6, %v1572_v60  ;;  %v1571_v36 = vadd.f32 %v2427_v48, %v1556_v33  ;;  %v1559_v37 = vadd.f32 %v1958_v59, %v1441_v22  ;;  %v1440_v38 = vadd.f32 %v1417_v54, %v1321_v15 }
 0x128   : > { %v1947_v39 = vpop.f32.mrf.mxu1  ;;  %v1545_v32 = vpop.f32.mrf.mxu0 }
 0x129   : > { %1596 = vst.msk [vmem:[%s2438_s11 + $0x18] sm:$0xff] %vm459_vm0, %v1588_v8  ;;  %v1587_v34 = vadd.f32 %v1579_v35, %v1571_v36  ;;  %v1574_v43 = vadd.f32 %v2427_v48, %v1559_v37  ;;  %v1558_v28 = vadd.f32 %v1535_v51, %v1440_v38  ;;  %v1443_v47 = vadd.f32 %v1947_v39, %v1324_v31 }
 0x12a   : > { %v1427_v53 = vpop.f32.mrf.mxu1 }
 0x12b   : > { %1595 = vst.msk [vmem:[%s2438_s11 + $0x10] sm:$0xff] %vm459_vm0, %v1587_v34  ;;  %v1590_v27 = vadd.f32 %v1582_v44, %v1574_v43  ;;  %v1573_v55 = vadd.f32 %v2427_v48, %v1558_v28  ;;  %v1561_v56 = vadd.f32 %v1961_v45, %v1443_v47  ;;  %v1442_v3 = vadd.f32 %v1427_v53, %v1323_v10 }
 0x12d   : > { %1598 = vst.msk [vmem:[%s2438_s11 + $0x28] sm:$0xff] %vm459_vm0, %v1590_v27  ;;  %v1589_v49 = vadd.f32 %v1581_v50, %v1573_v55  ;;  %v1576_v62 = vadd.f32 %v2427_v48, %v1561_v56  ;;  %v1560_v0 = vadd.f32 %v1545_v32, %v1442_v3 }
 0x12f   : > { %1597 = vst.msk [vmem:[%s2438_s11 + $0x20] sm:$0xff] %vm459_vm0, %v1589_v49  ;;  %v1592_v46 = vadd.f32 %v1584_v58, %v1576_v62  ;;  %v1575_v57 = vadd.f32 %v2427_v48, %v1560_v0 }
 0x131   : > { %1600 = vst.msk [vmem:[%s2438_s11 + $0x38] sm:$0xff] %vm459_vm0, %v1592_v46  ;;  %v1591_v61 = vadd.f32 %v1583_v52, %v1575_v57 }
 0x133   : > { %1599 = vst.msk [vmem:[%s2438_s11 + $0x30] sm:$0xff] %vm459_vm0, %v1591_v61 }
 0x134 PF: > { %s16_s21 = sadd.s32 1, %s1980_s21  }
 0x135   : > { %p13_p4 = scmp.ge.s32.totalorder %s16_s21, 4  }
 0x137   :  { %15 = sbr.rel (!%p13_p4) target bundleno = 1 (0x1), region = 77 }

// kernel: _lambda_.10
= control target key start
LH: loop header
LB: loop body
LE: loop exit
PB: predicated region body
PF: predicated region fallthrough
CT: control target
= control target key end

     0   :  { %s3023_s18 = smov 0   ;;  %s4149_s0 = inlined_call_operand.vmem [shape: f32[1,4], index: 0, kind: input, shape index: {}]   ;;  %s4150_s1 = inlined_call_operand.vmem [shape: f32[1,4], index: 1, kind: input, shape index: {}]   ;;  %s4151_s2 = inlined_call_operand.vmem [shape: f32[2,20,20,4], index: 2, kind: input, shape index: {}]   ;;  %s4152_s3 = inlined_call_operand.vmem [shape: f32[9,4,8], index: 3, kind: input, shape index: {}]   ;;  %s4153_s4 = inlined_call_operand.vmem [shape: f32[1,8], index: 4, kind: input, shape index: {}]   ;;  %s4154_s5 = inlined_call_operand.vmem [shape: f32[2,8,8,8], index: 5, kind: output, shape index: {}]  }
   0x1 LB: > { %s2668_s19 = sadd.s32 4294967295, %s2989_s18   ;;  %p2672_p0 = scmp.ge.s32.totalorder %s2989_s18, 1  ;;  %s2989_s18 = sphi %s3023_s18, %s15_s18  }
   0x2   : > { %p187_p1 = scmp.lt.s32.totalorder %s2989_s18, 3 }
   0x4   : > { %p188_p2 = pnand %p2672_p0, %p187_p1 }
   0x6   : > { %191 = sbr.rel (%p188_p2) target bundleno = 374 (0x176), region = 40 }
   0xb   : > { %v256_v0 = vld [vmem:[%s4152_s3 + $0x4] sm:$0xf]  ;;  %vm1120_vm0 = vcmask 1043456   ;;  %v368_v1 = vlaneseq  ;;  %v2991_v2 = vmov 1983009808   ;;  %p215_p3 = scmp.lt.s32.totalorder %s2668_s19, 1 }
   0xc   : > { %2970 = vmatprep.subr.msk.mxu1 %vm1120_vm0, %v256_v0  ;;  %2844 = vmatprep.subr.msk.mxu0 %vm1120_vm0, %v256_v0  ;;  %v450_v3 = vunpack.c.l.s4 %v2991_v2  ;;  %v2992_v5 = vmov 0.0   ;;  %v3045_v8 = vld [vmem:[%s4152_s3] sm:$0xf]  ;;  %v3055_v10 = vld [vmem:[%s4152_s3 + $0x8] sm:$0xf]  ;;  %vm1040_vm1 = vcmask 1041409  }
   0xd   : > { %2971 = vmatpush3.msk.msra.mxu1 %vm1120_vm0, %v256_v0  ;;  %2845 = vmatpush3.msk.msra.mxu0 %vm1120_vm0, %v256_v0  ;;  %v3038_v4 = vshrl.u32 %v368_v1, 7  ;;  %v448_v6 = vcombine.high %v2992_v5, %v2992_v5  ;;  %s4283_s19 = smov (!%p215_p3, %s2668_s19), 1  ;;  %vm1042_vm2 = vcmask 1042434   ;;  %vm1044_vm3 = vcmask 1043459   ;;  %v3076_v15 = vld [vmem:[%s4149_s0] ss:$0 sm:$0xff] }
   0xe   : > { %v451_v7 = vunpack.c.0.s8 %v450_v3  ;;  %2858 = vmatprep.subr.msk.mxu1 %vm1120_vm0, %v3045_v8  ;;  %s2972_s26 = smul.u32 480, %s4283_s19  ;;  %2872 = vmatprep.subr.msk.mxu0 %vm1120_vm0, %v3055_v10  ;;  %vm1046_vm4 = vcmask 1044484   ;;  %vm1048_vm5 = vcmask 1045509   ;;  %vm1050_vm6 = vcmask 1046534   ;;  %4214 = vst [vmem:[#allocation5_spill] sm:$0xff] %v3076_v15  ;;  %s2762_s23 = sshll.u32 %s4283_s19, 6 }
   0xf   : > { %4211 = vst [vmem:[#allocation2_spill] sm:$0xff] %v3038_v4  ;;  %v3048_v9 = vadd.s32 16, %v3038_v4  ;;  %v3061_v12 = vsub.s32 0, %v3038_v4  ;;  %v3081_v16 = vld [vmem:[%s4150_s1] ss:$0 sm:$0xff]  ;;  %vm1052_vm7 = vcmask 1047559   ;;  %s4127_s19 = scalar_lea.vmem %s4154_s5, %s2762_s23 }
  0x10   : > { %v3058_v11 = vsub.s32 %v451_v7, %v3038_v4  ;;  %s3071_s29 = scalar_lea.vmem %s4151_s2, %s2972_s26  ;;  %4215 = vst [vmem:[#allocation6_spill] sm:$0xff] %v3081_v16  ;;  %vm372_vm8 = vcmp.ge.s32.totalorder %v3038_v4, 2  ;;  %vm1103_vm10 = vcmask 31744   ;;  %vm2604_vm11 = vcmask 64512  }
  0x11   : > { %4212 = vst [vmem:[#allocation3_spill] sm:$0xff] %v3048_v9  ;;  %v237_v17 = vld [vmem:[%s3071_s29 + $0xc0] sm:$0xff]  ;;  %v238_v18 = vld [vmem:[%s3071_s29 + $0xc8] sm:$0xff]  ;;  %v239_v19 = vld [vmem:[%s3071_s29 + $0xd0] sm:$0xf]  ;;  %vm383_vm9 = vcmp.lt.s32.totalorder %v3048_v9, 18 }
  0x12   : > { %4213 = vst [vmem:[#allocation4_spill] sm:$0xff] %v3058_v11  ;;  %v455_v13 = vrot.slane %v2992_v5, %v3058_v11  ;;  %v462_v14 = vrot.slane %v448_v6, %v3058_v11  ;;  %v228_v24 = vld [vmem:[%s3071_s29 + $0x30] sm:$0xff]  ;;  %v229_v25 = vld [vmem:[%s3071_s29 + $0x38] sm:$0xff]  ;;  %v230_v26 = vld [vmem:[%s3071_s29 + $0x40] sm:$0xf]  ;;  %v283_v27 = vmul.f32 %v3076_v15, %v237_v17  ;;  %v284_v28 = vmul.f32 %v3076_v15, %v238_v18 }
  0x13   : > { %v285_v29 = vmul.f32 %v3076_v15, %v239_v19  ;;  %v274_v30 = vmul.f32 %v3076_v15, %v228_v24  ;;  %v240_v31 = vld [vmem:[%s3071_s29 + $0xf0] sm:$0xff]  ;;  %v275_v34 = vmul.f32 %v3076_v15, %v229_v25  ;;  %v276_v35 = vmul.f32 %v3076_v15, %v230_v26 }
  0x14   : > { %v463_v20 = vcombine.high %v455_v13, %v455_v13  ;;  %v464_v21 = vcombine.high %v462_v14, %v462_v14  ;;  %v3089_v22 = vrot.slane %v462_v14, %v3061_v12  ;;  %v3092_v23 = vrot.slane %v455_v13, %v3061_v12 }
  0x15   : > { %v320_v36 = vadd.f32 %v3081_v16, %v283_v27  ;;  %v321_v37 = vadd.f32 %v3081_v16, %v284_v28  ;;  %v322_v38 = vadd.f32 %v3081_v16, %v285_v29  ;;  %v311_v39 = vadd.f32 %v3081_v16, %v274_v30 }
  0x16   : > { %v3103_v32 = vrot.slane %v463_v20, %v3061_v12  ;;  %v3106_v33 = vrot.slane %v464_v21, %v3061_v12  ;;  %v312_v41 = vadd.f32 %v3081_v16, %v275_v34  ;;  %v313_v42 = vadd.f32 %v3081_v16, %v276_v35  ;;  %v241_v20 = vld [vmem:[%s3071_s29 + $0xf8] sm:$0xff] }
  0x17   : > { %v3120_v43 = vmul.f32 %v3076_v15, %v240_v31  ;;  %v350_v45 = vmax.f32 %v320_v36, 0.0  ;;  %v351_v46 = vmax.f32 %v321_v37, 0.0  ;;  %v352_v47 = vmax.f32 %v322_v38, 0.0 }
  0x18   : > { %v1041_v40 = vsel %vm1040_vm1, %v3089_v22, %v3103_v32  ;;  %v341_v49 = vmax.f32 %v311_v39, 0.0  ;;  %v342_v50 = vmax.f32 %v312_v41, 0.0  ;;  %v343_v51 = vmax.f32 %v313_v42, 0.0 }
  0x19   : > { %v1043_v44 = vsel %vm1042_vm2, %v3106_v33, %v1041_v40  ;;  %v414_v53 = vsel %vm372_vm8, %v350_v45, 0.0  ;;  %v416_v54 = vsel %vm383_vm9, %v352_v47, 0.0  ;;  %v601_v55 = vcombine.high %v351_v46, %v351_v46 }
  0x1a   : > { %v1045_v48 = vsel %vm1044_vm3, %v3092_v23, %v1043_v44  ;;  %v584_v57 = vcombine.high %v414_v53, %v414_v53  ;;  %v3135_v58 = vrot.slane %v414_v53, %v3058_v11  ;;  %v608_v59 = vrot.slane %v351_v46, %v3058_v11  ;;  %v242_v46 = vld [vmem:[%s3071_s29 + $0x100] sm:$0xf] }
  0x1b   : > { %v1047_v52 = vsel %vm1046_vm4, %v3103_v32, %v1045_v48  ;;  %v615_v61 = vrot.slane %v601_v55, %v3058_v11  ;;  %v3142_v62 = vrot.slane %v416_v54, %v3058_v11  ;;  %v405_v63 = vsel %vm372_vm8, %v341_v49, 0.0  ;;  %v231_v55 = vld [vmem:[%s3071_s29 + $0x60] sm:$0xff] }
  0x1c   : > { %v1049_v56 = vsel %vm1048_vm5, %v3089_v22, %v1047_v52  ;;  %v598_v1 = vrot.slane %v584_v57, %v3058_v11  ;;  %v599_v2 = vcombine.high %v3135_v58, %v3135_v58  ;;  %v616_v3 = vcombine.high %v608_v59, %v608_v59 }
  0x1d   : > { %v1051_v60 = vsel %vm1050_vm6, %v3106_v33, %v1049_v56  ;;  %v617_v5 = vcombine.high %v615_v61, %v615_v61  ;;  %v3156_v6 = vrot.slane %v608_v59, %v3061_v12  ;;  %v3159_v7 = vrot.slane %v615_v61, %v3061_v12  ;;  %v232_v56 = vld [vmem:[%s3071_s29 + $0x68] sm:$0xff] }
  0x1e   : > { %v3148_v0 = vsel %vm1052_vm7, %v3092_v23, %v1051_v60  ;;  %v3163_v13 = vrot.slane %v3142_v62, %v3061_v12  ;;  %v600_v14 = vcombine.high %v598_v1, %v598_v1  ;;  %v3166_v17 = vrot.slane %v599_v2, %v3061_v12 }
  0x1f   : > { %4216 = vst [vmem:[#allocation7_spill] sm:$0xff] %v3148_v0  ;;  %2846 = vmatprep.mubr.msk.f32.mxu0 %vm1103_vm10, %v3148_v0  ;;  %v3169_v18 = vrot.slane %v598_v1, %v3061_v12  ;;  %v3172_v19 = vrot.slane %v616_v3, %v3061_v12  ;;  %v3176_v21 = vrot.slane %v617_v5, %v3061_v12  ;;  %v407_v24 = vsel %vm383_vm9, %v343_v51, 0.0  ;;  %v234_v0 = vld [vmem:[%s3071_s29 + $0x90] sm:$0xff] }
  0x20   : > { %4217 = vst [vmem:[#allocation8_spill] sm:$0xff] %v3163_v13  ;;  %v482_v25 = vcombine.high %v405_v63, %v405_v63  ;;  %v3181_v26 = vrot.slane %v405_v63, %v3058_v11  ;;  %v3184_v27 = vrot.slane %v600_v14, %v3061_v12  ;;  %v499_v29 = vcombine.high %v342_v50, %v342_v50  ;;  %v233_v63 = vld [vmem:[%s3071_s29 + $0x70] sm:$0xf] }
  0x21   : > { %4218 = vst [vmem:[#allocation9_spill] sm:$0xff] %v3176_v21  ;;  %v1075_v28 = vsel %vm1040_vm1, %v3169_v18, %v3166_v17  ;;  %v506_v30 = vrot.slane %v342_v50, %v3058_v11  ;;  %v3194_v35 = vrot.slane %v407_v24, %v3058_v11  ;;  %v287_v36 = vmul.f32 %v3076_v15, %v241_v20 }
  0x22   : > { %v496_v31 = vrot.slane %v482_v25, %v3058_v11  ;;  %v497_v34 = vcombine.high %v3181_v26, %v3181_v26  ;;  %v1076_v37 = vsel %vm1042_vm2, %v3184_v27, %v1075_v28  ;;  %v513_v38 = vrot.slane %v499_v29, %v3058_v11 }
  0x23   : > { %v514_v39 = vcombine.high %v506_v30, %v506_v30  ;;  %v3201_v40 = vrot.slane %v506_v30, %v3061_v12  ;;  %v1077_v41 = vsel %vm1044_vm3, %v3156_v6, %v1076_v37  ;;  %v3227_v53 = vrot.slane %v3194_v35, %v3061_v12 }
  0x24   : > { %v498_v42 = vcombine.high %v496_v31, %v496_v31  ;;  %v3206_v44 = vrot.slane %v497_v34, %v3061_v12  ;;  %v3209_v45 = vrot.slane %v496_v31, %v3061_v12  ;;  %v1078_v47 = vsel %vm1046_vm4, %v3172_v19, %v1077_v41 }
  0x25   : > { %v515_v48 = vcombine.high %v513_v38, %v513_v38  ;;  %v3215_v49 = vrot.slane %v514_v39, %v3061_v12  ;;  %v3218_v50 = vrot.slane %v513_v38, %v3061_v12  ;;  %v1079_v51 = vsel %vm1048_vm5, %v3159_v7, %v1078_v47 }
  0x26   : > { %v3223_v52 = vrot.slane %v498_v42, %v3061_v12  ;;  %v1054_v54 = vsel %vm1040_vm1, %v3209_v45, %v3206_v44  ;;  %v1080_v57 = vsel %vm1050_vm6, %v3176_v21, %v1079_v51  ;;  %v288_v61 = vmul.f32 %v3076_v15, %v242_v46 }
  0x27   : > { %v3237_v59 = vrot.slane %v515_v48, %v3061_v12  ;;  %v3245_v1 = vsel %vm1052_vm7, %v3163_v13, %v1080_v57  ;;  %v323_v3 = vadd.f32 %v3081_v16, %v3120_v43  ;;  %v324_v5 = vadd.f32 %v3081_v16, %v287_v36 }
  0x28   : > { %4219 = vst [vmem:[#allocation10_spill] sm:$0xff] %v3245_v1  ;;  %v1055_v2 = vsel %vm1042_vm2, %v3223_v52, %v1054_v54  ;;  %2852 = vmatprep.mubr.msk.f32.mxu1 %vm1103_vm10, %v3245_v1  ;;  %v325_v20 = vadd.f32 %v3081_v16, %v288_v61  ;;  %v277_v24 = vmul.f32 %v3076_v15, %v231_v55  ;;  %v3283_v54 = vld [vmem:[%s4152_s3 + $0x10] sm:$0xf] }
  0x29   : > { %v1056_v14 = vsel %vm1044_vm3, %v3201_v40, %v1055_v2  ;;  %v278_v25 = vmul.f32 %v3076_v15, %v232_v56  ;;  %v353_v29 = vmax.f32 %v323_v3, 0.0  ;;  %v354_v30 = vmax.f32 %v324_v5, 0.0 }
  0x2a   : > { %v1057_v28 = vsel %vm1046_vm4, %v3215_v49, %v1056_v14  ;;  %v279_v43 = vmul.f32 %v3076_v15, %v233_v63  ;;  %v355_v34 = vmax.f32 %v325_v20, 0.0  ;;  %v314_v36 = vadd.f32 %v3081_v16, %v277_v24  ;;  %v243_v14 = vld [vmem:[%s3071_s29 + $0x120] sm:$0xff] }
  0x2b   : > { %v1058_v31 = vsel %vm1048_vm5, %v3218_v50, %v1057_v28  ;;  %v315_v37 = vadd.f32 %v3081_v16, %v278_v25  ;;  %v417_v39 = vsel %vm372_vm8, %v353_v29, 0.0  ;;  %v635_v41 = vcombine.high %v354_v30, %v354_v30 }
  0x2c   : > { %v1059_v38 = vsel %vm1050_vm6, %v3237_v59, %v1058_v31  ;;  %v642_v42 = vrot.slane %v354_v30, %v3058_v11  ;;  %v419_v47 = vsel %vm383_vm9, %v355_v34, 0.0  ;;  %v618_v48 = vcombine.high %v417_v39, %v417_v39  ;;  %v244_v31 = vld [vmem:[%s3071_s29 + $0x128] sm:$0xff] }
  0x2d   : > { %v3273_v46 = vsel %vm1052_vm7, %v3227_v53, %v1059_v38  ;;  %v3278_v51 = vrot.slane %v417_v39, %v3058_v11  ;;  %v649_v55 = vrot.slane %v635_v41, %v3058_v11  ;;  %v3289_v57 = vrot.slane %v419_v47, %v3058_v11 }
  0x2e   : > { %4220 = vst [vmem:[#allocation11_spill] sm:$0xff] %v3273_v46  ;;  %2847 = vmatmul.mubr.msk.f32.vlgmr.msra.gmra.mxu0 %vm1103_vm10, %v3273_v46  ;;  %v650_v56 = vcombine.high %v642_v42, %v642_v42  ;;  %v3292_v61 = vrot.slane %v642_v42, %v3061_v12  ;;  %v632_v63 = vrot.slane %v618_v48, %v3058_v11  ;;  %v344_v5 = vmax.f32 %v314_v36, 0.0 }
  0x2f   : > { %4221 = vst [vmem:[#allocation12_spill] sm:$0xff] %v3289_v57  ;;  %v633_v2 = vcombine.high %v3278_v51, %v3278_v51  ;;  %2873 = vmatpush3.msk.msra.mxu0 %vm1120_vm0, %v3055_v10  ;;  %v316_v3 = vadd.f32 %v3081_v16, %v279_v43  ;;  %v651_v20 = vcombine.high %v649_v55, %v649_v55  ;;  %v345_v43 = vmax.f32 %v315_v37, 0.0 }
  0x30   : > { %4222 = vst [vmem:[#allocation13_spill] sm:$0xff] %v3292_v61  ;;  %v3302_v24 = vrot.slane %v650_v56, %v3061_v12  ;;  %v3305_v25 = vrot.slane %v649_v55, %v3061_v12  ;;  %v3309_v28 = vrot.slane %v3289_v57, %v3061_v12  ;;  %2900 = vmatprep.subr.msk.mxu0 %vm1120_vm0, %v3283_v54  ;;  %v408_v38 = vsel %vm372_vm8, %v344_v5, 0.0 }
  0x31   : > { %v634_v29 = vcombine.high %v632_v63, %v632_v63  ;;  %v3314_v10 = vrot.slane %v633_v2, %v3061_v12  ;;  %v3317_v30 = vrot.slane %v632_v63, %v3061_v12  ;;  %v3321_v34 = vrot.slane %v651_v20, %v3061_v12 }
  0x32   : > { %4223 = vst [vmem:[#allocation14_spill] sm:$0xff] %v3302_v24  ;;  %4224 = vst [vmem:[#allocation15_spill] sm:$0xff] %v3305_v25  ;;  %v346_v36 = vmax.f32 %v316_v3, 0.0  ;;  %v289_v39 = vmul.f32 %v3076_v15, %v243_v14  ;;  %v516_v47 = vcombine.high %v408_v38, %v408_v38  ;;  %v3333_v37 = vrot.slane %v408_v38, %v3058_v11 }
  0x33   : > { %4225 = vst [vmem:[#allocation16_spill] sm:$0xff] %v3309_v28  ;;  %4226 = vst [vmem:[#allocation17_spill] sm:$0xff] %v3314_v10  ;;  %v3327_v41 = vrot.slane %v634_v29, %v3061_v12  ;;  %v1082_v42 = vsel %vm1040_vm1, %v3317_v30, %v3314_v10  ;;  %v533_v55 = vcombine.high %v345_v43, %v345_v43 }
  0x34   : > { %4227 = vst [vmem:[#allocation18_spill] sm:$0xff] %v3317_v30  ;;  %4228 = vst [vmem:[#allocation19_spill] sm:$0xff] %v3321_v34  ;;  %v410_v48 = vsel %vm383_vm9, %v346_v36, 0.0  ;;  %v540_v56 = vrot.slane %v345_v43, %v3058_v11  ;;  %v290_v63 = vmul.f32 %v3076_v15, %v244_v31  ;;  %v530_v3 = vrot.slane %v516_v47, %v3058_v11 }
  0x35   : > { %4229 = vst [vmem:[#allocation20_spill] sm:$0xff] %v3327_v41  ;;  %v1083_v2 = vsel %vm1042_vm2, %v3327_v41, %v1082_v42  ;;  %v531_v5 = vcombine.high %v3333_v37, %v3333_v37  ;;  %v3345_v14 = vrot.slane %v410_v48, %v3058_v11  ;;  %v547_v29 = vrot.slane %v533_v55, %v3058_v11  ;;  %v245_v48 = vld [vmem:[%s3071_s29 + $0x130] sm:$0xf] }
  0x36   : > { %v1084_v20 = vsel %vm1044_vm3, %v3292_v61, %v1083_v2  ;;  %v548_v43 = vcombine.high %v540_v56, %v540_v56  ;;  %v3351_v31 = vrot.slane %v540_v56, %v3061_v12  ;;  %v532_v38 = vcombine.high %v530_v3, %v530_v3 }
  0x37   : > { %v1085_v36 = vsel %vm1046_vm4, %v3302_v24, %v1084_v20  ;;  %v3356_v42 = vrot.slane %v531_v5, %v3061_v12  ;;  %v3359_v47 = vrot.slane %v530_v3, %v3061_v12  ;;  %v549_v55 = vcombine.high %v547_v29, %v547_v29  ;;  %v235_v20 = vld [vmem:[%s3071_s29 + $0x98] sm:$0xff] }
  0x38   : > { %v1086_v2 = vsel %vm1048_vm5, %v3305_v25, %v1085_v36  ;;  %v3365_v60 = vrot.slane %v548_v43, %v3061_v12  ;;  %v3368_v56 = vrot.slane %v547_v29, %v3061_v12  ;;  %v3375_v1 = vrot.slane %v532_v38, %v3061_v12  ;;  %v236_v36 = vld [vmem:[%s3071_s29 + $0xa0] sm:$0xf] }
  0x39   : > { %v1087_v5 = vsel %vm1050_vm6, %v3321_v34, %v1086_v2  ;;  %v3379_v3 = vrot.slane %v3345_v14, %v3061_v12  ;;  %v1061_v43 = vsel %vm1040_vm1, %v3359_v47, %v3356_v42  ;;  %v3390_v46 = vrot.slane %v549_v55, %v3061_v12  ;;  %v3397_v34 = vld [vmem:[%s4152_s3 + $0xc] sm:$0xf] }
  0x3a   : > { %v3387_v29 = vsel %vm1052_vm7, %v3309_v28, %v1087_v5  ;;  %v291_v2 = vmul.f32 %v3076_v15, %v245_v48  ;;  %v326_v38 = vadd.f32 %v3081_v16, %v289_v39  ;;  %v1062_v25 = vsel %vm1042_vm2, %v3375_v1, %v1061_v43 }
  0x3b   : > { %4230 = vst [vmem:[#allocation21_spill] sm:$0xff] %v3387_v29  ;;  %2853 = vmatmul.mubr.msk.f32.vlgmr.msra.gmra.mxu1 %vm1103_vm10, %v3387_v29  ;;  %v327_v5 = vadd.f32 %v3081_v16, %v290_v63  ;;  %v280_v55 = vmul.f32 %v3076_v15, %v234_v0  ;;  %v281_v28 = vmul.f32 %v3076_v15, %v235_v20 }
  0x3c   : > { %2859 = vmatpush3.msk.msra.mxu1 %vm1120_vm0, %v3045_v8  ;;  %v1063_v39 = vsel %vm1044_vm3, %v3351_v31, %v1062_v25  ;;  %v328_v48 = vadd.f32 %v3081_v16, %v291_v2  ;;  %v356_v13 = vmax.f32 %v326_v38, 0.0  ;;  %v282_v29 = vmul.f32 %v3076_v15, %v236_v36 }
  0x3d   : > { %v1064_v43 = vsel %vm1046_vm4, %v3365_v60, %v1063_v39  ;;  %v357_v24 = vmax.f32 %v327_v5, 0.0  ;;  %v317_v63 = vadd.f32 %v3081_v16, %v280_v55  ;;  %v318_v0 = vadd.f32 %v3081_v16, %v281_v28  ;;  %2886 = vmatprep.subr.msk.mxu1 %vm1120_vm0, %v3397_v34 }
  0x3e   : > { %v1065_v8 = vsel %vm1048_vm5, %v3368_v56, %v1064_v43  ;;  %v358_v25 = vmax.f32 %v328_v48, 0.0  ;;  %v420_v20 = vsel %vm372_vm8, %v356_v13, 0.0  ;;  %v319_v36 = vadd.f32 %v3081_v16, %v282_v29 }
  0x3f   : > { %v1066_v2 = vsel %vm1050_vm6, %v3390_v46, %v1065_v8  ;;  %v652_v38 = vcombine.high %v420_v20, %v420_v20  ;;  %v3426_v5 = vrot.slane %v420_v20, %v3058_v11  ;;  %v669_v28 = vcombine.high %v357_v24, %v357_v24 }
  0x40   : > { %v3430_v55 = vsel %vm1052_vm7, %v3379_v3, %v1066_v2  ;;  %v422_v39 = vsel %vm383_vm9, %v358_v25, 0.0  ;;  %v676_v48 = vrot.slane %v357_v24, %v3058_v11  ;;  %v347_v13 = vmax.f32 %v317_v63, 0.0 }
  0x41   : > { %4231 = vst [vmem:[#allocation22_spill] sm:$0xff] %v3426_v5  ;;  %4232 = vst [vmem:[#allocation23_spill] sm:$0xff] %v3430_v55  ;;  %2849 = vmatprep.mubr.msk.f32.mxu0 %vm1103_vm10, %v3430_v55  ;;  %v666_v29 = vrot.slane %v652_v38, %v3058_v11  ;;  %v667_v43 = vcombine.high %v3426_v5, %v3426_v5  ;;  %v683_v8 = vrot.slane %v669_v28, %v3058_v11 }
  0x42   : > { %v3442_v20 = vrot.slane %v422_v39, %v3058_v11  ;;  %v684_v2 = vcombine.high %v676_v48, %v676_v48  ;;  %v3445_v25 = vrot.slane %v676_v48, %v3061_v12  ;;  %v348_v24 = vmax.f32 %v318_v0, 0.0  ;;  %v247_v48 = vld [vmem:[%s3071_s29 + $0x158] sm:$0xff] }
  0x43   : > { %v349_v63 = vmax.f32 %v319_v36, 0.0  ;;  %v668_v61 = vcombine.high %v666_v29, %v666_v29  ;;  %v685_v55 = vcombine.high %v683_v8, %v683_v8  ;;  %v3448_v38 = vrot.slane %v667_v43, %v3061_v12  ;;  %v246_v36 = vld [vmem:[%s3071_s29 + $0x150] sm:$0xff] }
  0x44   : > { %4233 = vst [vmem:[#allocation24_spill] sm:$0xff] %v3442_v20  ;;  %4234 = vst [vmem:[#allocation25_spill] sm:$0xff] %v3445_v25  ;;  %v3451_v10 = vrot.slane %v666_v29, %v3061_v12  ;;  %v3454_v5 = vrot.slane %v684_v2, %v3061_v12  ;;  %v3457_v28 = vrot.slane %v683_v8, %v3061_v12  ;;  %v411_v0 = vsel %vm372_vm8, %v347_v13, 0.0 }
  0x45   : > { %4235 = vst [vmem:[#allocation26_spill] sm:$0xff] %v3448_v38  ;;  %v3461_v39 = vrot.slane %v3442_v20, %v3061_v12  ;;  %v3468_v43 = vrot.slane %v668_v61, %v3061_v12  ;;  %v3471_v29 = vrot.slane %v685_v55, %v3061_v12  ;;  %v413_v2 = vsel %vm383_vm9, %v349_v63, 0.0 }
  0x46   : > { %4236 = vst [vmem:[#allocation27_spill] sm:$0xff] %v3451_v10  ;;  %4237 = vst [vmem:[#allocation28_spill] sm:$0xff] %v3454_v5  ;;  %v1089_v8 = vsel %vm1040_vm1, %v3451_v10, %v3448_v38  ;;  %v550_v20 = vcombine.high %v411_v0, %v411_v0  ;;  %v3479_v21 = vrot.slane %v411_v0, %v3058_v11 }
  0x47   : > { %4238 = vst [vmem:[#allocation29_spill] sm:$0xff] %v3457_v28  ;;  %4239 = vst [vmem:[#allocation30_spill] sm:$0xff] %v3461_v39  ;;  %v567_v13 = vcombine.high %v348_v24, %v348_v24  ;;  %v574_v41 = vrot.slane %v348_v24, %v3058_v11  ;;  %v1090_v61 = vsel %vm1042_vm2, %v3468_v43, %v1089_v8 }
  0x48   : > { %4240 = vst [vmem:[#allocation31_spill] sm:$0xff] %v3468_v43  ;;  %4241 = vst [vmem:[#allocation32_spill] sm:$0xff] %v3471_v29  ;;  %v3485_v55 = vrot.slane %v413_v2, %v3058_v11  ;;  %v292_v30 = vmul.f32 %v3076_v15, %v246_v36  ;;  %v293_v10 = vmul.f32 %v3076_v15, %v247_v48  ;;  %v248_v48 = vld [vmem:[%s3071_s29 + $0x160] sm:$0xf] }
  0x49   : > { %v1091_v63 = vsel %vm1044_vm3, %v3445_v25, %v1090_v61  ;;  %v564_v38 = vrot.slane %v550_v20, %v3058_v11  ;;  %v565_v0 = vcombine.high %v3479_v21, %v3479_v21  ;;  %v581_v24 = vrot.slane %v567_v13, %v3058_v11 }
  0x4a   : > { %v1092_v8 = vsel %vm1046_vm4, %v3454_v5, %v1091_v63  ;;  %v582_v43 = vcombine.high %v574_v41, %v574_v41  ;;  %v3498_v2 = vrot.slane %v574_v41, %v3061_v12  ;;  %v3502_v36 = vrot.slane %v3485_v55, %v3061_v12 }
  0x4b   : > { %v1093_v20 = vsel %vm1048_vm5, %v3457_v28, %v1092_v8  ;;  %v566_v61 = vcombine.high %v564_v38, %v564_v38  ;;  %v583_v25 = vcombine.high %v581_v24, %v581_v24  ;;  %v3508_v57 = vrot.slane %v565_v0, %v3061_v12 }
  0x4c   : > { %v1094_v13 = vsel %vm1050_vm6, %v3471_v29, %v1093_v20  ;;  %v3513_v63 = vrot.slane %v564_v38, %v3061_v12  ;;  %v3516_v41 = vrot.slane %v582_v43, %v3061_v12  ;;  %v3519_v5 = vrot.slane %v581_v24, %v3061_v12 }
  0x4d   : > { %v3523_v8 = vsel %vm1052_vm7, %v3461_v39, %v1094_v13  ;;  %v3526_v28 = vrot.slane %v566_v61, %v3061_v12  ;;  %v3529_v0 = vrot.slane %v583_v25, %v3061_v12  ;;  %v294_v20 = vmul.f32 %v3076_v15, %v248_v48 }
  0x4e   : > { %4242 = vst [vmem:[#allocation33_spill] sm:$0xff] %v3523_v8  ;;  %2855 = vmatprep.mubr.msk.f32.mxu1 %vm1103_vm10, %v3523_v8  ;;  %v1068_v38 = vsel %vm1040_vm1, %v3513_v63, %v3508_v57  ;;  %v329_v43 = vadd.f32 %v3081_v16, %v292_v30  ;;  %v330_v24 = vadd.f32 %v3081_v16, %v293_v10 }
  0x4f   : > { %v1261_v61 = vsel %vm1040_vm1, %v3103_v32, %v3092_v23  ;;  %v1069_v25 = vsel %vm1042_vm2, %v3526_v28, %v1068_v38  ;;  %v331_v48 = vadd.f32 %v3081_v16, %v294_v20  ;;  %v1481_v8 = vsel %vm1040_vm1, %v3106_v33, %v3089_v22 }
  0x50   : > { %v1262_v13 = vsel %vm1042_vm2, %v3089_v22, %v1261_v61  ;;  %v1070_v30 = vsel %vm1044_vm3, %v3498_v2, %v1069_v25  ;;  %v359_v10 = vmax.f32 %v329_v43, 0.0  ;;  %v360_v15 = vmax.f32 %v330_v24, 0.0 }
  0x51   : > { %v1263_v39 = vsel %vm1044_vm3, %v3106_v33, %v1262_v13  ;;  %v1071_v38 = vsel %vm1046_vm4, %v3516_v41, %v1070_v30  ;;  %v361_v29 = vmax.f32 %v331_v48, 0.0  ;;  %v1482_v61 = vsel %vm1042_vm2, %v3092_v23, %v1481_v8 }
  0x52   : > { %v1264_v20 = vsel %vm1046_vm4, %v3092_v23, %v1263_v39  ;;  %v1072_v16 = vsel %vm1048_vm5, %v3519_v5, %v1071_v38  ;;  %v423_v43 = vsel %vm372_vm8, %v359_v10, 0.0  ;;  %v703_v24 = vcombine.high %v360_v15, %v360_v15 }
  0x53   : > { %v710_v25 = vrot.slane %v360_v15, %v3058_v11  ;;  %v1073_v13 = vsel %vm1050_vm6, %v3529_v0, %v1072_v16  ;;  %v425_v48 = vsel %vm383_vm9, %v361_v29, 0.0  ;;  %v686_v30 = vcombine.high %v423_v43, %v423_v43 }
  0x54   : > { %v3570_v39 = vrot.slane %v423_v43, %v3058_v11  ;;  %v3574_v8 = vsel %vm1052_vm7, %v3502_v36, %v1073_v13  ;;  %v717_v38 = vrot.slane %v703_v24, %v3058_v11  ;;  %v3578_v4 = vrot.slane %v425_v48, %v3058_v11 }
  0x55   : > { %4243 = vst [vmem:[#allocation34_spill] sm:$0xff] %v3574_v8  ;;  %v718_v10 = vcombine.high %v710_v25, %v710_v25  ;;  %2850 = vmatmul.mubr.msk.f32.gmra.mxu0 %vm1103_vm10, %v3574_v8  ;;  %v700_v15 = vrot.slane %v686_v30, %v3058_v11  ;;  %v3586_v29 = vrot.slane %v710_v25, %v3061_v12 }
  0x56   : > { %4244 = vst [vmem:[#allocation35_spill] sm:$0xff] %v3578_v4  ;;  %v701_v16 = vcombine.high %v3570_v39, %v3570_v39  ;;  %v1265_v43 = vsel %vm1048_vm5, %v3103_v32, %v1264_v20  ;;  %v719_v13 = vcombine.high %v717_v38, %v717_v38  ;;  %v3594_v48 = vrot.slane %v717_v38, %v3061_v12 }
  0x57   : > { %v3591_v24 = vrot.slane %v718_v10, %v3061_v12  ;;  %v3598_v8 = vrot.slane %v3578_v4, %v3061_v12  ;;  %v702_v30 = vcombine.high %v700_v15, %v700_v15  ;;  %v3604_v25 = vrot.slane %v700_v15, %v3061_v12 }
  0x58   : > { %v3601_v9 = vrot.slane %v701_v16, %v3061_v12  ;;  %v1266_v20 = vsel %vm1050_vm6, %v3089_v22, %v1265_v43  ;;  %v3609_v10 = vrot.slane %v719_v13, %v3061_v12  ;;  %v1483_v11 = vsel %vm1044_vm3, %v3103_v32, %v1482_v61 }
  0x59   : > { %v3613_v38 = vsel %vm1052_vm7, %v3106_v33, %v1266_v20  ;;  %v1236_v16 = vrot.slane %v3181_v26, %v3061_v12  ;;  %v3620_v4 = vrot.slane %v702_v30, %v3061_v12  ;;  %v1484_v43 = vsel %vm1046_vm4, %v3089_v22, %v1483_v11 }
  0x5a   : > { %4245 = vst [vmem:[#allocation36_spill] sm:$0xff] %v3601_v9  ;;  %v1096_v15 = vsel %vm1040_vm1, %v3604_v25, %v3601_v9  ;;  %v4246_v13 = vcombine.high %v3194_v35, %v3194_v35  ;;  %v1485_v61 = vsel %vm1048_vm5, %v3106_v33, %v1484_v43  ;;  %v1488_v30 = vsel %vm1040_vm1, %v3223_v52, %v3209_v45 }
  0x5b   : > { %v1268_v26 = vsel %vm1040_vm1, %v3206_v44, %v1236_v16  ;;  %v1240_v9 = vrot.slane %v3333_v37, %v3061_v12  ;;  %v1097_v11 = vsel %vm1042_vm2, %v3620_v4, %v1096_v15  ;;  %v1486_v22 = vsel %vm1050_vm6, %v3092_v23, %v1485_v61 }
  0x5c   : > { %v1456_v20 = vrot.slane %v4246_v13, %v3061_v12  ;;  %v1269_v35 = vsel %vm1042_vm2, %v3209_v45, %v1268_v26  ;;  %v1489_v33 = vsel %vm1042_vm2, %v3201_v40, %v1488_v30  ;;  %v1098_v44 = vsel %vm1044_vm3, %v3586_v29, %v1097_v11 }
  0x5d   : > { %v3652_v16 = vsel %vm1052_vm7, %v3103_v32, %v1486_v22  ;;  %v1270_v37 = vsel %vm1044_vm3, %v3223_v52, %v1269_v35  ;;  %v1490_v15 = vsel %vm1044_vm3, %v3215_v49, %v1489_v33  ;;  %v1099_v23 = vsel %vm1046_vm4, %v3591_v24, %v1098_v44 }
  0x5e   : > { %2874 = vmatprep.mubr.msk.f32.mxu0 %vm1103_vm10, %v3652_v16  ;;  %v1271_v45 = vsel %vm1046_vm4, %v3201_v40, %v1270_v37  ;;  %v1491_v43 = vsel %vm1046_vm4, %v3218_v50, %v1490_v15  ;;  %v1275_v32 = vsel %vm1040_vm1, %v3356_v42, %v1240_v9  ;;  %v1100_v52 = vsel %vm1048_vm5, %v3594_v48, %v1099_v23 }
  0x5f   : > { %v1272_v13 = vsel %vm1048_vm5, %v3215_v49, %v1271_v45  ;;  %v1492_v61 = vsel %vm1048_vm5, %v3237_v59, %v1491_v43  ;;  %v1276_v26 = vsel %vm1042_vm2, %v3359_v47, %v1275_v32  ;;  %v1101_v40 = vsel %vm1050_vm6, %v3609_v10, %v1100_v52 }
  0x60   : > { %v1273_v30 = vsel %vm1050_vm6, %v3218_v50, %v1272_v13  ;;  %v1493_v9 = vsel %vm1050_vm6, %v3227_v53, %v1492_v61  ;;  %v1277_v42 = vsel %vm1044_vm3, %v3375_v1, %v1276_v26  ;;  %v3686_v49 = vsel %vm1052_vm7, %v3598_v8, %v1101_v40  ;;  %v3700_v53 = vld [vmem:[%s4152_s3 + $0x18] sm:$0xf] }
  0x61   : > { %v3690_v11 = vsel %vm1052_vm7, %v3237_v59, %v1273_v30  ;;  %v3693_v22 = vsel %vm1052_vm7, %v1456_v20, %v1493_v9  ;;  %v1278_v50 = vsel %vm1046_vm4, %v3351_v31, %v1277_v42  ;;  %2856 = vmatmul.mubr.msk.f32.gmra.mxu1 %vm1103_vm10, %v3686_v49  ;;  %v1443_v20 = vcombine.high %v3345_v14, %v3345_v14  ;;  %v4247_v42 = vld [vmem:[#allocation12_spill] sm:$0xff] }
  0x62   : > { %2875 = vmatmul.mubr.msk.f32.vlgmr.msra.gmra.mxu0 %vm1103_vm10, %v3693_v22  ;;  %v1279_v59 = vsel %vm1048_vm5, %v3365_v60, %v1278_v50  ;;  %v1495_v35 = vsel %vm1040_vm1, %v3375_v1, %v3359_v47  ;;  %2860 = vmatprep.mubr.msk.f32.mxu1 %vm1103_vm10, %v3613_v38  ;;  %v1244_v37 = vrot.slane %v3479_v21, %v3061_v12 }
  0x63   : > { %2901 = vmatpush3.msk.msra.mxu0 %vm1120_vm0, %v3283_v54  ;;  %v1280_v33 = vsel %vm1050_vm6, %v3368_v56, %v1279_v59  ;;  %v1496_v44 = vsel %vm1042_vm2, %v3351_v31, %v1495_v35  ;;  %v1460_v1 = vrot.slane %v1443_v20, %v3061_v12  ;;  %v1444_v54 = vcombine.high %v3485_v55, %v3485_v55  ;;  %v4248_v59 = vld [vmem:[#allocation18_spill] sm:$0xff]  ;;  %v4249_v20 = vld [vmem:[#allocation20_spill] sm:$0xff] }
  0x64   : > { %v3725_v14 = vsel %vm1052_vm7, %v3390_v46, %v1280_v33  ;;  %v1497_v47 = vsel %vm1044_vm3, %v3365_v60, %v1496_v44  ;;  %2928 = vmatprep.subr.msk.mxu0 %vm1120_vm0, %v3700_v53  ;;  %v1282_v21 = vsel %vm1040_vm1, %v3508_v57, %v1244_v37  ;;  %v1502_v15 = vsel %vm1040_vm1, %v3526_v28, %v3513_v63  ;;  %v3746_v60 = vld [vmem:[%s4152_s3 + $0x14] sm:$0xf]  ;;  %v4250_v33 = vld [vmem:[#allocation9_spill] sm:$0xff] }
  0x65   : > { %v1498_v31 = vsel %vm1046_vm4, %v3368_v56, %v1497_v47  ;;  %v1248_v23 = vrot.slane %v3135_v58, %v3061_v12  ;;  %2861 = vmatmul.mubr.msk.f32.vlgmr.msra.gmra.mxu1 %vm1103_vm10, %v3690_v11  ;;  %v1283_v57 = vsel %vm1042_vm2, %v3513_v63, %v1282_v21  ;;  %v1464_v55 = vrot.slane %v1444_v54, %v3061_v12  ;;  %v4253_v21 = vld [vmem:[#allocation14_spill] sm:$0xff] }
  0x66   : > { %v1499_v56 = vsel %vm1048_vm5, %v3390_v46, %v1498_v31  ;;  %v1503_v45 = vsel %vm1042_vm2, %v3498_v2, %v1502_v15  ;;  %2887 = vmatpush3.msk.msra.mxu1 %vm1120_vm0, %v3397_v34  ;;  %2863 = vmatprep.mubr.msk.f32.mxu1 %vm1103_vm10, %v3725_v14  ;;  %v1284_v46 = vsel %vm1044_vm3, %v3526_v28, %v1283_v57  ;;  %v4254_v15 = vld [vmem:[#allocation8_spill] sm:$0xff]  ;;  %v4255_v57 = vld [vmem:[#allocation15_spill] sm:$0xff] }
  0x67   : > { %v1500_v58 = vsel %vm1050_vm6, %v3379_v3, %v1499_v56  ;;  %v1504_v63 = vsel %vm1044_vm3, %v3516_v41, %v1503_v45  ;;  %v1285_v32 = vsel %vm1046_vm4, %v3498_v2, %v1284_v46  ;;  %v1289_v52 = vsel %vm1040_vm1, %v3166_v17, %v1248_v23  ;;  %2914 = vmatprep.subr.msk.mxu1 %vm1120_vm0, %v3746_v60  ;;  %v4256_v45 = vld [vmem:[#allocation22_spill] sm:$0xff] }
  0x68   : > { %v3768_v43 = vsel %vm1052_vm7, %v1460_v1, %v1500_v58  ;;  %v1505_v34 = vsel %vm1046_vm4, %v3519_v5, %v1504_v63  ;;  %v1286_v3 = vsel %vm1048_vm5, %v3516_v41, %v1285_v32  ;;  %v1290_v2 = vsel %vm1042_vm2, %v3169_v18, %v1289_v52  ;;  %v4252_v1 = vld [vmem:[#allocation13_spill] sm:$0xff]  ;;  %v4257_v32 = vld [vmem:[#allocation19_spill] sm:$0xff]  ;;  %v4258_v52 = vld [vmem:[#allocation24_spill] sm:$0xff] }
  0x69   : > { %2877 = vmatprep.mubr.msk.f32.mxu0 %vm1103_vm10, %v3768_v43  ;;  %v1506_v28 = vsel %vm1048_vm5, %v3529_v0, %v1505_v34  ;;  %v1445_v13 = vcombine.high %v3142_v62, %v3142_v62  ;;  %v1287_v17 = vsel %vm1050_vm6, %v3519_v5, %v1286_v3  ;;  %v1291_v26 = vsel %vm1044_vm3, %v3184_v27, %v1290_v2  ;;  %v4259_v2 = vld [vmem:[#allocation16_spill] sm:$0xff] }
  0x6a   : > { %v1507_v61 = vsel %vm1050_vm6, %v3502_v36, %v1506_v28  ;;  %v1509_v41 = vsel %vm1040_vm1, %v3184_v27, %v3169_v18  ;;  %v3799_v40 = vsel %vm1052_vm7, %v3529_v0, %v1287_v17  ;;  %v1292_v62 = vsel %vm1046_vm4, %v3156_v6, %v1291_v26  ;;  %v4260_v17 = vld [vmem:[#allocation26_spill] sm:$0xff]  ;;  %v4261_v26 = vld [vmem:[#allocation27_spill] sm:$0xff] }
  0x6b   : > { %v3802_v30 = vsel %vm1052_vm7, %v1464_v55, %v1507_v61  ;;  %v1468_v5 = vrot.slane %v1445_v13, %v3061_v12  ;;  %2864 = vmatmul.mubr.msk.f32.gmra.mxu1 %vm1103_vm10, %v3799_v40  ;;  %v1293_v18 = vsel %vm1048_vm5, %v3172_v19, %v1292_v62  ;;  %v1510_v27 = vsel %vm1042_vm2, %v3156_v6, %v1509_v41  ;;  %v4262_v41 = vld [vmem:[#allocation31_spill] sm:$0xff] }
  0x6c   : > { %2878 = vmatmul.mubr.msk.f32.gmra.mxu0 %vm1103_vm10, %v3802_v30  ;;  %v1252_v36 = vrot.slane %v3278_v51, %v3061_v12  ;;  %v1294_v0 = vsel %vm1050_vm6, %v3159_v7, %v1293_v18  ;;  %v1511_v9 = vsel %vm1044_vm3, %v3172_v19, %v1510_v27  ;;  %v1446_v50 = vcombine.high %v4247_v42, %v4247_v42  ;;  %v4251_v51 = vld [vmem:[#allocation17_spill] sm:$0xff] }
  0x6d   : > { %v1516_v35 = vsel %vm1040_vm1, %v4249_v20, %v4248_v59  ;;  %v3828_v44 = vsel %vm1052_vm7, %v4250_v33, %v1294_v0  ;;  %v1512_v6 = vsel %vm1046_vm4, %v3159_v7, %v1511_v9  ;;  %v1256_v58 = vrot.slane %v4256_v45, %v3061_v12  ;;  %v4263_v42 = vld [vmem:[#allocation25_spill] sm:$0xff]  ;;  %v251_v45 = vld [vmem:[%s3071_s29 + $0x190] sm:$0xf] }
  0x6e   : > { %v1296_v37 = vsel %vm1040_vm1, %v4251_v51, %v1252_v36  ;;  %v1517_v19 = vsel %vm1042_vm2, %v4252_v1, %v1516_v35  ;;  %2866 = vmatprep.mubr.msk.f32.mxu1 %vm1103_vm10, %v3828_v44  ;;  %v1513_v47 = vsel %vm1048_vm5, %v4250_v33, %v1512_v6  ;;  %v1472_v31 = vrot.slane %v1446_v50, %v3061_v12  ;;  %v4264_v35 = vld [vmem:[#allocation28_spill] sm:$0xff]  ;;  %v4265_v6 = vld [vmem:[#allocation35_spill] sm:$0xff] }
  0x6f   : > { %v1297_v54 = vsel %vm1042_vm2, %v4248_v59, %v1296_v37  ;;  %v1518_v7 = vsel %vm1044_vm3, %v4253_v21, %v1517_v19  ;;  %v1514_v23 = vsel %vm1050_vm6, %v4254_v15, %v1513_v47  ;;  %v1447_v3 = vcombine.high %v4258_v52, %v4258_v52  ;;  %v4267_v47 = vld [vmem:[#allocation36_spill] sm:$0xff] }
  0x70   : > { %v1298_v56 = vsel %vm1044_vm3, %v4249_v20, %v1297_v54  ;;  %v1519_v55 = vsel %vm1046_vm4, %v4255_v57, %v1518_v7  ;;  %v3854_v46 = vsel %vm1052_vm7, %v1468_v5, %v1514_v23  ;;  %v1303_v61 = vsel %vm1040_vm1, %v4260_v17, %v1256_v58  ;;  %v4268_v15 = vld [vmem:[#allocation32_spill] sm:$0xff] }
  0x71   : > { %v1299_v63 = vsel %vm1046_vm4, %v4252_v1, %v1298_v56  ;;  %v1520_v34 = vsel %vm1048_vm5, %v4257_v32, %v1519_v55  ;;  %2880 = vmatprep.mubr.msk.f32.mxu0 %vm1103_vm10, %v3854_v46  ;;  %v1523_v62 = vsel %vm1040_vm1, %v4262_v41, %v4261_v26  ;;  %v1304_v27 = vsel %vm1042_vm2, %v4261_v26, %v1303_v61  ;;  %v4266_v1 = vld [vmem:[#allocation29_spill] sm:$0xff]  ;;  %v250_v55 = vld [vmem:[%s3071_s29 + $0x188] sm:$0xff] }
  0x72   : > { %v1300_v28 = vsel %vm1048_vm5, %v4253_v21, %v1299_v63  ;;  %v1521_v13 = vsel %vm1050_vm6, %v4259_v2, %v1520_v34  ;;  %v1476_v36 = vrot.slane %v1447_v3, %v3061_v12  ;;  %v1305_v9 = vsel %vm1044_vm3, %v4262_v41, %v1304_v27  ;;  %v249_v21 = vld [vmem:[%s3071_s29 + $0x180] sm:$0xff]  ;;  %v4270_v2 = vld [vmem:[#allocation5_spill] sm:$0xff] }
  0x73   : > { %v1301_v5 = vsel %vm1050_vm6, %v4255_v57, %v1300_v28  ;;  %v3876_v18 = vsel %vm1052_vm7, %v1472_v31, %v1521_v13  ;;  %v1524_v50 = vsel %vm1042_vm2, %v4263_v42, %v1523_v62  ;;  %v1260_v59 = vrot.slane %v3570_v39, %v3061_v12  ;;  %v4269_v63 = vld [vmem:[#allocation30_spill] sm:$0xff] }
  0x74   : > { %v3883_v0 = vsel %vm1052_vm7, %v4257_v32, %v1301_v5  ;;  %2881 = vmatmul.mubr.msk.f32.gmra.mxu0 %vm1103_vm10, %v3876_v18  ;;  %v1306_v20 = vsel %vm1046_vm4, %v4263_v42, %v1305_v9  ;;  %v1525_v33 = vsel %vm1044_vm3, %v4264_v35, %v1524_v50  ;;  %v1448_v51 = vcombine.high %v4265_v6, %v4265_v6  ;;  %v4271_v62 = vld [vmem:[#allocation6_spill] sm:$0xff] }
  0x75   : > { %2867 = vmatmul.mubr.msk.f32.gmra.mxu1 %vm1103_vm10, %v3883_v0  ;;  %v1530_v37 = vsel %vm1040_vm1, %v3620_v4, %v3604_v25  ;;  %v1307_v39 = vsel %vm1048_vm5, %v4264_v35, %v1306_v20  ;;  %v1526_v19 = vsel %vm1046_vm4, %v4266_v1, %v1525_v33  ;;  %v1310_v54 = vsel %vm1040_vm1, %v4267_v47, %v1260_v59  ;;  %v4274_v35 = vld [vmem:[#allocation4_spill] sm:$0xff] }
  0x76   : > { %v1531_v31 = vsel %vm1042_vm2, %v3586_v29, %v1530_v37  ;;  %v1308_v7 = vsel %vm1050_vm6, %v4266_v1, %v1307_v39  ;;  %v1527_v23 = vsel %vm1048_vm5, %v4268_v15, %v1526_v19  ;;  %v1311_v56 = vsel %vm1042_vm2, %v3604_v25, %v1310_v54  ;;  %v4275_v37 = vld [vmem:[#allocation23_spill] sm:$0xff] }
  0x77   : > { %v1480_v57 = vrot.slane %v1448_v51, %v3061_v12  ;;  %v3924_v58 = vsel %vm1052_vm7, %v4268_v15, %v1308_v7  ;;  %v1528_v32 = vsel %vm1050_vm6, %v4269_v63, %v1527_v23  ;;  %v1312_v34 = vsel %vm1044_vm3, %v3620_v4, %v1311_v56  ;;  %v263_v56 = vld [vmem:[%s4152_s3 + $0x20] sm:$0xf]  ;;  %v4279_v63 = vld [vmem:[#allocation21_spill] sm:$0xff] }
  0x78   : > { %v1532_v52 = vsel %vm1044_vm3, %v3591_v24, %v1531_v31  ;;  %2869 = vmatprep.mubr.msk.f32.mxu1 %vm1103_vm10, %v3924_v58  ;;  %v3935_v25 = vsel %vm1052_vm7, %v1476_v36, %v1528_v32  ;;  %v1313_v3 = vsel %vm1046_vm4, %v3586_v29, %v1312_v34  ;;  %v295_v13 = vmul.f32 %v4270_v2, %v249_v21  ;;  %v4277_v31 = vld [vmem:[#allocation34_spill] sm:$0xff] }
  0x79   : > { %v1533_v28 = vsel %vm1046_vm4, %v3594_v48, %v1532_v52  ;;  %2883 = vmatprep.mubr.msk.f32.mxu0 %vm1103_vm10, %v3935_v25  ;;  %v1314_v4 = vsel %vm1048_vm5, %v3591_v24, %v1313_v3  ;;  %v296_v61 = vmul.f32 %v4270_v2, %v250_v55  ;;  %v297_v26 = vmul.f32 %v4270_v2, %v251_v45 }
  0x7a   : > { %v1534_v17 = vsel %vm1048_vm5, %v3609_v10, %v1533_v28  ;;  %v1315_v29 = vsel %vm1050_vm6, %v3594_v48, %v1314_v4  ;;  %v332_v5 = vadd.f32 %v4271_v62, %v295_v13  ;;  %v4272_v48 = vld [vmem:[#allocation11_spill] sm:$0xff] }
  0x7b   : > { %v1535_v41 = vsel %vm1050_vm6, %v3598_v8, %v1534_v17  ;;  %v3957_v27 = vsel %vm1052_vm7, %v3609_v10, %v1315_v29  ;;  %v333_v36 = vadd.f32 %v4271_v62, %v296_v61  ;;  %v334_v9 = vadd.f32 %v4271_v62, %v297_v26  ;;  %v4280_v26 = vld [vmem:[#allocation33_spill] sm:$0xff] }
  0x7c   : > { %v3960_v24 = vsel %vm1052_vm7, %v1480_v57, %v1535_v41  ;;  %2870 = vmatmul.mubr.msk.f32.gmra.mxu1 %vm1103_vm10, %v3957_v27  ;;  %v362_v8 = vmax.f32 %v332_v5, 0.0  ;;  %v4278_v57 = vld [vmem:[#allocation10_spill] sm:$0xff] }
  0x7d   : > { %2884 = vmatmul.mubr.msk.f32.gmra.mxu0 %vm1103_vm10, %v3960_v24  ;;  %2888 = vmatprep.mubr.msk.f32.mxu1 %vm1103_vm10, %v3690_v11  ;;  %v363_v10 = vmax.f32 %v333_v36, 0.0  ;;  %v364_v42 = vmax.f32 %v334_v9, 0.0  ;;  %v262_v11 = vld [vmem:[%s4152_s3 + $0x1c] sm:$0xf] }
  0x7e   : > { %2902 = vmatprep.mubr.msk.f32.mxu0 %vm1103_vm10, %v4272_v48  ;;  %v426_v59 = vsel %vm372_vm8, %v362_v8, 0.0 }
  0x7f   : > { %v1671_v20 = vcombine.high %v426_v59, %v426_v59  ;;  %v1678_v33 = vrot.slane %v426_v59, %v4274_v35  ;;  %v1688_v6 = vcombine.high %v363_v10, %v363_v10  ;;  %v1695_v51 = vrot.slane %v363_v10, %v4274_v35 }
  0x80   : > { %2889 = vmatmul.mubr.msk.f32.vlgmr.msra.gmra.mxu1 %vm1103_vm10, %v3725_v14  ;;  %v428_v54 = vsel %vm383_vm9, %v364_v42, 0.0 }
  0x81   : > { %2903 = vmatmul.mubr.msk.f32.vlgmr.msra.gmra.mxu0 %vm1103_vm10, %v4275_v37  ;;  %2915 = vmatpush3.msk.msra.mxu1 %vm1120_vm0, %v3746_v60  ;;  %v1685_v39 = vrot.slane %v1671_v20, %v4274_v35  ;;  %v1686_v1 = vcombine.high %v1678_v33, %v1678_v33  ;;  %v1702_v19 = vrot.slane %v1688_v6, %v4274_v35 }
  0x82   : > { %2929 = vmatpush3.msk.msra.mxu0 %vm1120_vm0, %v3700_v53  ;;  %2891 = vmatprep.mubr.msk.f32.mxu1 %vm1103_vm10, %v3799_v40  ;;  %v1703_v21 = vcombine.high %v1695_v51, %v1695_v51  ;;  %v1708_v60 = vrot.slane %v1678_v33, %v3061_v12  ;;  %v1724_v55 = vrot.slane %v1695_v51, %v3061_v12 }
  0x83   : > { %2905 = vmatprep.mubr.msk.f32.mxu0 %vm1103_vm10, %v4277_v31  ;;  %v1687_v7 = vcombine.high %v1685_v39, %v1685_v39  ;;  %v1704_v15 = vcombine.high %v1702_v19, %v1702_v19  ;;  %v1712_v53 = vrot.slane %v1686_v1, %v3061_v12  ;;  %v1716_v23 = vrot.slane %v1685_v39, %v3061_v12 }
  0x84   : > { %2942 = vmatprep.subr.msk.mxu1 %vm1120_vm0, %v262_v11  ;;  %2892 = vmatmul.mubr.msk.f32.gmra.mxu1 %vm1103_vm10, %v3828_v44  ;;  %v1869_v45 = vrot.slane %v428_v54, %v4274_v35  ;;  %v1728_v34 = vrot.slane %v1703_v21, %v3061_v12  ;;  %v1732_v3 = vrot.slane %v1702_v19, %v3061_v12 }
  0x85   : > { %2906 = vmatmul.mubr.msk.f32.gmra.mxu0 %vm1103_vm10, %v4278_v57  ;;  %2894 = vmatprep.mubr.msk.f32.mxu1 %vm1103_vm10, %v3883_v0  ;;  %v1720_v32 = vrot.slane %v1687_v7, %v3061_v12  ;;  %v1737_v52 = vsel %vm1040_vm1, %v1712_v53, %v1708_v60  ;;  %v1874_v2 = vsel %vm1040_vm1, %v1716_v23, %v1712_v53 }
  0x86   : > { %2908 = vmatprep.mubr.msk.f32.mxu0 %vm1103_vm10, %v4279_v63  ;;  %v1738_v28 = vsel %vm1042_vm2, %v1716_v23, %v1737_v52  ;;  %2956 = vmatprep.subr.msk.mxu0 %vm1120_vm0, %v263_v56  ;;  %v1736_v13 = vrot.slane %v1704_v15, %v3061_v12  ;;  %v1873_v41 = vrot.slane %v1869_v45, %v3061_v12 }
  0x87   : > { %v1739_v4 = vsel %vm1044_vm3, %v1720_v32, %v1738_v28  ;;  %v1875_v17 = vsel %vm1042_vm2, %v1720_v32, %v1874_v2  ;;  %v2004_v61 = vsel %vm1040_vm1, %v1720_v32, %v1716_v23  ;;  %v1999_v35 = vcombine.high %v1869_v45, %v1869_v45 }
  0x88   : > { %2895 = vmatmul.mubr.msk.f32.gmra.mxu1 %vm1103_vm10, %v3924_v58  ;;  %v1740_v29 = vsel %vm1046_vm4, %v1724_v55, %v1739_v4  ;;  %v1876_v62 = vsel %vm1044_vm3, %v1724_v55, %v1875_v17  ;;  %v2005_v48 = vsel %vm1042_vm2, %v1724_v55, %v2004_v61 }
  0x89   : > { %2909 = vmatmul.mubr.msk.f32.gmra.mxu0 %vm1103_vm10, %v4280_v26  ;;  %2897 = vmatprep.mubr.msk.f32.mxu1 %vm1103_vm10, %v3957_v27  ;;  %v1741_v5 = vsel %vm1048_vm5, %v1728_v34, %v1740_v29  ;;  %v1877_v36 = vsel %vm1046_vm4, %v1728_v34, %v1876_v62  ;;  %v2006_v59 = vsel %vm1044_vm3, %v1728_v34, %v2005_v48 }
  0x8a   : > { %2911 = vmatprep.mubr.msk.f32.mxu0 %vm1103_vm10, %v3686_v49  ;;  %v1742_v9 = vsel %vm1050_vm6, %v1732_v3, %v1741_v5  ;;  %v1878_v8 = vsel %vm1048_vm5, %v1732_v3, %v1877_v36  ;;  %v2007_v20 = vsel %vm1046_vm4, %v1732_v3, %v2006_v59 }
  0x8b   : > { %v1743_v10 = vsel %vm1052_vm7, %v1736_v13, %v1742_v9  ;;  %v1879_v42 = vsel %vm1050_vm6, %v1736_v13, %v1878_v8 }
  0x8c   : > { %2898 = vmatmul.mubr.msk.f32.gmra.mxu1 %vm1103_vm10, %v1743_v10  ;;  %v1880_v50 = vsel %vm1052_vm7, %v1873_v41, %v1879_v42 }
  0x8d   : > { %2912 = vmatmul.mubr.msk.f32.gmra.mxu0 %vm1103_vm10, %v1880_v50  ;;  %2916 = vmatprep.mubr.msk.f32.mxu1 %vm1103_vm10, %v3693_v22  ;;  %v2008_v22 = vsel %vm1048_vm5, %v1736_v13, %v2007_v20 }
  0x8e   : > { %2930 = vmatprep.mubr.msk.f32.mxu0 %vm1103_vm10, %v3725_v14  ;;  %v2003_v14 = vrot.slane %v1999_v35, %v3061_v12  ;;  %v4281_v12 = vld [vmem:[#allocation7_spill] sm:$0xff] }
  0x90   : > { %2917 = vmatmul.mubr.msk.f32.vlgmr.msra.gmra.mxu1 %vm1103_vm10, %v3768_v43 }
  0x91   : > { %2931 = vmatmul.mubr.msk.f32.vlgmr.msra.gmra.mxu0 %vm1103_vm10, %v3799_v40  ;;  %2943 = vmatpush3.msk.msra.mxu1 %vm1120_vm0, %v262_v11  ;;  %v2009_v40 = vsel %vm1050_vm6, %v1873_v41, %v2008_v22 }
  0x92   : > { %2957 = vmatpush3.msk.msra.mxu0 %vm1120_vm0, %v263_v56  ;;  %2919 = vmatprep.mubr.msk.f32.mxu1 %vm1103_vm10, %v3802_v30 }
  0x93   : > { %2933 = vmatprep.mubr.msk.f32.mxu0 %vm1103_vm10, %v3828_v44  ;;  %v2010_v44 = vsel %vm1052_vm7, %v2003_v14, %v2009_v40 }
  0x94   : > { %2920 = vmatmul.mubr.msk.f32.gmra.mxu1 %vm1103_vm10, %v3854_v46 }
  0x95   : > { %2934 = vmatmul.mubr.msk.f32.gmra.mxu0 %vm1103_vm10, %v3883_v0  ;;  %2922 = vmatprep.mubr.msk.f32.mxu1 %vm1103_vm10, %v3876_v18 }
  0x96   : > { %2936 = vmatprep.mubr.msk.f32.mxu0 %vm1103_vm10, %v3924_v58 }
  0x98   : > { %2923 = vmatmul.mubr.msk.f32.gmra.mxu1 %vm1103_vm10, %v3935_v25 }
  0x99   : > { %2937 = vmatmul.mubr.msk.f32.gmra.mxu0 %vm1103_vm10, %v3957_v27  ;;  %2925 = vmatprep.mubr.msk.f32.mxu1 %vm1103_vm10, %v3960_v24 }
  0x9a   : > { %2939 = vmatprep.mubr.msk.f32.mxu0 %vm1103_vm10, %v1743_v10 }
  0x9c   : > { %2926 = vmatmul.mubr.msk.f32.gmra.mxu1 %vm1103_vm10, %v2010_v44 }
  0x9d   : > { %2940 = vmatmul.mubr.msk.f32.gmra.mxu0 %vm1103_vm10, %v3613_v38  ;;  %2944 = vmatprep.mubr.msk.f32.mxu1 %vm1103_vm10, %v4275_v37 }
  0x9e   : > { %2958 = vmatprep.mubr.msk.f32.mxu0 %vm1103_vm10, %v3768_v43 }
  0xa0   : > { %2945 = vmatmul.mubr.msk.f32.vlgmr.msra.gmra.mxu1 %vm1103_vm10, %v4277_v31 }
  0xa1   : > { %2959 = vmatmul.mubr.msk.f32.vlgmr.msra.gmra.mxu0 %vm1103_vm10, %v3802_v30  ;;  %2947 = vmatprep.mubr.msk.f32.mxu1 %vm1103_vm10, %v4278_v57 }
  0xa2   : > { %2961 = vmatprep.mubr.msk.f32.mxu0 %vm1103_vm10, %v3854_v46 }
  0xa4   : > { %2948 = vmatmul.mubr.msk.f32.gmra.mxu1 %vm1103_vm10, %v4279_v63 }
  0xa5   : > { %2962 = vmatmul.mubr.msk.f32.gmra.mxu0 %vm1103_vm10, %v3876_v18  ;;  %2950 = vmatprep.mubr.msk.f32.mxu1 %vm1103_vm10, %v4280_v26 }
  0xa6   : > { %2964 = vmatprep.mubr.msk.f32.mxu0 %vm1103_vm10, %v3935_v25 }
  0xa8   : > { %2951 = vmatmul.mubr.msk.f32.gmra.mxu1 %vm1103_vm10, %v3686_v49 }
  0xa9   : > { %2965 = vmatmul.mubr.msk.f32.gmra.mxu0 %vm1103_vm10, %v3960_v24  ;;  %2953 = vmatprep.mubr.msk.f32.mxu1 %vm1103_vm10, %v1880_v50 }
  0xaa   : > { %2967 = vmatprep.mubr.msk.f32.mxu0 %vm1103_vm10, %v2010_v44 }
  0xac   : > { %2954 = vmatmul.mubr.msk.f32.gmra.mxu1 %vm1103_vm10, %v4281_v12 }
  0xad   : > { %2968 = vmatmul.mubr.msk.f32.gmra.mxu0 %vm1103_vm10, %v3652_v16 }
  0xee   : > { %v2848_v38 = vpop.f32.mrf.mxu0 }
  0xf0   : > { %v1190_v43 = vpop.f32.mrf.mxu0 }
  0xfb   : > { %v2854_v30 = vpop.f32.mrf.mxu1 }
  0xfd   : > { %v1210_v18 = vpop.f32.mrf.mxu1 }
 0x115   : > { %v2851_v46 = vpop.f32.mrf.mxu0 }
 0x117   : > { %v1200_v0 = vpop.f32.mrf.mxu0 }
 0x121   : > { %v2857_v49 = vpop.f32.mrf.mxu1 }
 0x122   : > { %v2876_v25 = vpop.f32.mrf.mxu0 }
 0x123   : > { %v4112_v58 = vpop.f32.mrf.mxu1 }
 0x124   : > { %v1622_v33 = vpop.f32.mrf.mxu0 }
 0x125   : > { %v2862_v27 = vpop.f32.mrf.mxu1 }
 0x126   : > { %v1408_v2 = vadd.f32 %v2862_v27, %v2848_v38 }
 0x127   : > { %v1402_v24 = vpop.f32.mrf.mxu1 }
 0x128   : > { %v1403_v17 = vadd.f32 %v1402_v24, %v1190_v43  ;;  %v1662_v29 = vadd.f32 %v2876_v25, %v1408_v2 }
 0x12a   : > { %v1661_v36 = vadd.f32 %v1622_v33, %v1403_v17 }
 0x12b   : > { %v2865_v6 = vpop.f32.mrf.mxu1 }
 0x12c   : > { %v2879_v51 = vpop.f32.mrf.mxu0  ;;  %v1418_v41 = vadd.f32 %v2865_v6, %v2851_v46 }
 0x12d   : > { %v1412_v37 = vpop.f32.mrf.mxu1 }
 0x12e   : > { %v1632_v11 = vpop.f32.mrf.mxu0  ;;  %v1413_v9 = vadd.f32 %v1412_v37, %v1200_v0  ;;  %v1664_v50 = vadd.f32 %v2879_v51, %v1418_v41 }
 0x130   : > { %v1663_v14 = vadd.f32 %v1632_v11, %v1413_v9 }
 0x134   : > { %v2882_v1 = vpop.f32.mrf.mxu0 }
 0x135   : > { %v2868_v39 = vpop.f32.mrf.mxu1 }
 0x136   : > { %v1642_v19 = vpop.f32.mrf.mxu0  ;;  %v1428_v10 = vadd.f32 %v2868_v39, %v2854_v30 }
 0x137   : > { %v1422_v16 = vpop.f32.mrf.mxu1 }
 0x138   : > { %v1423_v35 = vadd.f32 %v1422_v16, %v1210_v18  ;;  %v1666_v38 = vadd.f32 %v2882_v1, %v1428_v10 }
 0x13a   : > { %v1665_v33 = vadd.f32 %v1642_v19, %v1423_v35 }
 0x13c   : > { %v2871_v47 = vpop.f32.mrf.mxu1 }
 0x13d   : > { %v2885_v54 = vpop.f32.mrf.mxu0  ;;  %v1438_v43 = vadd.f32 %v2871_v47, %v2857_v49 }
 0x13e   : > { %v1432_v31 = vpop.f32.mrf.mxu1 }
 0x13f   : > { %v1652_v21 = vpop.f32.mrf.mxu0  ;;  %v1433_v30 = vadd.f32 %v1432_v31, %v4112_v58  ;;  %v1668_v11 = vadd.f32 %v2885_v54, %v1438_v43  ;;  %v2759_v54 = vld [vmem:[%s4153_s4] ss:$0 sm:$0xff] }
 0x140   : > { %v2890_v60 = vpop.f32.mrf.mxu1 }
 0x141   : > { %v2904_v7 = vpop.f32.mrf.mxu0  ;;  %v1855_v8 = vadd.f32 %v2890_v60, %v1662_v29 }
 0x142   : > { %v1815_v15 = vpop.f32.mrf.mxu1 }
 0x143   : > { %v1952_v53 = vpop.f32.mrf.mxu0  ;;  %v1854_v59 = vadd.f32 %v1815_v15, %v1661_v36  ;;  %v1992_v40 = vadd.f32 %v2904_v7, %v1855_v8  ;;  %v1667_v15 = vadd.f32 %v1652_v21, %v1433_v30 }
 0x144   : > { %v2893_v23 = vpop.f32.mrf.mxu1 }
 0x145   : > { %v2907_v56 = vpop.f32.mrf.mxu0  ;;  %v1857_v44 = vadd.f32 %v2893_v23, %v1664_v50  ;;  %v1991_v25 = vadd.f32 %v1952_v53, %v1854_v59 }
 0x146   : > { %v1825_v57 = vpop.f32.mrf.mxu1 }
 0x147   : > { %v1962_v55 = vpop.f32.mrf.mxu0  ;;  %v1856_v27 = vadd.f32 %v1825_v57, %v1663_v14  ;;  %v1994_v37 = vadd.f32 %v2907_v56, %v1857_v44 }
 0x148   : > { %v2896_v45 = vpop.f32.mrf.mxu1 }
 0x149   : > { %v2910_v63 = vpop.f32.mrf.mxu0  ;;  %v1859_v6 = vadd.f32 %v2896_v45, %v1666_v38  ;;  %v1993_v7 = vadd.f32 %v1962_v55, %v1856_v27 }
 0x14a   : > { %v1835_v32 = vpop.f32.mrf.mxu1 }
 0x14b   : > { %v1972_v34 = vpop.f32.mrf.mxu0  ;;  %v1858_v16 = vadd.f32 %v1835_v32, %v1665_v33  ;;  %v1996_v53 = vadd.f32 %v2910_v63, %v1859_v6 }
 0x14c   : > { %v2899_v52 = vpop.f32.mrf.mxu1 }
 0x14d   : > { %v4114_v3 = vpop.f32.mrf.mxu0  ;;  %v1861_v23 = vadd.f32 %v2899_v52, %v1668_v11  ;;  %v1995_v56 = vadd.f32 %v1972_v34, %v1858_v16 }
 0x14e   : > { %v1845_v28 = vpop.f32.mrf.mxu1 }
 0x14f   : > { %v4116_v13 = vpop.f32.mrf.mxu0  ;;  %v1860_v45 = vadd.f32 %v1845_v28, %v1667_v15  ;;  %v1998_v63 = vadd.f32 %v4114_v3, %v1861_v23 }
 0x150   : > { %v2918_v4 = vpop.f32.mrf.mxu1 }
 0x151   : > { %v2932_v61 = vpop.f32.mrf.mxu0  ;;  %v2122_v24 = vadd.f32 %v2918_v4, %v1992_v40 }
 0x152   : > { %v2082_v26 = vpop.f32.mrf.mxu1 }
 0x153   : > { %v2275_v62 = vpop.f32.mrf.mxu0  ;;  %v2121_v39 = vadd.f32 %v2082_v26, %v1991_v25  ;;  %v2315_v1 = vadd.f32 %v2932_v61, %v2122_v24 }
 0x154   : > { %v2921_v5 = vpop.f32.mrf.mxu1 }
 0x155   : > { %v2935_v48 = vpop.f32.mrf.mxu0  ;;  %v2124_v49 = vadd.f32 %v2921_v5, %v1994_v37  ;;  %v2314_v19 = vadd.f32 %v2275_v62, %v2121_v39  ;;  %v1997_v5 = vadd.f32 %v4116_v13, %v1860_v45 }
 0x156   : > { %v2092_v42 = vpop.f32.mrf.mxu1 }
 0x157   : > { %v2285_v20 = vpop.f32.mrf.mxu0  ;;  %v2123_v2 = vadd.f32 %v2092_v42, %v1993_v7  ;;  %v2317_v32 = vadd.f32 %v2935_v48, %v2124_v49 }
 0x158   : > { %v2924_v22 = vpop.f32.mrf.mxu1 }
 0x159   : > { %v2938_v12 = vpop.f32.mrf.mxu0  ;;  %v2126_v4 = vadd.f32 %v2924_v22, %v1996_v53  ;;  %v2316_v28 = vadd.f32 %v2285_v20, %v2123_v2 }
 0x15a   : > { %v2102_v46 = vpop.f32.mrf.mxu1 }
 0x15b   : > { %v2295_v0 = vpop.f32.mrf.mxu0  ;;  %v2125_v52 = vadd.f32 %v2102_v46, %v1995_v56  ;;  %v2319_v36 = vadd.f32 %v2938_v12, %v2126_v4 }
 0x15c   : > { %v2927_v51 = vpop.f32.mrf.mxu1 }
 0x15d   : > { %v2941_v18 = vpop.f32.mrf.mxu0  ;;  %v2128_v3 = vadd.f32 %v2927_v51, %v1998_v63  ;;  %v2318_v50 = vadd.f32 %v2295_v0, %v2125_v52 }
 0x15e   : > { %v2112_v60 = vpop.f32.mrf.mxu1 }
 0x15f   : > { %v2305_v47 = vpop.f32.mrf.mxu0  ;;  %v2127_v20 = vadd.f32 %v2112_v60, %v1997_v5  ;;  %v2321_v44 = vadd.f32 %v2941_v18, %v2128_v3 }
 0x160   : > { %v2946_v57 = vpop.f32.mrf.mxu1 }
 0x161   : > { %v2452_v58 = vadd.f32 %v2946_v57, %v2315_v1  ;;  %v2960_v31 = vpop.f32.mrf.mxu0  ;;  %v2320_v27 = vadd.f32 %v2305_v47, %v2127_v20 }
 0x162   : > { %v2412_v55 = vpop.f32.mrf.mxu1 }
 0x163   : > { %v2582_v17 = vadd.f32 %v2960_v31, %v2452_v58  ;;  %v2451_v61 = vadd.f32 %v2412_v55, %v2314_v19  ;;  %v2542_v21 = vpop.f32.mrf.mxu0 }
 0x164   : > { %v2949_v34 = vpop.f32.mrf.mxu1 }
 0x165   : > { %v2597_v26 = vadd.f32 %v2759_v54, %v2582_v17  ;;  %v2581_v29 = vadd.f32 %v2542_v21, %v2451_v61  ;;  %v2454_v41 = vadd.f32 %v2949_v34, %v2317_v32  ;;  %v2963_v62 = vpop.f32.mrf.mxu0 }
 0x166   : > { %v2422_v9 = vpop.f32.mrf.mxu1 }
 0x167   : > { %2606 = vst.msk [vmem:[%s4127_s19 + $0x8] sm:$0xff] %vm2604_vm11, %v2597_v26  ;;  %v2596_v8 = vadd.f32 %v2759_v54, %v2581_v29  ;;  %v2584_v48 = vadd.f32 %v2963_v62, %v2454_v41  ;;  %v2453_v10 = vadd.f32 %v2422_v9, %v2316_v28  ;;  %v2552_v42 = vpop.f32.mrf.mxu0 }
 0x168   : > { %v2952_v59 = vpop.f32.mrf.mxu1 }
 0x169   : > { %2605 = vst.msk [vmem:[%s4127_s19] sm:$0xff] %vm2604_vm11, %v2596_v8  ;;  %v2599_v35 = vadd.f32 %v2759_v54, %v2584_v48  ;;  %v2583_v22 = vadd.f32 %v2552_v42, %v2453_v10  ;;  %v2456_v14 = vadd.f32 %v2952_v59, %v2319_v36  ;;  %v2966_v13 = vpop.f32.mrf.mxu0 }
 0x16a   : > { %v2432_v40 = vpop.f32.mrf.mxu1 }
 0x16b   : > { %2608 = vst.msk [vmem:[%s4127_s19 + $0x18] sm:$0xff] %vm2604_vm11, %v2599_v35  ;;  %v2598_v12 = vadd.f32 %v2759_v54, %v2583_v22  ;;  %v2586_v38 = vadd.f32 %v2966_v13, %v2456_v14  ;;  %v2455_v43 = vadd.f32 %v2432_v40, %v2318_v50  ;;  %v2562_v46 = vpop.f32.mrf.mxu0 }
 0x16c   : > { %v2955_v25 = vpop.f32.mrf.mxu1 }
 0x16d   : > { %2607 = vst.msk [vmem:[%s4127_s19 + $0x10] sm:$0xff] %vm2604_vm11, %v2598_v12  ;;  %v2601_v24 = vadd.f32 %v2759_v54, %v2586_v38  ;;  %v2585_v0 = vadd.f32 %v2562_v46, %v2455_v43  ;;  %v2458_v33 = vadd.f32 %v2955_v25, %v2321_v44  ;;  %v2969_v30 = vpop.f32.mrf.mxu0 }
 0x16e   : > { %v2442_v6 = vpop.f32.mrf.mxu1 }
 0x16f   : > { %2610 = vst.msk [vmem:[%s4127_s19 + $0x28] sm:$0xff] %vm2604_vm11, %v2601_v24  ;;  %v2600_v51 = vadd.f32 %v2759_v54, %v2585_v0  ;;  %v2588_v37 = vadd.f32 %v2969_v30, %v2458_v33  ;;  %v2457_v39 = vadd.f32 %v2442_v6, %v2320_v27  ;;  %v2572_v18 = vpop.f32.mrf.mxu0 }
 0x171   : > { %2609 = vst.msk [vmem:[%s4127_s19 + $0x20] sm:$0xff] %vm2604_vm11, %v2600_v51  ;;  %v2603_v11 = vadd.f32 %v2759_v54, %v2588_v37  ;;  %v2587_v16 = vadd.f32 %v2572_v18, %v2457_v39 }
 0x173   : > { %2612 = vst.msk [vmem:[%s4127_s19 + $0x38] sm:$0xff] %vm2604_vm11, %v2603_v11  ;;  %v2602_v60 = vadd.f32 %v2759_v54, %v2587_v16 }
 0x175   : > { %2611 = vst.msk [vmem:[%s4127_s19 + $0x30] sm:$0xff] %vm2604_vm11, %v2602_v60 }
 0x176 PF: > { %s15_s18 = sadd.s32 1, %s2989_s18  }
 0x177   : > { %p12_p4 = scmp.ge.s32.totalorder %s15_s18, 4  }
 0x179   :  { %14 = sbr.rel (!%p12_p4) target bundleno = 1 (0x1), region = 70 }

</bundles_post_ra>
